<compile_context>
chip_gen: v7x
topology: tpu7x:2x2x1
jax: 0.10.0
libtpu: 0.0.40
codegen_flags: <defaults>
</compile_context>

<pallas_src>
import functools

import jax
import jax.numpy as jnp
from jax import lax
from jax.experimental import pallas as pl
from jax.experimental.pallas import tpu as pltpu

LN_EPS = 1e-6  # ieps_ln_default in the source repo (PyTorch nn.LayerNorm default is 1e-5)


def _lstm4rnmt_kernel(x_ref, wx_ref, wh_ref, b_ref, lnw_ref, lnb_ref,
                      h0_ref, c0_ref, out_ref, h_scr, c_scr, xz_scr):
    """Processes one (batch-block, time-block) grid step.

    x_ref   : (TT, Bb, I)    time-major inputs for this block
    wx_ref  : (I, 4*O)       input weight      (resident; f32 or bf16)
    wh_ref  : (O, 4*O)       recurrent weight  (resident; f32 or bf16)
    b_ref   : (1, 4*O)       Linear bias (f32)
    lnw_ref : (1, 4*O)       LN scale, pre-scaled by [1,1,1,2] per gate
    lnb_ref : (1, 4*O)       LN shift, pre-scaled by [1,1,1,2] per gate
    h0_ref  : (1, O)         learned initial hidden state
    c0_ref  : (1, O)         learned initial cell state
    out_ref : (TT, Bb, O)    hidden-state outputs (time-major)
    h_scr   : (Bb, O)        recurrent carry, persists across time blocks
    c_scr   : (Bb, O)        recurrent carry, persists across time blocks
    xz_scr  : (TT, Bb, 4*O)  per-block non-recurrent pre-activations
    """
    TT, Bb, I = x_ref.shape
    O = h_scr.shape[-1]
    G = 4 * O
    compute_dtype = wx_ref.dtype  # matmul operand dtype (bf16 on v5e/v6e/v7x)

    # Re-initialize the carry at the first time block of each batch block.
    @pl.when(pl.program_id(1) == 0)
    def _():
        h_scr[...] = jnp.broadcast_to(h0_ref[...], h_scr.shape)
        c_scr[...] = jnp.broadcast_to(c0_ref[...], c_scr.shape)

    # Non-recurrent half of the Linear for the whole time block: one big,
    # MXU-friendly (TT*Bb, I) @ (I, 4O) matmul OFF the serial recurrent chain.
    # (Bb is a multiple of 8, so the reshapes are layout-preserving.)
    x2 = x_ref[...].reshape(TT * Bb, I).astype(compute_dtype)
    xz = jnp.dot(x2, wx_ref[...], preferred_element_type=jnp.float32) + b_ref[...]
    xz_scr[...] = xz.reshape(TT, Bb, G)

    # Hoist weight load and LN broadcasts out of the time loop (no CSE inside loops).
    wh = wh_ref[...]
    ln_w = jnp.broadcast_to(lnw_ref[...], (Bb, G))
    ln_b = jnp.broadcast_to(lnb_ref[...], (Bb, G))
    inv_n = 1.0 / float(G)

    def step(tt, carry):
        h, c = carry
        # Only h @ Wh remains on the serial critical path (f32 accumulation).
        z = xz_scr[tt] + jnp.dot(h.astype(compute_dtype), wh,
                                 preferred_element_type=jnp.float32)

        # One-pass LayerNorm statistics; clamp the variance against cancellation.
        m = jnp.sum(z, axis=-1, keepdims=True) * inv_n
        m2 = jnp.sum(z * z, axis=-1, keepdims=True) * inv_n
        var = jnp.maximum(m2 - m * m, 0.0)
        zn = (z - m) * lax.rsqrt(var + LN_EPS) * ln_w + ln_b

        # Lane-dense single EUP pass: ln_w/ln_b already carry a x2 factor on the
        # g-gate columns, so tanh(g) == 2*sigmoid(2g) - 1 falls out of one sigmoid.
        s = jax.nn.sigmoid(zn)
        ig = s[:, 0:O]
        fg = s[:, O:2 * O]
        og = s[:, 2 * O:3 * O]
        g = 2.0 * s[:, 3 * O:4 * O] - 1.0

        c = fg * c + ig * g
        h = og * c                      # NO tanh(c), per LSTMCell4RNMT
        out_ref[tt] = h
        return (h, c)

    h, c = lax.fori_loop(0, TT, step, (h_scr[...], c_scr[...]), unroll=True)
    h_scr[...] = h
    c_scr[...] = c


@functools.partial(jax.jit,
                   static_argnames=("block_t", "batch_blocks", "matmul_dtype",
                                    "single_buffer_constants"))
def _forward_impl(x, wx, wh, b, ln_w, ln_b, init_hx, init_cx, *,
                  block_t, batch_blocks, matmul_dtype, single_buffer_constants):
    B, T, I = x.shape
    O = init_hx.shape[-1]
    G = 4 * O

    # Pad batch to a multiple of 8 (full sublanes); padded rows run an independent,
    # discarded recurrence and never affect the real rows.
    B_pad = max(8, ((B + 7) // 8) * 8)

    # Optional batch split (v7x megacore: both TensorCores). Each batch block must
    # keep a multiple-of-8 sublane extent.
    if batch_blocks is None:
        batch_blocks = 2 if (B_pad >= 16 and B_pad % 16 == 0) else 1
    Bb = B_pad // batch_blocks

    # Time blocking: padded trailing steps only touch discarded carry/outputs.
    TT = max(1, min(block_t, T))
    T_pad = ((T + TT - 1) // TT) * TT

    # Time-major layout so every per-step tile is a full (Bb, 4O)/(Bb, O) slab.
    x_tm = jnp.transpose(x, (1, 0, 2)).astype(jnp.float32)          # (T, B, I)
    x_tm = jnp.pad(x_tm, ((0, T_pad - T), (0, B_pad - B), (0, 0)))  # (T_pad, B_pad, I)

    # Matmul operands in bf16 (MXU-native); LN/gates stay in f32.
    wx_m = wx.astype(matmul_dtype)
    wh_m = wh.astype(matmul_dtype)

    # Fold the tanh-as-sigmoid trick into the LN affine params: scale the g-gate
    # columns by 2 so one dense sigmoid covers all four gates.
    gate_scale = jnp.concatenate(
        [jnp.ones((1, 3 * O), jnp.float32), jnp.full((1, O), 2.0, jnp.float32)], axis=1)
    ln_w_s = ln_w.reshape(1, G).astype(jnp.float32) * gate_scale
    ln_b_s = ln_b.reshape(1, G).astype(jnp.float32) * gate_scale

    b2 = b.reshape(1, G).astype(jnp.float32)
    h0 = init_hx.reshape(1, O).astype(jnp.float32)
    c0 = init_cx.reshape(1, O).astype(jnp.float32)

    # Constant (index-invariant) inputs only need a single VMEM buffer.
    const_mode = {"pipeline_mode": pl.Buffered(1)} if single_buffer_constants else {}

    in_specs = [
        pl.BlockSpec((TT, Bb, I), lambda bb, s: (s, bb, 0)),           # x (time-major)
        pl.BlockSpec((I, G), lambda bb, s: (0, 0), **const_mode),      # Wx (resident)
        pl.BlockSpec((O, G), lambda bb, s: (0, 0), **const_mode),      # Wh (resident)
        pl.BlockSpec((1, G), lambda bb, s: (0, 0), **const_mode),      # bias
        pl.BlockSpec((1, G), lambda bb, s: (0, 0), **const_mode),      # LN scale (scaled)
        pl.BlockSpec((1, G), lambda bb, s: (0, 0), **const_mode),      # LN shift (scaled)
        pl.BlockSpec((1, O), lambda bb, s: (0, 0), **const_mode),      # init_hx
        pl.BlockSpec((1, O), lambda bb, s: (0, 0), **const_mode),      # init_cx
    ]
    out_spec = pl.BlockSpec((TT, Bb, O), lambda bb, s: (s, bb, 0))

    # VMEM budget derived from the actual buffers (+ headroom for compiler scratch).
    w_item = jnp.dtype(matmul_dtype).itemsize
    const_bufs = 1 if single_buffer_constants else 2
    vmem_bytes = (
        2 * TT * Bb * I * 4                       # x blocks (double-buffered)
        + 2 * TT * Bb * O * 4                     # out blocks (double-buffered)
        + const_bufs * (I * G + O * G) * w_item   # Wx + Wh
        + const_bufs * (3 * G + 2 * O) * 4        # bias / LN / init params
        + (2 * Bb * O + TT * Bb * G) * 4          # scratch (carry + block pre-acts)
    )
    vmem_limit = min(int(vmem_bytes * 1.5) + (4 << 20), 96 << 20)

    grid_spec = pltpu.PrefetchScalarGridSpec(
        num_scalar_prefetch=0,
        grid=(batch_blocks, T_pad // TT),         # (parallel batch, sequential time)
        in_specs=in_specs,
        out_specs=out_spec,
        scratch_shapes=[
            pltpu.VMEM((Bb, O), jnp.float32),         # h carry
            pltpu.VMEM((Bb, O), jnp.float32),         # c carry
            pltpu.VMEM((TT, Bb, G), jnp.float32),     # block pre-activations
        ],
    )

    out_tm = pl.pallas_call(
        _lstm4rnmt_kernel,
        out_shape=jax.ShapeDtypeStruct((T_pad, B_pad, O), jnp.float32),
        grid_spec=grid_spec,
        compiler_params=pltpu.CompilerParams(
            dimension_semantics=("parallel", "arbitrary"),
            vmem_limit_bytes=vmem_limit),
    )(x_tm, wx_m, wh_m, b2, ln_w_s, ln_b_s, h0, c0)

    # Back to batch-first: one memory-bound XLA pass outside the serial kernel.
    return jnp.transpose(out_tm[:T, :B, :], (1, 0, 2))


def lstm4rnmt_forward(x, wx, wh, b, ln_w, ln_b, init_hx, init_cx, *,
                      block_t=8, batch_blocks=None, matmul_dtype=jnp.bfloat16):
    """x: (B, T, I) batch-first (PyTorch convention). Returns (B, T, O)."""
    kwargs = dict(block_t=block_t, batch_blocks=batch_blocks, matmul_dtype=matmul_dtype)
    try:
        return _forward_impl(x, wx, wh, b, ln_w, ln_b, init_hx, init_cx,
                             single_buffer_constants=True, **kwargs)
    except Exception:
        # pl.Buffered(1) single-buffering of the resident weights is not supported on
        # every JAX/Mosaic version; fall back to default double-buffering.
        return _forward_impl(x, wx, wh, b, ln_w, ln_b, init_hx, init_cx,
                             single_buffer_constants=False, **kwargs)


def _reference_forward(x, wx, wh, b, ln_w, ln_b, init_hx, init_cx):
    """Pure-JAX reference of the same computation (for a sanity check)."""
    B = x.shape[0]
    O = init_hx.shape[-1]
    h0 = jnp.broadcast_to(init_hx.reshape(1, O), (B, O))
    c0 = jnp.broadcast_to(init_cx.reshape(1, O), (B, O))

    def step(carry, x_t):
        h, c = carry
        z = x_t @ wx + h @ wh + b.reshape(1, -1)
        mean = jnp.mean(z, axis=-1, keepdims=True)
        var = jnp.mean((z - mean) ** 2, axis=-1, keepdims=True)
        zn = (z - mean) * lax.rsqrt(var + LN_EPS) * ln_w + ln_b
        ig = jax.nn.sigmoid(zn[:, 0:O])
        fg = jax.nn.sigmoid(zn[:, O:2 * O])
        og = jax.nn.sigmoid(zn[:, 2 * O:3 * O])
        g = jnp.tanh(zn[:, 3 * O:4 * O])
        c = fg * c + ig * g
        h = og * c
        return (h, c), h

    _, hs = lax.scan(step, (h0, c0), jnp.transpose(x, (1, 0, 2)))
    return jnp.transpose(hs, (1, 0, 2))


if __name__ == "__main__":
    def make_inputs(key, B, T, I, O):
        k_x, k_w, k_b = jax.random.split(key, 3)
        x = jax.random.normal(k_x, (B, T, I), dtype=jnp.float32)
        # Linear(isize + osize -> 4*osize): deterministic random weights split into Wx/Wh.
        w_full = (jax.random.normal(k_w, (I + O, 4 * O), dtype=jnp.float32)
                  * (1.0 / jnp.sqrt(jnp.float32(I + O))))
        wx, wh = w_full[:I], w_full[I:]
        b = jax.random.normal(k_b, (1, 4 * O), dtype=jnp.float32) * 0.01
        ln_w = jnp.ones((1, 4 * O), jnp.float32)   # LayerNorm((4, O)) default init, flattened
        ln_b = jnp.zeros((1, 4 * O), jnp.float32)
        init_hx = jnp.zeros((1, O), jnp.float32)   # zero-initialized nn.Parameters (1, O)
        init_cx = jnp.zeros((1, O), jnp.float32)
        return x, wx, wh, b, ln_w, ln_b, init_hx, init_cx

    key = jax.random.PRNGKey(0)
    k1, k2 = jax.random.split(key)

    # Case 1: module-like small shapes (B=4, T=10, I=16, O=32); exact f32 matmuls.
    # Exercises batch padding (4->8) and time padding / multi-time-block carry.
    args1 = make_inputs(k1, 4, 10, 16, 32)
    out1 = jax.block_until_ready(
        lstm4rnmt_forward(*args1, block_t=8, matmul_dtype=jnp.float32))
    ref1 = _reference_forward(*args1)
    assert out1.shape == (4, 10, 32)
    assert jnp.allclose(out1, ref1, atol=5e-4, rtol=5e-4), "f32 kernel mismatch vs reference"

    # Case 2: exercises the batch-split (two "parallel" batch blocks) path.
    args2 = make_inputs(k2, 16, 12, 16, 64)
    out2 = jax.block_until_ready(
        lstm4rnmt_forward(*args2, block_t=8, matmul_dtype=jnp.float32))
    ref2 = _reference_forward(*args2)
    assert out2.shape == (16, 12, 64)
    assert jnp.allclose(out2, ref2, atol=5e-4, rtol=5e-4), "batch-split kernel mismatch"

    # Case 3: production dtype (bf16 MXU operands, f32 LN/gates) — looser tolerance.
    out3 = jax.block_until_ready(
        lstm4rnmt_forward(*args1, block_t=8, matmul_dtype=jnp.bfloat16))
    assert jnp.allclose(out3, ref1, atol=5e-2, rtol=5e-2), "bf16 kernel mismatch vs reference"

    print("KERNEL_OK")
</pallas_src>

<mosaic_0001>
module attributes {stable_mosaic.version = 11 : i64} {
  func.func @_lstm4rnmt_kernel(%arg0: i32, %arg1: i32, %arg2: memref<8x8x16xf32, #tpu.memory_space<vmem>>, %arg3: memref<16x128xf32, #tpu.memory_space<vmem>>, %arg4: memref<32x128xf32, #tpu.memory_space<vmem>>, %arg5: memref<1x128xf32, #tpu.memory_space<vmem>>, %arg6: memref<1x128xf32, #tpu.memory_space<vmem>>, %arg7: memref<1x128xf32, #tpu.memory_space<vmem>>, %arg8: memref<1x32xf32, #tpu.memory_space<vmem>>, %arg9: memref<1x32xf32, #tpu.memory_space<vmem>>, %arg10: memref<8x8x32xf32, #tpu.memory_space<vmem>>, %arg11: memref<8x32xf32, #tpu.memory_space<vmem>>, %arg12: memref<8x32xf32, #tpu.memory_space<vmem>>, %arg13: memref<8x8x128xf32, #tpu.memory_space<vmem>>) attributes {dimension_semantics = [#tpu.dimension_semantics<parallel>, #tpu.dimension_semantics<arbitrary>], iteration_bounds = array<i64: 1, 2>, scalar_prefetch = 0 : i64, scratch_operands = 3 : i64, tpu.core_type = #tpu.core_type<tc>, window_params = [{transform_indices = @transform_0, window_bounds = array<i64: 8, 8, 16>}, {pipeline_mode = #tpu.pipeline_mode<synchronous>, transform_indices = @transform_1, window_bounds = array<i64: 16, 128>}, {pipeline_mode = #tpu.pipeline_mode<synchronous>, transform_indices = @transform_2, window_bounds = array<i64: 32, 128>}, {pipeline_mode = #tpu.pipeline_mode<synchronous>, transform_indices = @transform_3, window_bounds = array<i64: 1, 128>}, {pipeline_mode = #tpu.pipeline_mode<synchronous>, transform_indices = @transform_4, window_bounds = array<i64: 1, 128>}, {pipeline_mode = #tpu.pipeline_mode<synchronous>, transform_indices = @transform_5, window_bounds = array<i64: 1, 128>}, {pipeline_mode = #tpu.pipeline_mode<synchronous>, transform_indices = @transform_6, window_bounds = array<i64: 1, 32>}, {pipeline_mode = #tpu.pipeline_mode<synchronous>, transform_indices = @transform_7, window_bounds = array<i64: 1, 32>}, {transform_indices = @transform_8, window_bounds = array<i64: 8, 8, 32>}]} {
    %c0_i32 = arith.constant 0 : i32
    %0 = arith.cmpi eq, %arg1, %c0_i32 : i32
    %1 = arith.extui %0 : i1 to i32
    %c0_i32_0 = arith.constant 0 : i32
    %2 = arith.cmpi ne, %1, %c0_i32_0 : i32
    scf.if %2 {
      %c0_137 = arith.constant 0 : index
      %c0_138 = arith.constant 0 : index
      %407 = vector.load %arg8[%c0_137, %c0_138] : memref<1x32xf32, #tpu.memory_space<vmem>>, vector<1x32xf32>
      %408 = vector.shape_cast %407 : vector<1x32xf32> to vector<1x32xf32>
      %409 = vector.broadcast %408 : vector<1x32xf32> to vector<8x32xf32>
      %c0_139 = arith.constant 0 : index
      %c0_140 = arith.constant 0 : index
      %410 = vector.load %arg11[%c0_139, %c0_140] : memref<8x32xf32, #tpu.memory_space<vmem>>, vector<8x32xf32>
      tpu.vector_store %arg11[%c0_139, %c0_140], %409 {strides = array<i32>} : memref<8x32xf32, #tpu.memory_space<vmem>>, vector<8x32xf32>,
      %c0_141 = arith.constant 0 : index
      %c0_142 = arith.constant 0 : index
      %411 = vector.load %arg9[%c0_141, %c0_142] : memref<1x32xf32, #tpu.memory_space<vmem>>, vector<1x32xf32>
      %412 = vector.shape_cast %411 : vector<1x32xf32> to vector<1x32xf32>
      %413 = vector.broadcast %412 : vector<1x32xf32> to vector<8x32xf32>
      %c0_143 = arith.constant 0 : index
      %c0_144 = arith.constant 0 : index
      %414 = vector.load %arg12[%c0_143, %c0_144] : memref<8x32xf32, #tpu.memory_space<vmem>>, vector<8x32xf32>
      tpu.vector_store %arg12[%c0_143, %c0_144], %413 {strides = array<i32>} : memref<8x32xf32, #tpu.memory_space<vmem>>, vector<8x32xf32>,
    } else {
    }
    %c0 = arith.constant 0 : index
    %c0_1 = arith.constant 0 : index
    %c0_2 = arith.constant 0 : index
    %3 = vector.load %arg2[%c0, %c0_1, %c0_2] : memref<8x8x16xf32, #tpu.memory_space<vmem>>, vector<8x8x16xf32>
    %4 = vector.shape_cast %3 : vector<8x8x16xf32> to vector<64x16xf32>
    %c0_3 = arith.constant 0 : index
    %c0_4 = arith.constant 0 : index
    %5 = vector.load %arg3[%c0_3, %c0_4] : memref<16x128xf32, #tpu.memory_space<vmem>>, vector<16x128xf32>
    %cst = arith.constant dense<0.000000e+00> : vector<64x128xf32>
    %6 = tpu.matmul %4, %5, %cst {dimension_numbers = #tpu.dot_dimension_numbers<[1], [0], [0], [1], [0, 0, 1, 1], [], []>} : vector<64x16xf32>, vector<16x128xf32>, vector<64x128xf32> -> vector<64x128xf32>
    %c0_5 = arith.constant 0 : index
    %c0_6 = arith.constant 0 : index
    %7 = vector.load %arg5[%c0_5, %c0_6] : memref<1x128xf32, #tpu.memory_space<vmem>>, vector<1x128xf32>
    %8 = vector.broadcast %7 : vector<1x128xf32> to vector<64x128xf32>
    %9 = arith.addf %6, %8 : vector<64x128xf32>
    %10 = vector.shape_cast %9 : vector<64x128xf32> to vector<8x8x128xf32>
    %c0_7 = arith.constant 0 : index
    %c0_8 = arith.constant 0 : index
    %c0_9 = arith.constant 0 : index
    %11 = vector.load %arg13[%c0_7, %c0_8, %c0_9] : memref<8x8x128xf32, #tpu.memory_space<vmem>>, vector<8x8x128xf32>
    tpu.vector_store %arg13[%c0_7, %c0_8, %c0_9], %10 {strides = array<i32>} : memref<8x8x128xf32, #tpu.memory_space<vmem>>, vector<8x8x128xf32>,
    %c0_10 = arith.constant 0 : index
    %c0_11 = arith.constant 0 : index
    %12 = vector.load %arg4[%c0_10, %c0_11] : memref<32x128xf32, #tpu.memory_space<vmem>>, vector<32x128xf32>
    %c0_12 = arith.constant 0 : index
    %c0_13 = arith.constant 0 : index
    %13 = vector.load %arg6[%c0_12, %c0_13] : memref<1x128xf32, #tpu.memory_space<vmem>>, vector<1x128xf32>
    %14 = vector.shape_cast %13 : vector<1x128xf32> to vector<1x128xf32>
    %15 = vector.broadcast %14 : vector<1x128xf32> to vector<8x128xf32>
    %c0_14 = arith.constant 0 : index
    %c0_15 = arith.constant 0 : index
    %16 = vector.load %arg7[%c0_14, %c0_15] : memref<1x128xf32, #tpu.memory_space<vmem>>, vector<1x128xf32>
    %17 = vector.shape_cast %16 : vector<1x128xf32> to vector<1x128xf32>
    %18 = vector.broadcast %17 : vector<1x128xf32> to vector<8x128xf32>
    %c0_16 = arith.constant 0 : index
    %c0_17 = arith.constant 0 : index
    %19 = vector.load %arg11[%c0_16, %c0_17] : memref<8x32xf32, #tpu.memory_space<vmem>>, vector<8x32xf32>
    %c0_18 = arith.constant 0 : index
    %c0_19 = arith.constant 0 : index
    %20 = vector.load %arg12[%c0_18, %c0_19] : memref<8x32xf32, #tpu.memory_space<vmem>>, vector<8x32xf32>
    %c0_i32_20 = arith.constant 0 : i32
    %21 = arith.index_cast %c0_i32_20 : i32 to index
    %c0_21 = arith.constant 0 : index
    %c0_22 = arith.constant 0 : index
    %22 = vector.load %arg13[%21, %c0_21, %c0_22] : memref<8x8x128xf32, #tpu.memory_space<vmem>>, vector<1x8x128xf32>
    %23 = vector.shape_cast %22 : vector<1x8x128xf32> to vector<8x128xf32>
    %cst_23 = arith.constant dense<0.000000e+00> : vector<8x128xf32>
    %24 = tpu.matmul %19, %12, %cst_23 {dimension_numbers = #tpu.dot_dimension_numbers<[1], [0], [0], [1], [0, 0, 1, 1], [], []>} : vector<8x32xf32>, vector<32x128xf32>, vector<8x128xf32> -> vector<8x128xf32>
    %25 = arith.addf %23, %24 : vector<8x128xf32>
    %cst_24 = arith.constant dense<0.000000e+00> : vector<8xf32>
    %26 = vector.multi_reduction <add>, %25, %cst_24 [1] : vector<8x128xf32> to vector<8xf32>
    %27 = vector.shape_cast %26 : vector<8xf32> to vector<8x1xf32>
    %cst_25 = arith.constant 7.812500e-03 : f32
    %28 = vector.broadcast %cst_25 : f32 to vector<8x1xf32>
    %29 = arith.mulf %27, %28 : vector<8x1xf32>
    %30 = arith.mulf %25, %25 : vector<8x128xf32>
    %cst_26 = arith.constant dense<0.000000e+00> : vector<8xf32>
    %31 = vector.multi_reduction <add>, %30, %cst_26 [1] : vector<8x128xf32> to vector<8xf32>
    %32 = vector.shape_cast %31 : vector<8xf32> to vector<8x1xf32>
    %cst_27 = arith.constant 7.812500e-03 : f32
    %33 = vector.broadcast %cst_27 : f32 to vector<8x1xf32>
    %34 = arith.mulf %32, %33 : vector<8x1xf32>
    %35 = arith.mulf %29, %29 : vector<8x1xf32>
    %36 = arith.subf %34, %35 : vector<8x1xf32>
    %cst_28 = arith.constant 0.000000e+00 : f32
    %37 = vector.broadcast %cst_28 : f32 to vector<8x1xf32>
    %38 = arith.maximumf %36, %37 : vector<8x1xf32>
    %39 = vector.broadcast %29 : vector<8x1xf32> to vector<8x128xf32>
    %40 = arith.subf %25, %39 : vector<8x128xf32>
    %cst_29 = arith.constant 9.99999997E-7 : f32
    %41 = vector.broadcast %cst_29 : f32 to vector<8x1xf32>
    %42 = arith.addf %38, %41 : vector<8x1xf32>
    %43 = math.rsqrt %42 : vector<8x1xf32>
    %44 = vector.broadcast %43 : vector<8x1xf32> to vector<8x128xf32>
    %45 = arith.mulf %40, %44 : vector<8x128xf32>
    %46 = arith.mulf %45, %15 : vector<8x128xf32>
    %47 = arith.addf %46, %18 : vector<8x128xf32>
    %48 = arith.negf %47 : vector<8x128xf32>
    %49 = math.exp %48 : vector<8x128xf32>
    %cst_30 = arith.constant 1.000000e+00 : f32
    %50 = vector.broadcast %cst_30 : f32 to vector<8x128xf32>
    %51 = arith.addf %50, %49 : vector<8x128xf32>
    %52 = arith.divf %50, %51 : vector<8x128xf32>
    %53 = vector.extract_strided_slice %52 {offsets = [0, 0], sizes = [8, 32], strides = [1, 1]} : vector<8x128xf32> to vector<8x32xf32>
    %54 = vector.extract_strided_slice %52 {offsets = [0, 32], sizes = [8, 32], strides = [1, 1]} : vector<8x128xf32> to vector<8x32xf32>
    %55 = vector.extract_strided_slice %52 {offsets = [0, 64], sizes = [8, 32], strides = [1, 1]} : vector<8x128xf32> to vector<8x32xf32>
    %56 = vector.extract_strided_slice %52 {offsets = [0, 96], sizes = [8, 32], strides = [1, 1]} : vector<8x128xf32> to vector<8x32xf32>
    %cst_31 = arith.constant 2.000000e+00 : f32
    %57 = vector.broadcast %cst_31 : f32 to vector<8x32xf32>
    %58 = arith.mulf %57, %56 : vector<8x32xf32>
    %cst_32 = arith.constant 1.000000e+00 : f32
    %59 = vector.broadcast %cst_32 : f32 to vector<8x32xf32>
    %60 = arith.subf %58, %59 : vector<8x32xf32>
    %61 = arith.mulf %54, %20 : vector<8x32xf32>
    %62 = arith.mulf %53, %60 : vector<8x32xf32>
    %63 = arith.addf %61, %62 : vector<8x32xf32>
    %64 = arith.mulf %55, %63 : vector<8x32xf32>
    %65 = arith.index_cast %c0_i32_20 : i32 to index
    %c0_33 = arith.constant 0 : index
    %c0_34 = arith.constant 0 : index
    %66 = vector.load %arg10[%65, %c0_33, %c0_34] : memref<8x8x32xf32, #tpu.memory_space<vmem>>, vector<1x8x32xf32>
    %67 = vector.shape_cast %66 : vector<1x8x32xf32> to vector<8x32xf32>
    %68 = vector.shape_cast %64 : vector<8x32xf32> to vector<1x8x32xf32>
    tpu.vector_store %arg10[%65, %c0_33, %c0_34], %68 {strides = array<i32>} : memref<8x8x32xf32, #tpu.memory_space<vmem>>, vector<1x8x32xf32>,
    %c1_i32 = arith.constant 1 : i32
    %69 = arith.index_cast %c1_i32 : i32 to index
    %c0_35 = arith.constant 0 : index
    %c0_36 = arith.constant 0 : index
    %70 = vector.load %arg13[%69, %c0_35, %c0_36] : memref<8x8x128xf32, #tpu.memory_space<vmem>>, vector<1x8x128xf32>
    %71 = vector.shape_cast %70 : vector<1x8x128xf32> to vector<8x128xf32>
    %cst_37 = arith.constant dense<0.000000e+00> : vector<8x128xf32>
    %72 = tpu.matmul %64, %12, %cst_37 {dimension_numbers = #tpu.dot_dimension_numbers<[1], [0], [0], [1], [0, 0, 1, 1], [], []>} : vector<8x32xf32>, vector<32x128xf32>, vector<8x128xf32> -> vector<8x128xf32>
    %73 = arith.addf %71, %72 : vector<8x128xf32>
    %cst_38 = arith.constant dense<0.000000e+00> : vector<8xf32>
    %74 = vector.multi_reduction <add>, %73, %cst_38 [1] : vector<8x128xf32> to vector<8xf32>
    %75 = vector.shape_cast %74 : vector<8xf32> to vector<8x1xf32>
    %cst_39 = arith.constant 7.812500e-03 : f32
    %76 = vector.broadcast %cst_39 : f32 to vector<8x1xf32>
    %77 = arith.mulf %75, %76 : vector<8x1xf32>
    %78 = arith.mulf %73, %73 : vector<8x128xf32>
    %cst_40 = arith.constant dense<0.000000e+00> : vector<8xf32>
    %79 = vector.multi_reduction <add>, %78, %cst_40 [1] : vector<8x128xf32> to vector<8xf32>
    %80 = vector.shape_cast %79 : vector<8xf32> to vector<8x1xf32>
    %cst_41 = arith.constant 7.812500e-03 : f32
    %81 = vector.broadcast %cst_41 : f32 to vector<8x1xf32>
    %82 = arith.mulf %80, %81 : vector<8x1xf32>
    %83 = arith.mulf %77, %77 : vector<8x1xf32>
    %84 = arith.subf %82, %83 : vector<8x1xf32>
    %cst_42 = arith.constant 0.000000e+00 : f32
    %85 = vector.broadcast %cst_42 : f32 to vector<8x1xf32>
    %86 = arith.maximumf %84, %85 : vector<8x1xf32>
    %87 = vector.broadcast %77 : vector<8x1xf32> to vector<8x128xf32>
    %88 = arith.subf %73, %87 : vector<8x128xf32>
    %cst_43 = arith.constant 9.99999997E-7 : f32
    %89 = vector.broadcast %cst_43 : f32 to vector<8x1xf32>
    %90 = arith.addf %86, %89 : vector<8x1xf32>
    %91 = math.rsqrt %90 : vector<8x1xf32>
    %92 = vector.broadcast %91 : vector<8x1xf32> to vector<8x128xf32>
    %93 = arith.mulf %88, %92 : vector<8x128xf32>
    %94 = arith.mulf %93, %15 : vector<8x128xf32>
    %95 = arith.addf %94, %18 : vector<8x128xf32>
    %96 = arith.negf %95 : vector<8x128xf32>
    %97 = math.exp %96 : vector<8x128xf32>
    %cst_44 = arith.constant 1.000000e+00 : f32
    %98 = vector.broadcast %cst_44 : f32 to vector<8x128xf32>
    %99 = arith.addf %98, %97 : vector<8x128xf32>
    %100 = arith.divf %98, %99 : vector<8x128xf32>
    %101 = vector.extract_strided_slice %100 {offsets = [0, 0], sizes = [8, 32], strides = [1, 1]} : vector<8x128xf32> to vector<8x32xf32>
    %102 = vector.extract_strided_slice %100 {offsets = [0, 32], sizes = [8, 32], strides = [1, 1]} : vector<8x128xf32> to vector<8x32xf32>
    %103 = vector.extract_strided_slice %100 {offsets = [0, 64], sizes = [8, 32], strides = [1, 1]} : vector<8x128xf32> to vector<8x32xf32>
    %104 = vector.extract_strided_slice %100 {offsets = [0, 96], sizes = [8, 32], strides = [1, 1]} : vector<8x128xf32> to vector<8x32xf32>
    %cst_45 = arith.constant 2.000000e+00 : f32
    %105 = vector.broadcast %cst_45 : f32 to vector<8x32xf32>
    %106 = arith.mulf %105, %104 : vector<8x32xf32>
    %cst_46 = arith.constant 1.000000e+00 : f32
    %107 = vector.broadcast %cst_46 : f32 to vector<8x32xf32>
    %108 = arith.subf %106, %107 : vector<8x32xf32>
    %109 = arith.mulf %102, %63 : vector<8x32xf32>
    %110 = arith.mulf %101, %108 : vector<8x32xf32>
    %111 = arith.addf %109, %110 : vector<8x32xf32>
    %112 = arith.mulf %103, %111 : vector<8x32xf32>
    %113 = arith.index_cast %c1_i32 : i32 to index
    %c0_47 = arith.constant 0 : index
    %c0_48 = arith.constant 0 : index
    %114 = vector.load %arg10[%113, %c0_47, %c0_48] : memref<8x8x32xf32, #tpu.memory_space<vmem>>, vector<1x8x32xf32>
    %115 = vector.shape_cast %114 : vector<1x8x32xf32> to vector<8x32xf32>
    %116 = vector.shape_cast %112 : vector<8x32xf32> to vector<1x8x32xf32>
    tpu.vector_store %arg10[%113, %c0_47, %c0_48], %116 {strides = array<i32>} : memref<8x8x32xf32, #tpu.memory_space<vmem>>, vector<1x8x32xf32>,
    %c2_i32 = arith.constant 2 : i32
    %117 = arith.index_cast %c2_i32 : i32 to index
    %c0_49 = arith.constant 0 : index
    %c0_50 = arith.constant 0 : index
    %118 = vector.load %arg13[%117, %c0_49, %c0_50] : memref<8x8x128xf32, #tpu.memory_space<vmem>>, vector<1x8x128xf32>
    %119 = vector.shape_cast %118 : vector<1x8x128xf32> to vector<8x128xf32>
    %cst_51 = arith.constant dense<0.000000e+00> : vector<8x128xf32>
    %120 = tpu.matmul %112, %12, %cst_51 {dimension_numbers = #tpu.dot_dimension_numbers<[1], [0], [0], [1], [0, 0, 1, 1], [], []>} : vector<8x32xf32>, vector<32x128xf32>, vector<8x128xf32> -> vector<8x128xf32>
    %121 = arith.addf %119, %120 : vector<8x128xf32>
    %cst_52 = arith.constant dense<0.000000e+00> : vector<8xf32>
    %122 = vector.multi_reduction <add>, %121, %cst_52 [1] : vector<8x128xf32> to vector<8xf32>
    %123 = vector.shape_cast %122 : vector<8xf32> to vector<8x1xf32>
    %cst_53 = arith.constant 7.812500e-03 : f32
    %124 = vector.broadcast %cst_53 : f32 to vector<8x1xf32>
    %125 = arith.mulf %123, %124 : vector<8x1xf32>
    %126 = arith.mulf %121, %121 : vector<8x128xf32>
    %cst_54 = arith.constant dense<0.000000e+00> : vector<8xf32>
    %127 = vector.multi_reduction <add>, %126, %cst_54 [1] : vector<8x128xf32> to vector<8xf32>
    %128 = vector.shape_cast %127 : vector<8xf32> to vector<8x1xf32>
    %cst_55 = arith.constant 7.812500e-03 : f32
    %129 = vector.broadcast %cst_55 : f32 to vector<8x1xf32>
    %130 = arith.mulf %128, %129 : vector<8x1xf32>
    %131 = arith.mulf %125, %125 : vector<8x1xf32>
    %132 = arith.subf %130, %131 : vector<8x1xf32>
    %cst_56 = arith.constant 0.000000e+00 : f32
    %133 = vector.broadcast %cst_56 : f32 to vector<8x1xf32>
    %134 = arith.maximumf %132, %133 : vector<8x1xf32>
    %135 = vector.broadcast %125 : vector<8x1xf32> to vector<8x128xf32>
    %136 = arith.subf %121, %135 : vector<8x128xf32>
    %cst_57 = arith.constant 9.99999997E-7 : f32
    %137 = vector.broadcast %cst_57 : f32 to vector<8x1xf32>
    %138 = arith.addf %134, %137 : vector<8x1xf32>
    %139 = math.rsqrt %138 : vector<8x1xf32>
    %140 = vector.broadcast %139 : vector<8x1xf32> to vector<8x128xf32>
    %141 = arith.mulf %136, %140 : vector<8x128xf32>
    %142 = arith.mulf %141, %15 : vector<8x128xf32>
    %143 = arith.addf %142, %18 : vector<8x128xf32>
    %144 = arith.negf %143 : vector<8x128xf32>
    %145 = math.exp %144 : vector<8x128xf32>
    %cst_58 = arith.constant 1.000000e+00 : f32
    %146 = vector.broadcast %cst_58 : f32 to vector<8x128xf32>
    %147 = arith.addf %146, %145 : vector<8x128xf32>
    %148 = arith.divf %146, %147 : vector<8x128xf32>
    %149 = vector.extract_strided_slice %148 {offsets = [0, 0], sizes = [8, 32], strides = [1, 1]} : vector<8x128xf32> to vector<8x32xf32>
    %150 = vector.extract_strided_slice %148 {offsets = [0, 32], sizes = [8, 32], strides = [1, 1]} : vector<8x128xf32> to vector<8x32xf32>
    %151 = vector.extract_strided_slice %148 {offsets = [0, 64], sizes = [8, 32], strides = [1, 1]} : vector<8x128xf32> to vector<8x32xf32>
    %152 = vector.extract_strided_slice %148 {offsets = [0, 96], sizes = [8, 32], strides = [1, 1]} : vector<8x128xf32> to vector<8x32xf32>
    %cst_59 = arith.constant 2.000000e+00 : f32
    %153 = vector.broadcast %cst_59 : f32 to vector<8x32xf32>
    %154 = arith.mulf %153, %152 : vector<8x32xf32>
    %cst_60 = arith.constant 1.000000e+00 : f32
    %155 = vector.broadcast %cst_60 : f32 to vector<8x32xf32>
    %156 = arith.subf %154, %155 : vector<8x32xf32>
    %157 = arith.mulf %150, %111 : vector<8x32xf32>
    %158 = arith.mulf %149, %156 : vector<8x32xf32>
    %159 = arith.addf %157, %158 : vector<8x32xf32>
    %160 = arith.mulf %151, %159 : vector<8x32xf32>
    %161 = arith.index_cast %c2_i32 : i32 to index
    %c0_61 = arith.constant 0 : index
    %c0_62 = arith.constant 0 : index
    %162 = vector.load %arg10[%161, %c0_61, %c0_62] : memref<8x8x32xf32, #tpu.memory_space<vmem>>, vector<1x8x32xf32>
    %163 = vector.shape_cast %162 : vector<1x8x32xf32> to vector<8x32xf32>
    %164 = vector.shape_cast %160 : vector<8x32xf32> to vector<1x8x32xf32>
    tpu.vector_store %arg10[%161, %c0_61, %c0_62], %164 {strides = array<i32>} : memref<8x8x32xf32, #tpu.memory_space<vmem>>, vector<1x8x32xf32>,
    %c3_i32 = arith.constant 3 : i32
    %165 = arith.index_cast %c3_i32 : i32 to index
    %c0_63 = arith.constant 0 : index
    %c0_64 = arith.constant 0 : index
    %166 = vector.load %arg13[%165, %c0_63, %c0_64] : memref<8x8x128xf32, #tpu.memory_space<vmem>>, vector<1x8x128xf32>
    %167 = vector.shape_cast %166 : vector<1x8x128xf32> to vector<8x128xf32>
    %cst_65 = arith.constant dense<0.000000e+00> : vector<8x128xf32>
    %168 = tpu.matmul %160, %12, %cst_65 {dimension_numbers = #tpu.dot_dimension_numbers<[1], [0], [0], [1], [0, 0, 1, 1], [], []>} : vector<8x32xf32>, vector<32x128xf32>, vector<8x128xf32> -> vector<8x128xf32>
    %169 = arith.addf %167, %168 : vector<8x128xf32>
    %cst_66 = arith.constant dense<0.000000e+00> : vector<8xf32>
    %170 = vector.multi_reduction <add>, %169, %cst_66 [1] : vector<8x128xf32> to vector<8xf32>
    %171 = vector.shape_cast %170 : vector<8xf32> to vector<8x1xf32>
    %cst_67 = arith.constant 7.812500e-03 : f32
    %172 = vector.broadcast %cst_67 : f32 to vector<8x1xf32>
    %173 = arith.mulf %171, %172 : vector<8x1xf32>
    %174 = arith.mulf %169, %169 : vector<8x128xf32>
    %cst_68 = arith.constant dense<0.000000e+00> : vector<8xf32>
    %175 = vector.multi_reduction <add>, %174, %cst_68 [1] : vector<8x128xf32> to vector<8xf32>
    %176 = vector.shape_cast %175 : vector<8xf32> to vector<8x1xf32>
    %cst_69 = arith.constant 7.812500e-03 : f32
    %177 = vector.broadcast %cst_69 : f32 to vector<8x1xf32>
    %178 = arith.mulf %176, %177 : vector<8x1xf32>
    %179 = arith.mulf %173, %173 : vector<8x1xf32>
    %180 = arith.subf %178, %179 : vector<8x1xf32>
    %cst_70 = arith.constant 0.000000e+00 : f32
    %181 = vector.broadcast %cst_70 : f32 to vector<8x1xf32>
    %182 = arith.maximumf %180, %181 : vector<8x1xf32>
    %183 = vector.broadcast %173 : vector<8x1xf32> to vector<8x128xf32>
    %184 = arith.subf %169, %183 : vector<8x128xf32>
    %cst_71 = arith.constant 9.99999997E-7 : f32
    %185 = vector.broadcast %cst_71 : f32 to vector<8x1xf32>
    %186 = arith.addf %182, %185 : vector<8x1xf32>
    %187 = math.rsqrt %186 : vector<8x1xf32>
    %188 = vector.broadcast %187 : vector<8x1xf32> to vector<8x128xf32>
    %189 = arith.mulf %184, %188 : vector<8x128xf32>
    %190 = arith.mulf %189, %15 : vector<8x128xf32>
    %191 = arith.addf %190, %18 : vector<8x128xf32>
    %192 = arith.negf %191 : vector<8x128xf32>
    %193 = math.exp %192 : vector<8x128xf32>
    %cst_72 = arith.constant 1.000000e+00 : f32
    %194 = vector.broadcast %cst_72 : f32 to vector<8x128xf32>
    %195 = arith.addf %194, %193 : vector<8x128xf32>
    %196 = arith.divf %194, %195 : vector<8x128xf32>
    %197 = vector.extract_strided_slice %196 {offsets = [0, 0], sizes = [8, 32], strides = [1, 1]} : vector<8x128xf32> to vector<8x32xf32>
    %198 = vector.extract_strided_slice %196 {offsets = [0, 32], sizes = [8, 32], strides = [1, 1]} : vector<8x128xf32> to vector<8x32xf32>
    %199 = vector.extract_strided_slice %196 {offsets = [0, 64], sizes = [8, 32], strides = [1, 1]} : vector<8x128xf32> to vector<8x32xf32>
    %200 = vector.extract_strided_slice %196 {offsets = [0, 96], sizes = [8, 32], strides = [1, 1]} : vector<8x128xf32> to vector<8x32xf32>
    %cst_73 = arith.constant 2.000000e+00 : f32
    %201 = vector.broadcast %cst_73 : f32 to vector<8x32xf32>
    %202 = arith.mulf %201, %200 : vector<8x32xf32>
    %cst_74 = arith.constant 1.000000e+00 : f32
    %203 = vector.broadcast %cst_74 : f32 to vector<8x32xf32>
    %204 = arith.subf %202, %203 : vector<8x32xf32>
    %205 = arith.mulf %198, %159 : vector<8x32xf32>
    %206 = arith.mulf %197, %204 : vector<8x32xf32>
    %207 = arith.addf %205, %206 : vector<8x32xf32>
    %208 = arith.mulf %199, %207 : vector<8x32xf32>
    %209 = arith.index_cast %c3_i32 : i32 to index
    %c0_75 = arith.constant 0 : index
    %c0_76 = arith.constant 0 : index
    %210 = vector.load %arg10[%209, %c0_75, %c0_76] : memref<8x8x32xf32, #tpu.memory_space<vmem>>, vector<1x8x32xf32>
    %211 = vector.shape_cast %210 : vector<1x8x32xf32> to vector<8x32xf32>
    %212 = vector.shape_cast %208 : vector<8x32xf32> to vector<1x8x32xf32>
    tpu.vector_store %arg10[%209, %c0_75, %c0_76], %212 {strides = array<i32>} : memref<8x8x32xf32, #tpu.memory_space<vmem>>, vector<1x8x32xf32>,
    %c4_i32 = arith.constant 4 : i32
    %213 = arith.index_cast %c4_i32 : i32 to index
    %c0_77 = arith.constant 0 : index
    %c0_78 = arith.constant 0 : index
    %214 = vector.load %arg13[%213, %c0_77, %c0_78] : memref<8x8x128xf32, #tpu.memory_space<vmem>>, vector<1x8x128xf32>
    %215 = vector.shape_cast %214 : vector<1x8x128xf32> to vector<8x128xf32>
    %cst_79 = arith.constant dense<0.000000e+00> : vector<8x128xf32>
    %216 = tpu.matmul %208, %12, %cst_79 {dimension_numbers = #tpu.dot_dimension_numbers<[1], [0], [0], [1], [0, 0, 1, 1], [], []>} : vector<8x32xf32>, vector<32x128xf32>, vector<8x128xf32> -> vector<8x128xf32>
    %217 = arith.addf %215, %216 : vector<8x128xf32>
    %cst_80 = arith.constant dense<0.000000e+00> : vector<8xf32>
    %218 = vector.multi_reduction <add>, %217, %cst_80 [1] : vector<8x128xf32> to vector<8xf32>
    %219 = vector.shape_cast %218 : vector<8xf32> to vector<8x1xf32>
    %cst_81 = arith.constant 7.812500e-03 : f32
    %220 = vector.broadcast %cst_81 : f32 to vector<8x1xf32>
    %221 = arith.mulf %219, %220 : vector<8x1xf32>
    %222 = arith.mulf %217, %217 : vector<8x128xf32>
    %cst_82 = arith.constant dense<0.000000e+00> : vector<8xf32>
    %223 = vector.multi_reduction <add>, %222, %cst_82 [1] : vector<8x128xf32> to vector<8xf32>
    %224 = vector.shape_cast %223 : vector<8xf32> to vector<8x1xf32>
    %cst_83 = arith.constant 7.812500e-03 : f32
    %225 = vector.broadcast %cst_83 : f32 to vector<8x1xf32>
    %226 = arith.mulf %224, %225 : vector<8x1xf32>
    %227 = arith.mulf %221, %221 : vector<8x1xf32>
    %228 = arith.subf %226, %227 : vector<8x1xf32>
    %cst_84 = arith.constant 0.000000e+00 : f32
    %229 = vector.broadcast %cst_84 : f32 to vector<8x1xf32>
    %230 = arith.maximumf %228, %229 : vector<8x1xf32>
    %231 = vector.broadcast %221 : vector<8x1xf32> to vector<8x128xf32>
    %232 = arith.subf %217, %231 : vector<8x128xf32>
    %cst_85 = arith.constant 9.99999997E-7 : f32
    %233 = vector.broadcast %cst_85 : f32 to vector<8x1xf32>
    %234 = arith.addf %230, %233 : vector<8x1xf32>
    %235 = math.rsqrt %234 : vector<8x1xf32>
    %236 = vector.broadcast %235 : vector<8x1xf32> to vector<8x128xf32>
    %237 = arith.mulf %232, %236 : vector<8x128xf32>
    %238 = arith.mulf %237, %15 : vector<8x128xf32>
    %239 = arith.addf %238, %18 : vector<8x128xf32>
    %240 = arith.negf %239 : vector<8x128xf32>
    %241 = math.exp %240 : vector<8x128xf32>
    %cst_86 = arith.constant 1.000000e+00 : f32
    %242 = vector.broadcast %cst_86 : f32 to vector<8x128xf32>
    %243 = arith.addf %242, %241 : vector<8x128xf32>
    %244 = arith.divf %242, %243 : vector<8x128xf32>
    %245 = vector.extract_strided_slice %244 {offsets = [0, 0], sizes = [8, 32], strides = [1, 1]} : vector<8x128xf32> to vector<8x32xf32>
    %246 = vector.extract_strided_slice %244 {offsets = [0, 32], sizes = [8, 32], strides = [1, 1]} : vector<8x128xf32> to vector<8x32xf32>
    %247 = vector.extract_strided_slice %244 {offsets = [0, 64], sizes = [8, 32], strides = [1, 1]} : vector<8x128xf32> to vector<8x32xf32>
    %248 = vector.extract_strided_slice %244 {offsets = [0, 96], sizes = [8, 32], strides = [1, 1]} : vector<8x128xf32> to vector<8x32xf32>
    %cst_87 = arith.constant 2.000000e+00 : f32
    %249 = vector.broadcast %cst_87 : f32 to vector<8x32xf32>
    %250 = arith.mulf %249, %248 : vector<8x32xf32>
    %cst_88 = arith.constant 1.000000e+00 : f32
    %251 = vector.broadcast %cst_88 : f32 to vector<8x32xf32>
    %252 = arith.subf %250, %251 : vector<8x32xf32>
    %253 = arith.mulf %246, %207 : vector<8x32xf32>
    %254 = arith.mulf %245, %252 : vector<8x32xf32>
    %255 = arith.addf %253, %254 : vector<8x32xf32>
    %256 = arith.mulf %247, %255 : vector<8x32xf32>
    %257 = arith.index_cast %c4_i32 : i32 to index
    %c0_89 = arith.constant 0 : index
    %c0_90 = arith.constant 0 : index
    %258 = vector.load %arg10[%257, %c0_89, %c0_90] : memref<8x8x32xf32, #tpu.memory_space<vmem>>, vector<1x8x32xf32>
    %259 = vector.shape_cast %258 : vector<1x8x32xf32> to vector<8x32xf32>
    %260 = vector.shape_cast %256 : vector<8x32xf32> to vector<1x8x32xf32>
    tpu.vector_store %arg10[%257, %c0_89, %c0_90], %260 {strides = array<i32>} : memref<8x8x32xf32, #tpu.memory_space<vmem>>, vector<1x8x32xf32>,
    %c5_i32 = arith.constant 5 : i32
    %261 = arith.index_cast %c5_i32 : i32 to index
    %c0_91 = arith.constant 0 : index
    %c0_92 = arith.constant 0 : index
    %262 = vector.load %arg13[%261, %c0_91, %c0_92] : memref<8x8x128xf32, #tpu.memory_space<vmem>>, vector<1x8x128xf32>
    %263 = vector.shape_cast %262 : vector<1x8x128xf32> to vector<8x128xf32>
    %cst_93 = arith.constant dense<0.000000e+00> : vector<8x128xf32>
    %264 = tpu.matmul %256, %12, %cst_93 {dimension_numbers = #tpu.dot_dimension_numbers<[1], [0], [0], [1], [0, 0, 1, 1], [], []>} : vector<8x32xf32>, vector<32x128xf32>, vector<8x128xf32> -> vector<8x128xf32>
    %265 = arith.addf %263, %264 : vector<8x128xf32>
    %cst_94 = arith.constant dense<0.000000e+00> : vector<8xf32>
    %266 = vector.multi_reduction <add>, %265, %cst_94 [1] : vector<8x128xf32> to vector<8xf32>
    %267 = vector.shape_cast %266 : vector<8xf32> to vector<8x1xf32>
    %cst_95 = arith.constant 7.812500e-03 : f32
    %268 = vector.broadcast %cst_95 : f32 to vector<8x1xf32>
    %269 = arith.mulf %267, %268 : vector<8x1xf32>
    %270 = arith.mulf %265, %265 : vector<8x128xf32>
    %cst_96 = arith.constant dense<0.000000e+00> : vector<8xf32>
    %271 = vector.multi_reduction <add>, %270, %cst_96 [1] : vector<8x128xf32> to vector<8xf32>
    %272 = vector.shape_cast %271 : vector<8xf32> to vector<8x1xf32>
    %cst_97 = arith.constant 7.812500e-03 : f32
    %273 = vector.broadcast %cst_97 : f32 to vector<8x1xf32>
    %274 = arith.mulf %272, %273 : vector<8x1xf32>
    %275 = arith.mulf %269, %269 : vector<8x1xf32>
    %276 = arith.subf %274, %275 : vector<8x1xf32>
    %cst_98 = arith.constant 0.000000e+00 : f32
    %277 = vector.broadcast %cst_98 : f32 to vector<8x1xf32>
    %278 = arith.maximumf %276, %277 : vector<8x1xf32>
    %279 = vector.broadcast %269 : vector<8x1xf32> to vector<8x128xf32>
    %280 = arith.subf %265, %279 : vector<8x128xf32>
    %cst_99 = arith.constant 9.99999997E-7 : f32
    %281 = vector.broadcast %cst_99 : f32 to vector<8x1xf32>
    %282 = arith.addf %278, %281 : vector<8x1xf32>
    %283 = math.rsqrt %282 : vector<8x1xf32>
    %284 = vector.broadcast %283 : vector<8x1xf32> to vector<8x128xf32>
    %285 = arith.mulf %280, %284 : vector<8x128xf32>
    %286 = arith.mulf %285, %15 : vector<8x128xf32>
    %287 = arith.addf %286, %18 : vector<8x128xf32>
    %288 = arith.negf %287 : vector<8x128xf32>
    %289 = math.exp %288 : vector<8x128xf32>
    %cst_100 = arith.constant 1.000000e+00 : f32
    %290 = vector.broadcast %cst_100 : f32 to vector<8x128xf32>
    %291 = arith.addf %290, %289 : vector<8x128xf32>
    %292 = arith.divf %290, %291 : vector<8x128xf32>
    %293 = vector.extract_strided_slice %292 {offsets = [0, 0], sizes = [8, 32], strides = [1, 1]} : vector<8x128xf32> to vector<8x32xf32>
    %294 = vector.extract_strided_slice %292 {offsets = [0, 32], sizes = [8, 32], strides = [1, 1]} : vector<8x128xf32> to vector<8x32xf32>
    %295 = vector.extract_strided_slice %292 {offsets = [0, 64], sizes = [8, 32], strides = [1, 1]} : vector<8x128xf32> to vector<8x32xf32>
    %296 = vector.extract_strided_slice %292 {offsets = [0, 96], sizes = [8, 32], strides = [1, 1]} : vector<8x128xf32> to vector<8x32xf32>
    %cst_101 = arith.constant 2.000000e+00 : f32
    %297 = vector.broadcast %cst_101 : f32 to vector<8x32xf32>
    %298 = arith.mulf %297, %296 : vector<8x32xf32>
    %cst_102 = arith.constant 1.000000e+00 : f32
    %299 = vector.broadcast %cst_102 : f32 to vector<8x32xf32>
    %300 = arith.subf %298, %299 : vector<8x32xf32>
    %301 = arith.mulf %294, %255 : vector<8x32xf32>
    %302 = arith.mulf %293, %300 : vector<8x32xf32>
    %303 = arith.addf %301, %302 : vector<8x32xf32>
    %304 = arith.mulf %295, %303 : vector<8x32xf32>
    %305 = arith.index_cast %c5_i32 : i32 to index
    %c0_103 = arith.constant 0 : index
    %c0_104 = arith.constant 0 : index
    %306 = vector.load %arg10[%305, %c0_103, %c0_104] : memref<8x8x32xf32, #tpu.memory_space<vmem>>, vector<1x8x32xf32>
    %307 = vector.shape_cast %306 : vector<1x8x32xf32> to vector<8x32xf32>
    %308 = vector.shape_cast %304 : vector<8x32xf32> to vector<1x8x32xf32>
    tpu.vector_store %arg10[%305, %c0_103, %c0_104], %308 {strides = array<i32>} : memref<8x8x32xf32, #tpu.memory_space<vmem>>, vector<1x8x32xf32>,
    %c6_i32 = arith.constant 6 : i32
    %309 = arith.index_cast %c6_i32 : i32 to index
    %c0_105 = arith.constant 0 : index
    %c0_106 = arith.constant 0 : index
    %310 = vector.load %arg13[%309, %c0_105, %c0_106] : memref<8x8x128xf32, #tpu.memory_space<vmem>>, vector<1x8x128xf32>
    %311 = vector.shape_cast %310 : vector<1x8x128xf32> to vector<8x128xf32>
    %cst_107 = arith.constant dense<0.000000e+00> : vector<8x128xf32>
    %312 = tpu.matmul %304, %12, %cst_107 {dimension_numbers = #tpu.dot_dimension_numbers<[1], [0], [0], [1], [0, 0, 1, 1], [], []>} : vector<8x32xf32>, vector<32x128xf32>, vector<8x128xf32> -> vector<8x128xf32>
    %313 = arith.addf %311, %312 : vector<8x128xf32>
    %cst_108 = arith.constant dense<0.000000e+00> : vector<8xf32>
    %314 = vector.multi_reduction <add>, %313, %cst_108 [1] : vector<8x128xf32> to vector<8xf32>
    %315 = vector.shape_cast %314 : vector<8xf32> to vector<8x1xf32>
    %cst_109 = arith.constant 7.812500e-03 : f32
    %316 = vector.broadcast %cst_109 : f32 to vector<8x1xf32>
    %317 = arith.mulf %315, %316 : vector<8x1xf32>
    %318 = arith.mulf %313, %313 : vector<8x128xf32>
    %cst_110 = arith.constant dense<0.000000e+00> : vector<8xf32>
    %319 = vector.multi_reduction <add>, %318, %cst_110 [1] : vector<8x128xf32> to vector<8xf32>
    %320 = vector.shape_cast %319 : vector<8xf32> to vector<8x1xf32>
    %cst_111 = arith.constant 7.812500e-03 : f32
    %321 = vector.broadcast %cst_111 : f32 to vector<8x1xf32>
    %322 = arith.mulf %320, %321 : vector<8x1xf32>
    %323 = arith.mulf %317, %317 : vector<8x1xf32>
    %324 = arith.subf %322, %323 : vector<8x1xf32>
    %cst_112 = arith.constant 0.000000e+00 : f32
    %325 = vector.broadcast %cst_112 : f32 to vector<8x1xf32>
    %326 = arith.maximumf %324, %325 : vector<8x1xf32>
    %327 = vector.broadcast %317 : vector<8x1xf32> to vector<8x128xf32>
    %328 = arith.subf %313, %327 : vector<8x128xf32>
    %cst_113 = arith.constant 9.99999997E-7 : f32
    %329 = vector.broadcast %cst_113 : f32 to vector<8x1xf32>
    %330 = arith.addf %326, %329 : vector<8x1xf32>
    %331 = math.rsqrt %330 : vector<8x1xf32>
    %332 = vector.broadcast %331 : vector<8x1xf32> to vector<8x128xf32>
    %333 = arith.mulf %328, %332 : vector<8x128xf32>
    %334 = arith.mulf %333, %15 : vector<8x128xf32>
    %335 = arith.addf %334, %18 : vector<8x128xf32>
    %336 = arith.negf %335 : vector<8x128xf32>
    %337 = math.exp %336 : vector<8x128xf32>
    %cst_114 = arith.constant 1.000000e+00 : f32
    %338 = vector.broadcast %cst_114 : f32 to vector<8x128xf32>
    %339 = arith.addf %338, %337 : vector<8x128xf32>
    %340 = arith.divf %338, %339 : vector<8x128xf32>
    %341 = vector.extract_strided_slice %340 {offsets = [0, 0], sizes = [8, 32], strides = [1, 1]} : vector<8x128xf32> to vector<8x32xf32>
    %342 = vector.extract_strided_slice %340 {offsets = [0, 32], sizes = [8, 32], strides = [1, 1]} : vector<8x128xf32> to vector<8x32xf32>
    %343 = vector.extract_strided_slice %340 {offsets = [0, 64], sizes = [8, 32], strides = [1, 1]} : vector<8x128xf32> to vector<8x32xf32>
    %344 = vector.extract_strided_slice %340 {offsets = [0, 96], sizes = [8, 32], strides = [1, 1]} : vector<8x128xf32> to vector<8x32xf32>
    %cst_115 = arith.constant 2.000000e+00 : f32
    %345 = vector.broadcast %cst_115 : f32 to vector<8x32xf32>
    %346 = arith.mulf %345, %344 : vector<8x32xf32>
    %cst_116 = arith.constant 1.000000e+00 : f32
    %347 = vector.broadcast %cst_116 : f32 to vector<8x32xf32>
    %348 = arith.subf %346, %347 : vector<8x32xf32>
    %349 = arith.mulf %342, %303 : vector<8x32xf32>
    %350 = arith.mulf %341, %348 : vector<8x32xf32>
    %351 = arith.addf %349, %350 : vector<8x32xf32>
    %352 = arith.mulf %343, %351 : vector<8x32xf32>
    %353 = arith.index_cast %c6_i32 : i32 to index
    %c0_117 = arith.constant 0 : index
    %c0_118 = arith.constant 0 : index
    %354 = vector.load %arg10[%353, %c0_117, %c0_118] : memref<8x8x32xf32, #tpu.memory_space<vmem>>, vector<1x8x32xf32>
    %355 = vector.shape_cast %354 : vector<1x8x32xf32> to vector<8x32xf32>
    %356 = vector.shape_cast %352 : vector<8x32xf32> to vector<1x8x32xf32>
    tpu.vector_store %arg10[%353, %c0_117, %c0_118], %356 {strides = array<i32>} : memref<8x8x32xf32, #tpu.memory_space<vmem>>, vector<1x8x32xf32>,
    %c7_i32 = arith.constant 7 : i32
    %357 = arith.index_cast %c7_i32 : i32 to index
    %c0_119 = arith.constant 0 : index
    %c0_120 = arith.constant 0 : index
    %358 = vector.load %arg13[%357, %c0_119, %c0_120] : memref<8x8x128xf32, #tpu.memory_space<vmem>>, vector<1x8x128xf32>
    %359 = vector.shape_cast %358 : vector<1x8x128xf32> to vector<8x128xf32>
    %cst_121 = arith.constant dense<0.000000e+00> : vector<8x128xf32>
    %360 = tpu.matmul %352, %12, %cst_121 {dimension_numbers = #tpu.dot_dimension_numbers<[1], [0], [0], [1], [0, 0, 1, 1], [], []>} : vector<8x32xf32>, vector<32x128xf32>, vector<8x128xf32> -> vector<8x128xf32>
    %361 = arith.addf %359, %360 : vector<8x128xf32>
    %cst_122 = arith.constant dense<0.000000e+00> : vector<8xf32>
    %362 = vector.multi_reduction <add>, %361, %cst_122 [1] : vector<8x128xf32> to vector<8xf32>
    %363 = vector.shape_cast %362 : vector<8xf32> to vector<8x1xf32>
    %cst_123 = arith.constant 7.812500e-03 : f32
    %364 = vector.broadcast %cst_123 : f32 to vector<8x1xf32>
    %365 = arith.mulf %363, %364 : vector<8x1xf32>
    %366 = arith.mulf %361, %361 : vector<8x128xf32>
    %cst_124 = arith.constant dense<0.000000e+00> : vector<8xf32>
    %367 = vector.multi_reduction <add>, %366, %cst_124 [1] : vector<8x128xf32> to vector<8xf32>
    %368 = vector.shape_cast %367 : vector<8xf32> to vector<8x1xf32>
    %cst_125 = arith.constant 7.812500e-03 : f32
    %369 = vector.broadcast %cst_125 : f32 to vector<8x1xf32>
    %370 = arith.mulf %368, %369 : vector<8x1xf32>
    %371 = arith.mulf %365, %365 : vector<8x1xf32>
    %372 = arith.subf %370, %371 : vector<8x1xf32>
    %cst_126 = arith.constant 0.000000e+00 : f32
    %373 = vector.broadcast %cst_126 : f32 to vector<8x1xf32>
    %374 = arith.maximumf %372, %373 : vector<8x1xf32>
    %375 = vector.broadcast %365 : vector<8x1xf32> to vector<8x128xf32>
    %376 = arith.subf %361, %375 : vector<8x128xf32>
    %cst_127 = arith.constant 9.99999997E-7 : f32
    %377 = vector.broadcast %cst_127 : f32 to vector<8x1xf32>
    %378 = arith.addf %374, %377 : vector<8x1xf32>
    %379 = math.rsqrt %378 : vector<8x1xf32>
    %380 = vector.broadcast %379 : vector<8x1xf32> to vector<8x128xf32>
    %381 = arith.mulf %376, %380 : vector<8x128xf32>
    %382 = arith.mulf %381, %15 : vector<8x128xf32>
    %383 = arith.addf %382, %18 : vector<8x128xf32>
    %384 = arith.negf %383 : vector<8x128xf32>
    %385 = math.exp %384 : vector<8x128xf32>
    %cst_128 = arith.constant 1.000000e+00 : f32
    %386 = vector.broadcast %cst_128 : f32 to vector<8x128xf32>
    %387 = arith.addf %386, %385 : vector<8x128xf32>
    %388 = arith.divf %386, %387 : vector<8x128xf32>
    %389 = vector.extract_strided_slice %388 {offsets = [0, 0], sizes = [8, 32], strides = [1, 1]} : vector<8x128xf32> to vector<8x32xf32>
    %390 = vector.extract_strided_slice %388 {offsets = [0, 32], sizes = [8, 32], strides = [1, 1]} : vector<8x128xf32> to vector<8x32xf32>
    %391 = vector.extract_strided_slice %388 {offsets = [0, 64], sizes = [8, 32], strides = [1, 1]} : vector<8x128xf32> to vector<8x32xf32>
    %392 = vector.extract_strided_slice %388 {offsets = [0, 96], sizes = [8, 32], strides = [1, 1]} : vector<8x128xf32> to vector<8x32xf32>
    %cst_129 = arith.constant 2.000000e+00 : f32
    %393 = vector.broadcast %cst_129 : f32 to vector<8x32xf32>
    %394 = arith.mulf %393, %392 : vector<8x32xf32>
    %cst_130 = arith.constant 1.000000e+00 : f32
    %395 = vector.broadcast %cst_130 : f32 to vector<8x32xf32>
    %396 = arith.subf %394, %395 : vector<8x32xf32>
    %397 = arith.mulf %390, %351 : vector<8x32xf32>
    %398 = arith.mulf %389, %396 : vector<8x32xf32>
    %399 = arith.addf %397, %398 : vector<8x32xf32>
    %400 = arith.mulf %391, %399 : vector<8x32xf32>
    %401 = arith.index_cast %c7_i32 : i32 to index
    %c0_131 = arith.constant 0 : index
    %c0_132 = arith.constant 0 : index
    %402 = vector.load %arg10[%401, %c0_131, %c0_132] : memref<8x8x32xf32, #tpu.memory_space<vmem>>, vector<1x8x32xf32>
    %403 = vector.shape_cast %402 : vector<1x8x32xf32> to vector<8x32xf32>
    %404 = vector.shape_cast %400 : vector<8x32xf32> to vector<1x8x32xf32>
    tpu.vector_store %arg10[%401, %c0_131, %c0_132], %404 {strides = array<i32>} : memref<8x8x32xf32, #tpu.memory_space<vmem>>, vector<1x8x32xf32>,
    %c8_i32 = arith.constant 8 : i32
    %c0_133 = arith.constant 0 : index
    %c0_134 = arith.constant 0 : index
    %405 = vector.load %arg11[%c0_133, %c0_134] : memref<8x32xf32, #tpu.memory_space<vmem>>, vector<8x32xf32>
    tpu.vector_store %arg11[%c0_133, %c0_134], %400 {strides = array<i32>} : memref<8x32xf32, #tpu.memory_space<vmem>>, vector<8x32xf32>,
    %c0_135 = arith.constant 0 : index
    %c0_136 = arith.constant 0 : index
    %406 = vector.load %arg12[%c0_135, %c0_136] : memref<8x32xf32, #tpu.memory_space<vmem>>, vector<8x32xf32>
    tpu.vector_store %arg12[%c0_135, %c0_136], %399 {strides = array<i32>} : memref<8x32xf32, #tpu.memory_space<vmem>>, vector<8x32xf32>,
    return
  }
  func.func @transform_0(%arg0: i32, %arg1: i32) -> (i32, i32, i32) {
    %c0_i32 = arith.constant 0 : i32
    %c0_i32_0 = arith.constant 0 : i32
    return %arg1, %arg0, %c0_i32 : i32, i32, i32
  }
  func.func @transform_1(%arg0: i32, %arg1: i32) -> (i32, i32) {
    %c0_i32 = arith.constant 0 : i32
    %c0_i32_0 = arith.constant 0 : i32
    %c0_i32_1 = arith.constant 0 : i32
    return %c0_i32, %c0_i32_0 : i32, i32
  }
  func.func @transform_2(%arg0: i32, %arg1: i32) -> (i32, i32) {
    %c0_i32 = arith.constant 0 : i32
    %c0_i32_0 = arith.constant 0 : i32
    %c0_i32_1 = arith.constant 0 : i32
    return %c0_i32, %c0_i32_0 : i32, i32
  }
  func.func @transform_3(%arg0: i32, %arg1: i32) -> (i32, i32) {
    %c0_i32 = arith.constant 0 : i32
    %c0_i32_0 = arith.constant 0 : i32
    %c0_i32_1 = arith.constant 0 : i32
    return %c0_i32, %c0_i32_0 : i32, i32
  }
  func.func @transform_4(%arg0: i32, %arg1: i32) -> (i32, i32) {
    %c0_i32 = arith.constant 0 : i32
    %c0_i32_0 = arith.constant 0 : i32
    %c0_i32_1 = arith.constant 0 : i32
    return %c0_i32, %c0_i32_0 : i32, i32
  }
  func.func @transform_5(%arg0: i32, %arg1: i32) -> (i32, i32) {
    %c0_i32 = arith.constant 0 : i32
    %c0_i32_0 = arith.constant 0 : i32
    %c0_i32_1 = arith.constant 0 : i32
    return %c0_i32, %c0_i32_0 : i32, i32
  }
  func.func @transform_6(%arg0: i32, %arg1: i32) -> (i32, i32) {
    %c0_i32 = arith.constant 0 : i32
    %c0_i32_0 = arith.constant 0 : i32
    %c0_i32_1 = arith.constant 0 : i32
    return %c0_i32, %c0_i32_0 : i32, i32
  }
  func.func @transform_7(%arg0: i32, %arg1: i32) -> (i32, i32) {
    %c0_i32 = arith.constant 0 : i32
    %c0_i32_0 = arith.constant 0 : i32
    %c0_i32_1 = arith.constant 0 : i32
    return %c0_i32, %c0_i32_0 : i32, i32
  }
  func.func @transform_8(%arg0: i32, %arg1: i32) -> (i32, i32, i32) {
    %c0_i32 = arith.constant 0 : i32
    %c0_i32_0 = arith.constant 0 : i32
    return %arg1, %arg0, %c0_i32 : i32, i32, i32
  }
}

module attributes {stable_mosaic.version = 11 : i64} {
  func.func @_lstm4rnmt_kernel(%arg0: i32, %arg1: i32, %arg2: memref<8x8x16xf32, #tpu.memory_space<vmem>>, %arg3: memref<16x128xf32, #tpu.memory_space<vmem>>, %arg4: memref<32x128xf32, #tpu.memory_space<vmem>>, %arg5: memref<1x128xf32, #tpu.memory_space<vmem>>, %arg6: memref<1x128xf32, #tpu.memory_space<vmem>>, %arg7: memref<1x128xf32, #tpu.memory_space<vmem>>, %arg8: memref<1x32xf32, #tpu.memory_space<vmem>>, %arg9: memref<1x32xf32, #tpu.memory_space<vmem>>, %arg10: memref<8x8x32xf32, #tpu.memory_space<vmem>>, %arg11: memref<8x32xf32, #tpu.memory_space<vmem>>, %arg12: memref<8x32xf32, #tpu.memory_space<vmem>>, %arg13: memref<8x8x128xf32, #tpu.memory_space<vmem>>) attributes {dimension_semantics = [#tpu.dimension_semantics<parallel>, #tpu.dimension_semantics<arbitrary>], iteration_bounds = array<i64: 1, 2>, scalar_prefetch = 0 : i64, scratch_operands = 3 : i64, tpu.core_type = #tpu.core_type<tc>, window_params = [{transform_indices = @transform_0, window_bounds = array<i64: 8, 8, 16>}, {pipeline_mode = #tpu.pipeline_mode<synchronous>, transform_indices = @transform_1, window_bounds = array<i64: 16, 128>}, {pipeline_mode = #tpu.pipeline_mode<synchronous>, transform_indices = @transform_2, window_bounds = array<i64: 32, 128>}, {pipeline_mode = #tpu.pipeline_mode<synchronous>, transform_indices = @transform_3, window_bounds = array<i64: 1, 128>}, {pipeline_mode = #tpu.pipeline_mode<synchronous>, transform_indices = @transform_4, window_bounds = array<i64: 1, 128>}, {pipeline_mode = #tpu.pipeline_mode<synchronous>, transform_indices = @transform_5, window_bounds = array<i64: 1, 128>}, {pipeline_mode = #tpu.pipeline_mode<synchronous>, transform_indices = @transform_6, window_bounds = array<i64: 1, 32>}, {pipeline_mode = #tpu.pipeline_mode<synchronous>, transform_indices = @transform_7, window_bounds = array<i64: 1, 32>}, {transform_indices = @transform_8, window_bounds = array<i64: 8, 8, 32>}]} {
    %c0_i32 = arith.constant 0 : i32
    %0 = arith.cmpi eq, %arg1, %c0_i32 : i32
    %1 = arith.extui %0 : i1 to i32
    %c0_i32_0 = arith.constant 0 : i32
    %2 = arith.cmpi ne, %1, %c0_i32_0 : i32
    scf.if %2 {
      %c0_137 = arith.constant 0 : index
      %c0_138 = arith.constant 0 : index
      %407 = vector.load %arg8[%c0_137, %c0_138] : memref<1x32xf32, #tpu.memory_space<vmem>>, vector<1x32xf32>
      %408 = vector.shape_cast %407 : vector<1x32xf32> to vector<1x32xf32>
      %409 = vector.broadcast %408 : vector<1x32xf32> to vector<8x32xf32>
      %c0_139 = arith.constant 0 : index
      %c0_140 = arith.constant 0 : index
      %410 = vector.load %arg11[%c0_139, %c0_140] : memref<8x32xf32, #tpu.memory_space<vmem>>, vector<8x32xf32>
      tpu.vector_store %arg11[%c0_139, %c0_140], %409 {strides = array<i32>} : memref<8x32xf32, #tpu.memory_space<vmem>>, vector<8x32xf32>,
      %c0_141 = arith.constant 0 : index
      %c0_142 = arith.constant 0 : index
      %411 = vector.load %arg9[%c0_141, %c0_142] : memref<1x32xf32, #tpu.memory_space<vmem>>, vector<1x32xf32>
      %412 = vector.shape_cast %411 : vector<1x32xf32> to vector<1x32xf32>
      %413 = vector.broadcast %412 : vector<1x32xf32> to vector<8x32xf32>
      %c0_143 = arith.constant 0 : index
      %c0_144 = arith.constant 0 : index
      %414 = vector.load %arg12[%c0_143, %c0_144] : memref<8x32xf32, #tpu.memory_space<vmem>>, vector<8x32xf32>
      tpu.vector_store %arg12[%c0_143, %c0_144], %413 {strides = array<i32>} : memref<8x32xf32, #tpu.memory_space<vmem>>, vector<8x32xf32>,
    } else {
    }
    %c0 = arith.constant 0 : index
    %c0_1 = arith.constant 0 : index
    %c0_2 = arith.constant 0 : index
    %3 = vector.load %arg2[%c0, %c0_1, %c0_2] : memref<8x8x16xf32, #tpu.memory_space<vmem>>, vector<8x8x16xf32>
    %4 = vector.shape_cast %3 : vector<8x8x16xf32> to vector<64x16xf32>
    %c0_3 = arith.constant 0 : index
    %c0_4 = arith.constant 0 : index
    %5 = vector.load %arg3[%c0_3, %c0_4] : memref<16x128xf32, #tpu.memory_space<vmem>>, vector<16x128xf32>
    %cst = arith.constant dense<0.000000e+00> : vector<64x128xf32>
    %6 = tpu.matmul %4, %5, %cst {dimension_numbers = #tpu.dot_dimension_numbers<[1], [0], [0], [1], [0, 0, 1, 1], [], []>} : vector<64x16xf32>, vector<16x128xf32>, vector<64x128xf32> -> vector<64x128xf32>
    %c0_5 = arith.constant 0 : index
    %c0_6 = arith.constant 0 : index
    %7 = vector.load %arg5[%c0_5, %c0_6] : memref<1x128xf32, #tpu.memory_space<vmem>>, vector<1x128xf32>
    %8 = vector.broadcast %7 : vector<1x128xf32> to vector<64x128xf32>
    %9 = arith.addf %6, %8 : vector<64x128xf32>
    %10 = vector.shape_cast %9 : vector<64x128xf32> to vector<8x8x128xf32>
    %c0_7 = arith.constant 0 : index
    %c0_8 = arith.constant 0 : index
    %c0_9 = arith.constant 0 : index
    %11 = vector.load %arg13[%c0_7, %c0_8, %c0_9] : memref<8x8x128xf32, #tpu.memory_space<vmem>>, vector<8x8x128xf32>
    tpu.vector_store %arg13[%c0_7, %c0_8, %c0_9], %10 {strides = array<i32>} : memref<8x8x128xf32, #tpu.memory_space<vmem>>, vector<8x8x128xf32>,
    %c0_10 = arith.constant 0 : index
    %c0_11 = arith.constant 0 : index
    %12 = vector.load %arg4[%c0_10, %c0_11] : memref<32x128xf32, #tpu.memory_space<vmem>>, vector<32x128xf32>
    %c0_12 = arith.constant 0 : index
    %c0_13 = arith.constant 0 : index
    %13 = vector.load %arg6[%c0_12, %c0_13] : memref<1x128xf32, #tpu.memory_space<vmem>>, vector<1x128xf32>
    %14 = vector.shape_cast %13 : vector<1x128xf32> to vector<1x128xf32>
    %15 = vector.broadcast %14 : vector<1x128xf32> to vector<8x128xf32>
    %c0_14 = arith.constant 0 : index
    %c0_15 = arith.constant 0 : index
    %16 = vector.load %arg7[%c0_14, %c0_15] : memref<1x128xf32, #tpu.memory_space<vmem>>, vector<1x128xf32>
    %17 = vector.shape_cast %16 : vector<1x128xf32> to vector<1x128xf32>
    %18 = vector.broadcast %17 : vector<1x128xf32> to vector<8x128xf32>
    %c0_16 = arith.constant 0 : index
    %c0_17 = arith.constant 0 : index
    %19 = vector.load %arg11[%c0_16, %c0_17] : memref<8x32xf32, #tpu.memory_space<vmem>>, vector<8x32xf32>
    %c0_18 = arith.constant 0 : index
    %c0_19 = arith.constant 0 : index
    %20 = vector.load %arg12[%c0_18, %c0_19] : memref<8x32xf32, #tpu.memory_space<vmem>>, vector<8x32xf32>
    %c0_i32_20 = arith.constant 0 : i32
    %21 = arith.index_cast %c0_i32_20 : i32 to index
    %c0_21 = arith.constant 0 : index
    %c0_22 = arith.constant 0 : index
    %22 = vector.load %arg13[%21, %c0_21, %c0_22] : memref<8x8x128xf32, #tpu.memory_space<vmem>>, vector<1x8x128xf32>
    %23 = vector.shape_cast %22 : vector<1x8x128xf32> to vector<8x128xf32>
    %cst_23 = arith.constant dense<0.000000e+00> : vector<8x128xf32>
    %24 = tpu.matmul %19, %12, %cst_23 {dimension_numbers = #tpu.dot_dimension_numbers<[1], [0], [0], [1], [0, 0, 1, 1], [], []>} : vector<8x32xf32>, vector<32x128xf32>, vector<8x128xf32> -> vector<8x128xf32>
    %25 = arith.addf %23, %24 : vector<8x128xf32>
    %cst_24 = arith.constant dense<0.000000e+00> : vector<8xf32>
    %26 = vector.multi_reduction <add>, %25, %cst_24 [1] : vector<8x128xf32> to vector<8xf32>
    %27 = vector.shape_cast %26 : vector<8xf32> to vector<8x1xf32>
    %cst_25 = arith.constant 7.812500e-03 : f32
    %28 = vector.broadcast %cst_25 : f32 to vector<8x1xf32>
    %29 = arith.mulf %27, %28 : vector<8x1xf32>
    %30 = arith.mulf %25, %25 : vector<8x128xf32>
    %cst_26 = arith.constant dense<0.000000e+00> : vector<8xf32>
    %31 = vector.multi_reduction <add>, %30, %cst_26 [1] : vector<8x128xf32> to vector<8xf32>
    %32 = vector.shape_cast %31 : vector<8xf32> to vector<8x1xf32>
    %cst_27 = arith.constant 7.812500e-03 : f32
    %33 = vector.broadcast %cst_27 : f32 to vector<8x1xf32>
    %34 = arith.mulf %32, %33 : vector<8x1xf32>
    %35 = arith.mulf %29, %29 : vector<8x1xf32>
    %36 = arith.subf %34, %35 : vector<8x1xf32>
    %cst_28 = arith.constant 0.000000e+00 : f32
    %37 = vector.broadcast %cst_28 : f32 to vector<8x1xf32>
    %38 = arith.maximumf %36, %37 : vector<8x1xf32>
    %39 = vector.broadcast %29 : vector<8x1xf32> to vector<8x128xf32>
    %40 = arith.subf %25, %39 : vector<8x128xf32>
    %cst_29 = arith.constant 9.99999997E-7 : f32
    %41 = vector.broadcast %cst_29 : f32 to vector<8x1xf32>
    %42 = arith.addf %38, %41 : vector<8x1xf32>
    %43 = math.rsqrt %42 : vector<8x1xf32>
    %44 = vector.broadcast %43 : vector<8x1xf32> to vector<8x128xf32>
    %45 = arith.mulf %40, %44 : vector<8x128xf32>
    %46 = arith.mulf %45, %15 : vector<8x128xf32>
    %47 = arith.addf %46, %18 : vector<8x128xf32>
    %48 = arith.negf %47 : vector<8x128xf32>
    %49 = math.exp %48 : vector<8x128xf32>
    %cst_30 = arith.constant 1.000000e+00 : f32
    %50 = vector.broadcast %cst_30 : f32 to vector<8x128xf32>
    %51 = arith.addf %50, %49 : vector<8x128xf32>
    %52 = arith.divf %50, %51 : vector<8x128xf32>
    %53 = vector.extract_strided_slice %52 {offsets = [0, 0], sizes = [8, 32], strides = [1, 1]} : vector<8x128xf32> to vector<8x32xf32>
    %54 = vector.extract_strided_slice %52 {offsets = [0, 32], sizes = [8, 32], strides = [1, 1]} : vector<8x128xf32> to vector<8x32xf32>
    %55 = vector.extract_strided_slice %52 {offsets = [0, 64], sizes = [8, 32], strides = [1, 1]} : vector<8x128xf32> to vector<8x32xf32>
    %56 = vector.extract_strided_slice %52 {offsets = [0, 96], sizes = [8, 32], strides = [1, 1]} : vector<8x128xf32> to vector<8x32xf32>
    %cst_31 = arith.constant 2.000000e+00 : f32
    %57 = vector.broadcast %cst_31 : f32 to vector<8x32xf32>
    %58 = arith.mulf %57, %56 : vector<8x32xf32>
    %cst_32 = arith.constant 1.000000e+00 : f32
    %59 = vector.broadcast %cst_32 : f32 to vector<8x32xf32>
    %60 = arith.subf %58, %59 : vector<8x32xf32>
    %61 = arith.mulf %54, %20 : vector<8x32xf32>
    %62 = arith.mulf %53, %60 : vector<8x32xf32>
    %63 = arith.addf %61, %62 : vector<8x32xf32>
    %64 = arith.mulf %55, %63 : vector<8x32xf32>
    %65 = arith.index_cast %c0_i32_20 : i32 to index
    %c0_33 = arith.constant 0 : index
    %c0_34 = arith.constant 0 : index
    %66 = vector.load %arg10[%65, %c0_33, %c0_34] : memref<8x8x32xf32, #tpu.memory_space<vmem>>, vector<1x8x32xf32>
    %67 = vector.shape_cast %66 : vector<1x8x32xf32> to vector<8x32xf32>
    %68 = vector.shape_cast %64 : vector<8x32xf32> to vector<1x8x32xf32>
    tpu.vector_store %arg10[%65, %c0_33, %c0_34], %68 {strides = array<i32>} : memref<8x8x32xf32, #tpu.memory_space<vmem>>, vector<1x8x32xf32>,
    %c1_i32 = arith.constant 1 : i32
    %69 = arith.index_cast %c1_i32 : i32 to index
    %c0_35 = arith.constant 0 : index
    %c0_36 = arith.constant 0 : index
    %70 = vector.load %arg13[%69, %c0_35, %c0_36] : memref<8x8x128xf32, #tpu.memory_space<vmem>>, vector<1x8x128xf32>
    %71 = vector.shape_cast %70 : vector<1x8x128xf32> to vector<8x128xf32>
    %cst_37 = arith.constant dense<0.000000e+00> : vector<8x128xf32>
    %72 = tpu.matmul %64, %12, %cst_37 {dimension_numbers = #tpu.dot_dimension_numbers<[1], [0], [0], [1], [0, 0, 1, 1], [], []>} : vector<8x32xf32>, vector<32x128xf32>, vector<8x128xf32> -> vector<8x128xf32>
    %73 = arith.addf %71, %72 : vector<8x128xf32>
    %cst_38 = arith.constant dense<0.000000e+00> : vector<8xf32>
    %74 = vector.multi_reduction <add>, %73, %cst_38 [1] : vector<8x128xf32> to vector<8xf32>
    %75 = vector.shape_cast %74 : vector<8xf32> to vector<8x1xf32>
    %cst_39 = arith.constant 7.812500e-03 : f32
    %76 = vector.broadcast %cst_39 : f32 to vector<8x1xf32>
    %77 = arith.mulf %75, %76 : vector<8x1xf32>
    %78 = arith.mulf %73, %73 : vector<8x128xf32>
    %cst_40 = arith.constant dense<0.000000e+00> : vector<8xf32>
    %79 = vector.multi_reduction <add>, %78, %cst_40 [1] : vector<8x128xf32> to vector<8xf32>
    %80 = vector.shape_cast %79 : vector<8xf32> to vector<8x1xf32>
    %cst_41 = arith.constant 7.812500e-03 : f32
    %81 = vector.broadcast %cst_41 : f32 to vector<8x1xf32>
    %82 = arith.mulf %80, %81 : vector<8x1xf32>
    %83 = arith.mulf %77, %77 : vector<8x1xf32>
    %84 = arith.subf %82, %83 : vector<8x1xf32>
    %cst_42 = arith.constant 0.000000e+00 : f32
    %85 = vector.broadcast %cst_42 : f32 to vector<8x1xf32>
    %86 = arith.maximumf %84, %85 : vector<8x1xf32>
    %87 = vector.broadcast %77 : vector<8x1xf32> to vector<8x128xf32>
    %88 = arith.subf %73, %87 : vector<8x128xf32>
    %cst_43 = arith.constant 9.99999997E-7 : f32
    %89 = vector.broadcast %cst_43 : f32 to vector<8x1xf32>
    %90 = arith.addf %86, %89 : vector<8x1xf32>
    %91 = math.rsqrt %90 : vector<8x1xf32>
    %92 = vector.broadcast %91 : vector<8x1xf32> to vector<8x128xf32>
    %93 = arith.mulf %88, %92 : vector<8x128xf32>
    %94 = arith.mulf %93, %15 : vector<8x128xf32>
    %95 = arith.addf %94, %18 : vector<8x128xf32>
    %96 = arith.negf %95 : vector<8x128xf32>
    %97 = math.exp %96 : vector<8x128xf32>
    %cst_44 = arith.constant 1.000000e+00 : f32
    %98 = vector.broadcast %cst_44 : f32 to vector<8x128xf32>
    %99 = arith.addf %98, %97 : vector<8x128xf32>
    %100 = arith.divf %98, %99 : vector<8x128xf32>
    %101 = vector.extract_strided_slice %100 {offsets = [0, 0], sizes = [8, 32], strides = [1, 1]} : vector<8x128xf32> to vector<8x32xf32>
    %102 = vector.extract_strided_slice %100 {offsets = [0, 32], sizes = [8, 32], strides = [1, 1]} : vector<8x128xf32> to vector<8x32xf32>
    %103 = vector.extract_strided_slice %100 {offsets = [0, 64], sizes = [8, 32], strides = [1, 1]} : vector<8x128xf32> to vector<8x32xf32>
    %104 = vector.extract_strided_slice %100 {offsets = [0, 96], sizes = [8, 32], strides = [1, 1]} : vector<8x128xf32> to vector<8x32xf32>
    %cst_45 = arith.constant 2.000000e+00 : f32
    %105 = vector.broadcast %cst_45 : f32 to vector<8x32xf32>
    %106 = arith.mulf %105, %104 : vector<8x32xf32>
    %cst_46 = arith.constant 1.000000e+00 : f32
    %107 = vector.broadcast %cst_46 : f32 to vector<8x32xf32>
    %108 = arith.subf %106, %107 : vector<8x32xf32>
    %109 = arith.mulf %102, %63 : vector<8x32xf32>
    %110 = arith.mulf %101, %108 : vector<8x32xf32>
    %111 = arith.addf %109, %110 : vector<8x32xf32>
    %112 = arith.mulf %103, %111 : vector<8x32xf32>
    %113 = arith.index_cast %c1_i32 : i32 to index
    %c0_47 = arith.constant 0 : index
    %c0_48 = arith.constant 0 : index
    %114 = vector.load %arg10[%113, %c0_47, %c0_48] : memref<8x8x32xf32, #tpu.memory_space<vmem>>, vector<1x8x32xf32>
    %115 = vector.shape_cast %114 : vector<1x8x32xf32> to vector<8x32xf32>
    %116 = vector.shape_cast %112 : vector<8x32xf32> to vector<1x8x32xf32>
    tpu.vector_store %arg10[%113, %c0_47, %c0_48], %116 {strides = array<i32>} : memref<8x8x32xf32, #tpu.memory_space<vmem>>, vector<1x8x32xf32>,
    %c2_i32 = arith.constant 2 : i32
    %117 = arith.index_cast %c2_i32 : i32 to index
    %c0_49 = arith.constant 0 : index
    %c0_50 = arith.constant 0 : index
    %118 = vector.load %arg13[%117, %c0_49, %c0_50] : memref<8x8x128xf32, #tpu.memory_space<vmem>>, vector<1x8x128xf32>
    %119 = vector.shape_cast %118 : vector<1x8x128xf32> to vector<8x128xf32>
    %cst_51 = arith.constant dense<0.000000e+00> : vector<8x128xf32>
    %120 = tpu.matmul %112, %12, %cst_51 {dimension_numbers = #tpu.dot_dimension_numbers<[1], [0], [0], [1], [0, 0, 1, 1], [], []>} : vector<8x32xf32>, vector<32x128xf32>, vector<8x128xf32> -> vector<8x128xf32>
    %121 = arith.addf %119, %120 : vector<8x128xf32>
    %cst_52 = arith.constant dense<0.000000e+00> : vector<8xf32>
    %122 = vector.multi_reduction <add>, %121, %cst_52 [1] : vector<8x128xf32> to vector<8xf32>
    %123 = vector.shape_cast %122 : vector<8xf32> to vector<8x1xf32>
    %cst_53 = arith.constant 7.812500e-03 : f32
    %124 = vector.broadcast %cst_53 : f32 to vector<8x1xf32>
    %125 = arith.mulf %123, %124 : vector<8x1xf32>
    %126 = arith.mulf %121, %121 : vector<8x128xf32>
    %cst_54 = arith.constant dense<0.000000e+00> : vector<8xf32>
    %127 = vector.multi_reduction <add>, %126, %cst_54 [1] : vector<8x128xf32> to vector<8xf32>
    %128 = vector.shape_cast %127 : vector<8xf32> to vector<8x1xf32>
    %cst_55 = arith.constant 7.812500e-03 : f32
    %129 = vector.broadcast %cst_55 : f32 to vector<8x1xf32>
    %130 = arith.mulf %128, %129 : vector<8x1xf32>
    %131 = arith.mulf %125, %125 : vector<8x1xf32>
    %132 = arith.subf %130, %131 : vector<8x1xf32>
    %cst_56 = arith.constant 0.000000e+00 : f32
    %133 = vector.broadcast %cst_56 : f32 to vector<8x1xf32>
    %134 = arith.maximumf %132, %133 : vector<8x1xf32>
    %135 = vector.broadcast %125 : vector<8x1xf32> to vector<8x128xf32>
    %136 = arith.subf %121, %135 : vector<8x128xf32>
    %cst_57 = arith.constant 9.99999997E-7 : f32
    %137 = vector.broadcast %cst_57 : f32 to vector<8x1xf32>
    %138 = arith.addf %134, %137 : vector<8x1xf32>
    %139 = math.rsqrt %138 : vector<8x1xf32>
    %140 = vector.broadcast %139 : vector<8x1xf32> to vector<8x128xf32>
    %141 = arith.mulf %136, %140 : vector<8x128xf32>
    %142 = arith.mulf %141, %15 : vector<8x128xf32>
    %143 = arith.addf %142, %18 : vector<8x128xf32>
    %144 = arith.negf %143 : vector<8x128xf32>
    %145 = math.exp %144 : vector<8x128xf32>
    %cst_58 = arith.constant 1.000000e+00 : f32
    %146 = vector.broadcast %cst_58 : f32 to vector<8x128xf32>
    %147 = arith.addf %146, %145 : vector<8x128xf32>
    %148 = arith.divf %146, %147 : vector<8x128xf32>
    %149 = vector.extract_strided_slice %148 {offsets = [0, 0], sizes = [8, 32], strides = [1, 1]} : vector<8x128xf32> to vector<8x32xf32>
    %150 = vector.extract_strided_slice %148 {offsets = [0, 32], sizes = [8, 32], strides = [1, 1]} : vector<8x128xf32> to vector<8x32xf32>
    %151 = vector.extract_strided_slice %148 {offsets = [0, 64], sizes = [8, 32], strides = [1, 1]} : vector<8x128xf32> to vector<8x32xf32>
    %152 = vector.extract_strided_slice %148 {offsets = [0, 96], sizes = [8, 32], strides = [1, 1]} : vector<8x128xf32> to vector<8x32xf32>
    %cst_59 = arith.constant 2.000000e+00 : f32
    %153 = vector.broadcast %cst_59 : f32 to vector<8x32xf32>
    %154 = arith.mulf %153, %152 : vector<8x32xf32>
    %cst_60 = arith.constant 1.000000e+00 : f32
    %155 = vector.broadcast %cst_60 : f32 to vector<8x32xf32>
    %156 = arith.subf %154, %155 : vector<8x32xf32>
    %157 = arith.mulf %150, %111 : vector<8x32xf32>
    %158 = arith.mulf %149, %156 : vector<8x32xf32>
    %159 = arith.addf %157, %158 : vector<8x32xf32>
    %160 = arith.mulf %151, %159 : vector<8x32xf32>
    %161 = arith.index_cast %c2_i32 : i32 to index
    %c0_61 = arith.constant 0 : index
    %c0_62 = arith.constant 0 : index
    %162 = vector.load %arg10[%161, %c0_61, %c0_62] : memref<8x8x32xf32, #tpu.memory_space<vmem>>, vector<1x8x32xf32>
    %163 = vector.shape_cast %162 : vector<1x8x32xf32> to vector<8x32xf32>
    %164 = vector.shape_cast %160 : vector<8x32xf32> to vector<1x8x32xf32>
    tpu.vector_store %arg10[%161, %c0_61, %c0_62], %164 {strides = array<i32>} : memref<8x8x32xf32, #tpu.memory_space<vmem>>, vector<1x8x32xf32>,
    %c3_i32 = arith.constant 3 : i32
    %165 = arith.index_cast %c3_i32 : i32 to index
    %c0_63 = arith.constant 0 : index
    %c0_64 = arith.constant 0 : index
    %166 = vector.load %arg13[%165, %c0_63, %c0_64] : memref<8x8x128xf32, #tpu.memory_space<vmem>>, vector<1x8x128xf32>
    %167 = vector.shape_cast %166 : vector<1x8x128xf32> to vector<8x128xf32>
    %cst_65 = arith.constant dense<0.000000e+00> : vector<8x128xf32>
    %168 = tpu.matmul %160, %12, %cst_65 {dimension_numbers = #tpu.dot_dimension_numbers<[1], [0], [0], [1], [0, 0, 1, 1], [], []>} : vector<8x32xf32>, vector<32x128xf32>, vector<8x128xf32> -> vector<8x128xf32>
    %169 = arith.addf %167, %168 : vector<8x128xf32>
    %cst_66 = arith.constant dense<0.000000e+00> : vector<8xf32>
    %170 = vector.multi_reduction <add>, %169, %cst_66 [1] : vector<8x128xf32> to vector<8xf32>
    %171 = vector.shape_cast %170 : vector<8xf32> to vector<8x1xf32>
    %cst_67 = arith.constant 7.812500e-03 : f32
    %172 = vector.broadcast %cst_67 : f32 to vector<8x1xf32>
    %173 = arith.mulf %171, %172 : vector<8x1xf32>
    %174 = arith.mulf %169, %169 : vector<8x128xf32>
    %cst_68 = arith.constant dense<0.000000e+00> : vector<8xf32>
    %175 = vector.multi_reduction <add>, %174, %cst_68 [1] : vector<8x128xf32> to vector<8xf32>
    %176 = vector.shape_cast %175 : vector<8xf32> to vector<8x1xf32>
    %cst_69 = arith.constant 7.812500e-03 : f32
    %177 = vector.broadcast %cst_69 : f32 to vector<8x1xf32>
    %178 = arith.mulf %176, %177 : vector<8x1xf32>
    %179 = arith.mulf %173, %173 : vector<8x1xf32>
    %180 = arith.subf %178, %179 : vector<8x1xf32>
    %cst_70 = arith.constant 0.000000e+00 : f32
    %181 = vector.broadcast %cst_70 : f32 to vector<8x1xf32>
    %182 = arith.maximumf %180, %181 : vector<8x1xf32>
    %183 = vector.broadcast %173 : vector<8x1xf32> to vector<8x128xf32>
    %184 = arith.subf %169, %183 : vector<8x128xf32>
    %cst_71 = arith.constant 9.99999997E-7 : f32
    %185 = vector.broadcast %cst_71 : f32 to vector<8x1xf32>
    %186 = arith.addf %182, %185 : vector<8x1xf32>
    %187 = math.rsqrt %186 : vector<8x1xf32>
    %188 = vector.broadcast %187 : vector<8x1xf32> to vector<8x128xf32>
    %189 = arith.mulf %184, %188 : vector<8x128xf32>
    %190 = arith.mulf %189, %15 : vector<8x128xf32>
    %191 = arith.addf %190, %18 : vector<8x128xf32>
    %192 = arith.negf %191 : vector<8x128xf32>
    %193 = math.exp %192 : vector<8x128xf32>
    %cst_72 = arith.constant 1.000000e+00 : f32
    %194 = vector.broadcast %cst_72 : f32 to vector<8x128xf32>
    %195 = arith.addf %194, %193 : vector<8x128xf32>
    %196 = arith.divf %194, %195 : vector<8x128xf32>
    %197 = vector.extract_strided_slice %196 {offsets = [0, 0], sizes = [8, 32], strides = [1, 1]} : vector<8x128xf32> to vector<8x32xf32>
    %198 = vector.extract_strided_slice %196 {offsets = [0, 32], sizes = [8, 32], strides = [1, 1]} : vector<8x128xf32> to vector<8x32xf32>
    %199 = vector.extract_strided_slice %196 {offsets = [0, 64], sizes = [8, 32], strides = [1, 1]} : vector<8x128xf32> to vector<8x32xf32>
    %200 = vector.extract_strided_slice %196 {offsets = [0, 96], sizes = [8, 32], strides = [1, 1]} : vector<8x128xf32> to vector<8x32xf32>
    %cst_73 = arith.constant 2.000000e+00 : f32
    %201 = vector.broadcast %cst_73 : f32 to vector<8x32xf32>
    %202 = arith.mulf %201, %200 : vector<8x32xf32>
    %cst_74 = arith.constant 1.000000e+00 : f32
    %203 = vector.broadcast %cst_74 : f32 to vector<8x32xf32>
    %204 = arith.subf %202, %203 : vector<8x32xf32>
    %205 = arith.mulf %198, %159 : vector<8x32xf32>
    %206 = arith.mulf %197, %204 : vector<8x32xf32>
    %207 = arith.addf %205, %206 : vector<8x32xf32>
    %208 = arith.mulf %199, %207 : vector<8x32xf32>
    %209 = arith.index_cast %c3_i32 : i32 to index
    %c0_75 = arith.constant 0 : index
    %c0_76 = arith.constant 0 : index
    %210 = vector.load %arg10[%209, %c0_75, %c0_76] : memref<8x8x32xf32, #tpu.memory_space<vmem>>, vector<1x8x32xf32>
    %211 = vector.shape_cast %210 : vector<1x8x32xf32> to vector<8x32xf32>
    %212 = vector.shape_cast %208 : vector<8x32xf32> to vector<1x8x32xf32>
    tpu.vector_store %arg10[%209, %c0_75, %c0_76], %212 {strides = array<i32>} : memref<8x8x32xf32, #tpu.memory_space<vmem>>, vector<1x8x32xf32>,
    %c4_i32 = arith.constant 4 : i32
    %213 = arith.index_cast %c4_i32 : i32 to index
    %c0_77 = arith.constant 0 : index
    %c0_78 = arith.constant 0 : index
    %214 = vector.load %arg13[%213, %c0_77, %c0_78] : memref<8x8x128xf32, #tpu.memory_space<vmem>>, vector<1x8x128xf32>
    %215 = vector.shape_cast %214 : vector<1x8x128xf32> to vector<8x128xf32>
    %cst_79 = arith.constant dense<0.000000e+00> : vector<8x128xf32>
    %216 = tpu.matmul %208, %12, %cst_79 {dimension_numbers = #tpu.dot_dimension_numbers<[1], [0], [0], [1], [0, 0, 1, 1], [], []>} : vector<8x32xf32>, vector<32x128xf32>, vector<8x128xf32> -> vector<8x128xf32>
    %217 = arith.addf %215, %216 : vector<8x128xf32>
    %cst_80 = arith.constant dense<0.000000e+00> : vector<8xf32>
    %218 = vector.multi_reduction <add>, %217, %cst_80 [1] : vector<8x128xf32> to vector<8xf32>
    %219 = vector.shape_cast %218 : vector<8xf32> to vector<8x1xf32>
    %cst_81 = arith.constant 7.812500e-03 : f32
    %220 = vector.broadcast %cst_81 : f32 to vector<8x1xf32>
    %221 = arith.mulf %219, %220 : vector<8x1xf32>
    %222 = arith.mulf %217, %217 : vector<8x128xf32>
    %cst_82 = arith.constant dense<0.000000e+00> : vector<8xf32>
    %223 = vector.multi_reduction <add>, %222, %cst_82 [1] : vector<8x128xf32> to vector<8xf32>
    %224 = vector.shape_cast %223 : vector<8xf32> to vector<8x1xf32>
    %cst_83 = arith.constant 7.812500e-03 : f32
    %225 = vector.broadcast %cst_83 : f32 to vector<8x1xf32>
    %226 = arith.mulf %224, %225 : vector<8x1xf32>
    %227 = arith.mulf %221, %221 : vector<8x1xf32>
    %228 = arith.subf %226, %227 : vector<8x1xf32>
    %cst_84 = arith.constant 0.000000e+00 : f32
    %229 = vector.broadcast %cst_84 : f32 to vector<8x1xf32>
    %230 = arith.maximumf %228, %229 : vector<8x1xf32>
    %231 = vector.broadcast %221 : vector<8x1xf32> to vector<8x128xf32>
    %232 = arith.subf %217, %231 : vector<8x128xf32>
    %cst_85 = arith.constant 9.99999997E-7 : f32
    %233 = vector.broadcast %cst_85 : f32 to vector<8x1xf32>
    %234 = arith.addf %230, %233 : vector<8x1xf32>
    %235 = math.rsqrt %234 : vector<8x1xf32>
    %236 = vector.broadcast %235 : vector<8x1xf32> to vector<8x128xf32>
    %237 = arith.mulf %232, %236 : vector<8x128xf32>
    %238 = arith.mulf %237, %15 : vector<8x128xf32>
    %239 = arith.addf %238, %18 : vector<8x128xf32>
    %240 = arith.negf %239 : vector<8x128xf32>
    %241 = math.exp %240 : vector<8x128xf32>
    %cst_86 = arith.constant 1.000000e+00 : f32
    %242 = vector.broadcast %cst_86 : f32 to vector<8x128xf32>
    %243 = arith.addf %242, %241 : vector<8x128xf32>
    %244 = arith.divf %242, %243 : vector<8x128xf32>
    %245 = vector.extract_strided_slice %244 {offsets = [0, 0], sizes = [8, 32], strides = [1, 1]} : vector<8x128xf32> to vector<8x32xf32>
    %246 = vector.extract_strided_slice %244 {offsets = [0, 32], sizes = [8, 32], strides = [1, 1]} : vector<8x128xf32> to vector<8x32xf32>
    %247 = vector.extract_strided_slice %244 {offsets = [0, 64], sizes = [8, 32], strides = [1, 1]} : vector<8x128xf32> to vector<8x32xf32>
    %248 = vector.extract_strided_slice %244 {offsets = [0, 96], sizes = [8, 32], strides = [1, 1]} : vector<8x128xf32> to vector<8x32xf32>
    %cst_87 = arith.constant 2.000000e+00 : f32
    %249 = vector.broadcast %cst_87 : f32 to vector<8x32xf32>
    %250 = arith.mulf %249, %248 : vector<8x32xf32>
    %cst_88 = arith.constant 1.000000e+00 : f32
    %251 = vector.broadcast %cst_88 : f32 to vector<8x32xf32>
    %252 = arith.subf %250, %251 : vector<8x32xf32>
    %253 = arith.mulf %246, %207 : vector<8x32xf32>
    %254 = arith.mulf %245, %252 : vector<8x32xf32>
    %255 = arith.addf %253, %254 : vector<8x32xf32>
    %256 = arith.mulf %247, %255 : vector<8x32xf32>
    %257 = arith.index_cast %c4_i32 : i32 to index
    %c0_89 = arith.constant 0 : index
    %c0_90 = arith.constant 0 : index
    %258 = vector.load %arg10[%257, %c0_89, %c0_90] : memref<8x8x32xf32, #tpu.memory_space<vmem>>, vector<1x8x32xf32>
    %259 = vector.shape_cast %258 : vector<1x8x32xf32> to vector<8x32xf32>
    %260 = vector.shape_cast %256 : vector<8x32xf32> to vector<1x8x32xf32>
    tpu.vector_store %arg10[%257, %c0_89, %c0_90], %260 {strides = array<i32>} : memref<8x8x32xf32, #tpu.memory_space<vmem>>, vector<1x8x32xf32>,
    %c5_i32 = arith.constant 5 : i32
    %261 = arith.index_cast %c5_i32 : i32 to index
    %c0_91 = arith.constant 0 : index
    %c0_92 = arith.constant 0 : index
    %262 = vector.load %arg13[%261, %c0_91, %c0_92] : memref<8x8x128xf32, #tpu.memory_space<vmem>>, vector<1x8x128xf32>
    %263 = vector.shape_cast %262 : vector<1x8x128xf32> to vector<8x128xf32>
    %cst_93 = arith.constant dense<0.000000e+00> : vector<8x128xf32>
    %264 = tpu.matmul %256, %12, %cst_93 {dimension_numbers = #tpu.dot_dimension_numbers<[1], [0], [0], [1], [0, 0, 1, 1], [], []>} : vector<8x32xf32>, vector<32x128xf32>, vector<8x128xf32> -> vector<8x128xf32>
    %265 = arith.addf %263, %264 : vector<8x128xf32>
    %cst_94 = arith.constant dense<0.000000e+00> : vector<8xf32>
    %266 = vector.multi_reduction <add>, %265, %cst_94 [1] : vector<8x128xf32> to vector<8xf32>
    %267 = vector.shape_cast %266 : vector<8xf32> to vector<8x1xf32>
    %cst_95 = arith.constant 7.812500e-03 : f32
    %268 = vector.broadcast %cst_95 : f32 to vector<8x1xf32>
    %269 = arith.mulf %267, %268 : vector<8x1xf32>
    %270 = arith.mulf %265, %265 : vector<8x128xf32>
    %cst_96 = arith.constant dense<0.000000e+00> : vector<8xf32>
    %271 = vector.multi_reduction <add>, %270, %cst_96 [1] : vector<8x128xf32> to vector<8xf32>
    %272 = vector.shape_cast %271 : vector<8xf32> to vector<8x1xf32>
    %cst_97 = arith.constant 7.812500e-03 : f32
    %273 = vector.broadcast %cst_97 : f32 to vector<8x1xf32>
    %274 = arith.mulf %272, %273 : vector<8x1xf32>
    %275 = arith.mulf %269, %269 : vector<8x1xf32>
    %276 = arith.subf %274, %275 : vector<8x1xf32>
    %cst_98 = arith.constant 0.000000e+00 : f32
    %277 = vector.broadcast %cst_98 : f32 to vector<8x1xf32>
    %278 = arith.maximumf %276, %277 : vector<8x1xf32>
    %279 = vector.broadcast %269 : vector<8x1xf32> to vector<8x128xf32>
    %280 = arith.subf %265, %279 : vector<8x128xf32>
    %cst_99 = arith.constant 9.99999997E-7 : f32
    %281 = vector.broadcast %cst_99 : f32 to vector<8x1xf32>
    %282 = arith.addf %278, %281 : vector<8x1xf32>
    %283 = math.rsqrt %282 : vector<8x1xf32>
    %284 = vector.broadcast %283 : vector<8x1xf32> to vector<8x128xf32>
    %285 = arith.mulf %280, %284 : vector<8x128xf32>
    %286 = arith.mulf %285, %15 : vector<8x128xf32>
    %287 = arith.addf %286, %18 : vector<8x128xf32>
    %288 = arith.negf %287 : vector<8x128xf32>
    %289 = math.exp %288 : vector<8x128xf32>
    %cst_100 = arith.constant 1.000000e+00 : f32
    %290 = vector.broadcast %cst_100 : f32 to vector<8x128xf32>
    %291 = arith.addf %290, %289 : vector<8x128xf32>
    %292 = arith.divf %290, %291 : vector<8x128xf32>
    %293 = vector.extract_strided_slice %292 {offsets = [0, 0], sizes = [8, 32], strides = [1, 1]} : vector<8x128xf32> to vector<8x32xf32>
    %294 = vector.extract_strided_slice %292 {offsets = [0, 32], sizes = [8, 32], strides = [1, 1]} : vector<8x128xf32> to vector<8x32xf32>
    %295 = vector.extract_strided_slice %292 {offsets = [0, 64], sizes = [8, 32], strides = [1, 1]} : vector<8x128xf32> to vector<8x32xf32>
    %296 = vector.extract_strided_slice %292 {offsets = [0, 96], sizes = [8, 32], strides = [1, 1]} : vector<8x128xf32> to vector<8x32xf32>
    %cst_101 = arith.constant 2.000000e+00 : f32
    %297 = vector.broadcast %cst_101 : f32 to vector<8x32xf32>
    %298 = arith.mulf %297, %296 : vector<8x32xf32>
    %cst_102 = arith.constant 1.000000e+00 : f32
    %299 = vector.broadcast %cst_102 : f32 to vector<8x32xf32>
    %300 = arith.subf %298, %299 : vector<8x32xf32>
    %301 = arith.mulf %294, %255 : vector<8x32xf32>
    %302 = arith.mulf %293, %300 : vector<8x32xf32>
    %303 = arith.addf %301, %302 : vector<8x32xf32>
    %304 = arith.mulf %295, %303 : vector<8x32xf32>
    %305 = arith.index_cast %c5_i32 : i32 to index
    %c0_103 = arith.constant 0 : index
    %c0_104 = arith.constant 0 : index
    %306 = vector.load %arg10[%305, %c0_103, %c0_104] : memref<8x8x32xf32, #tpu.memory_space<vmem>>, vector<1x8x32xf32>
    %307 = vector.shape_cast %306 : vector<1x8x32xf32> to vector<8x32xf32>
    %308 = vector.shape_cast %304 : vector<8x32xf32> to vector<1x8x32xf32>
    tpu.vector_store %arg10[%305, %c0_103, %c0_104], %308 {strides = array<i32>} : memref<8x8x32xf32, #tpu.memory_space<vmem>>, vector<1x8x32xf32>,
    %c6_i32 = arith.constant 6 : i32
    %309 = arith.index_cast %c6_i32 : i32 to index
    %c0_105 = arith.constant 0 : index
    %c0_106 = arith.constant 0 : index
    %310 = vector.load %arg13[%309, %c0_105, %c0_106] : memref<8x8x128xf32, #tpu.memory_space<vmem>>, vector<1x8x128xf32>
    %311 = vector.shape_cast %310 : vector<1x8x128xf32> to vector<8x128xf32>
    %cst_107 = arith.constant dense<0.000000e+00> : vector<8x128xf32>
    %312 = tpu.matmul %304, %12, %cst_107 {dimension_numbers = #tpu.dot_dimension_numbers<[1], [0], [0], [1], [0, 0, 1, 1], [], []>} : vector<8x32xf32>, vector<32x128xf32>, vector<8x128xf32> -> vector<8x128xf32>
    %313 = arith.addf %311, %312 : vector<8x128xf32>
    %cst_108 = arith.constant dense<0.000000e+00> : vector<8xf32>
    %314 = vector.multi_reduction <add>, %313, %cst_108 [1] : vector<8x128xf32> to vector<8xf32>
    %315 = vector.shape_cast %314 : vector<8xf32> to vector<8x1xf32>
    %cst_109 = arith.constant 7.812500e-03 : f32
    %316 = vector.broadcast %cst_109 : f32 to vector<8x1xf32>
    %317 = arith.mulf %315, %316 : vector<8x1xf32>
    %318 = arith.mulf %313, %313 : vector<8x128xf32>
    %cst_110 = arith.constant dense<0.000000e+00> : vector<8xf32>
    %319 = vector.multi_reduction <add>, %318, %cst_110 [1] : vector<8x128xf32> to vector<8xf32>
    %320 = vector.shape_cast %319 : vector<8xf32> to vector<8x1xf32>
    %cst_111 = arith.constant 7.812500e-03 : f32
    %321 = vector.broadcast %cst_111 : f32 to vector<8x1xf32>
    %322 = arith.mulf %320, %321 : vector<8x1xf32>
    %323 = arith.mulf %317, %317 : vector<8x1xf32>
    %324 = arith.subf %322, %323 : vector<8x1xf32>
    %cst_112 = arith.constant 0.000000e+00 : f32
    %325 = vector.broadcast %cst_112 : f32 to vector<8x1xf32>
    %326 = arith.maximumf %324, %325 : vector<8x1xf32>
    %327 = vector.broadcast %317 : vector<8x1xf32> to vector<8x128xf32>
    %328 = arith.subf %313, %327 : vector<8x128xf32>
    %cst_113 = arith.constant 9.99999997E-7 : f32
    %329 = vector.broadcast %cst_113 : f32 to vector<8x1xf32>
    %330 = arith.addf %326, %329 : vector<8x1xf32>
    %331 = math.rsqrt %330 : vector<8x1xf32>
    %332 = vector.broadcast %331 : vector<8x1xf32> to vector<8x128xf32>
    %333 = arith.mulf %328, %332 : vector<8x128xf32>
    %334 = arith.mulf %333, %15 : vector<8x128xf32>
    %335 = arith.addf %334, %18 : vector<8x128xf32>
    %336 = arith.negf %335 : vector<8x128xf32>
    %337 = math.exp %336 : vector<8x128xf32>
    %cst_114 = arith.constant 1.000000e+00 : f32
    %338 = vector.broadcast %cst_114 : f32 to vector<8x128xf32>
    %339 = arith.addf %338, %337 : vector<8x128xf32>
    %340 = arith.divf %338, %339 : vector<8x128xf32>
    %341 = vector.extract_strided_slice %340 {offsets = [0, 0], sizes = [8, 32], strides = [1, 1]} : vector<8x128xf32> to vector<8x32xf32>
    %342 = vector.extract_strided_slice %340 {offsets = [0, 32], sizes = [8, 32], strides = [1, 1]} : vector<8x128xf32> to vector<8x32xf32>
    %343 = vector.extract_strided_slice %340 {offsets = [0, 64], sizes = [8, 32], strides = [1, 1]} : vector<8x128xf32> to vector<8x32xf32>
    %344 = vector.extract_strided_slice %340 {offsets = [0, 96], sizes = [8, 32], strides = [1, 1]} : vector<8x128xf32> to vector<8x32xf32>
    %cst_115 = arith.constant 2.000000e+00 : f32
    %345 = vector.broadcast %cst_115 : f32 to vector<8x32xf32>
    %346 = arith.mulf %345, %344 : vector<8x32xf32>
    %cst_116 = arith.constant 1.000000e+00 : f32
    %347 = vector.broadcast %cst_116 : f32 to vector<8x32xf32>
    %348 = arith.subf %346, %347 : vector<8x32xf32>
    %349 = arith.mulf %342, %303 : vector<8x32xf32>
    %350 = arith.mulf %341, %348 : vector<8x32xf32>
    %351 = arith.addf %349, %350 : vector<8x32xf32>
    %352 = arith.mulf %343, %351 : vector<8x32xf32>
    %353 = arith.index_cast %c6_i32 : i32 to index
    %c0_117 = arith.constant 0 : index
    %c0_118 = arith.constant 0 : index
    %354 = vector.load %arg10[%353, %c0_117, %c0_118] : memref<8x8x32xf32, #tpu.memory_space<vmem>>, vector<1x8x32xf32>
    %355 = vector.shape_cast %354 : vector<1x8x32xf32> to vector<8x32xf32>
    %356 = vector.shape_cast %352 : vector<8x32xf32> to vector<1x8x32xf32>
    tpu.vector_store %arg10[%353, %c0_117, %c0_118], %356 {strides = array<i32>} : memref<8x8x32xf32, #tpu.memory_space<vmem>>, vector<1x8x32xf32>,
    %c7_i32 = arith.constant 7 : i32
    %357 = arith.index_cast %c7_i32 : i32 to index
    %c0_119 = arith.constant 0 : index
    %c0_120 = arith.constant 0 : index
    %358 = vector.load %arg13[%357, %c0_119, %c0_120] : memref<8x8x128xf32, #tpu.memory_space<vmem>>, vector<1x8x128xf32>
    %359 = vector.shape_cast %358 : vector<1x8x128xf32> to vector<8x128xf32>
    %cst_121 = arith.constant dense<0.000000e+00> : vector<8x128xf32>
    %360 = tpu.matmul %352, %12, %cst_121 {dimension_numbers = #tpu.dot_dimension_numbers<[1], [0], [0], [1], [0, 0, 1, 1], [], []>} : vector<8x32xf32>, vector<32x128xf32>, vector<8x128xf32> -> vector<8x128xf32>
    %361 = arith.addf %359, %360 : vector<8x128xf32>
    %cst_122 = arith.constant dense<0.000000e+00> : vector<8xf32>
    %362 = vector.multi_reduction <add>, %361, %cst_122 [1] : vector<8x128xf32> to vector<8xf32>
    %363 = vector.shape_cast %362 : vector<8xf32> to vector<8x1xf32>
    %cst_123 = arith.constant 7.812500e-03 : f32
    %364 = vector.broadcast %cst_123 : f32 to vector<8x1xf32>
    %365 = arith.mulf %363, %364 : vector<8x1xf32>
    %366 = arith.mulf %361, %361 : vector<8x128xf32>
    %cst_124 = arith.constant dense<0.000000e+00> : vector<8xf32>
    %367 = vector.multi_reduction <add>, %366, %cst_124 [1] : vector<8x128xf32> to vector<8xf32>
    %368 = vector.shape_cast %367 : vector<8xf32> to vector<8x1xf32>
    %cst_125 = arith.constant 7.812500e-03 : f32
    %369 = vector.broadcast %cst_125 : f32 to vector<8x1xf32>
    %370 = arith.mulf %368, %369 : vector<8x1xf32>
    %371 = arith.mulf %365, %365 : vector<8x1xf32>
    %372 = arith.subf %370, %371 : vector<8x1xf32>
    %cst_126 = arith.constant 0.000000e+00 : f32
    %373 = vector.broadcast %cst_126 : f32 to vector<8x1xf32>
    %374 = arith.maximumf %372, %373 : vector<8x1xf32>
    %375 = vector.broadcast %365 : vector<8x1xf32> to vector<8x128xf32>
    %376 = arith.subf %361, %375 : vector<8x128xf32>
    %cst_127 = arith.constant 9.99999997E-7 : f32
    %377 = vector.broadcast %cst_127 : f32 to vector<8x1xf32>
    %378 = arith.addf %374, %377 : vector<8x1xf32>
    %379 = math.rsqrt %378 : vector<8x1xf32>
    %380 = vector.broadcast %379 : vector<8x1xf32> to vector<8x128xf32>
    %381 = arith.mulf %376, %380 : vector<8x128xf32>
    %382 = arith.mulf %381, %15 : vector<8x128xf32>
    %383 = arith.addf %382, %18 : vector<8x128xf32>
    %384 = arith.negf %383 : vector<8x128xf32>
    %385 = math.exp %384 : vector<8x128xf32>
    %cst_128 = arith.constant 1.000000e+00 : f32
    %386 = vector.broadcast %cst_128 : f32 to vector<8x128xf32>
    %387 = arith.addf %386, %385 : vector<8x128xf32>
    %388 = arith.divf %386, %387 : vector<8x128xf32>
    %389 = vector.extract_strided_slice %388 {offsets = [0, 0], sizes = [8, 32], strides = [1, 1]} : vector<8x128xf32> to vector<8x32xf32>
    %390 = vector.extract_strided_slice %388 {offsets = [0, 32], sizes = [8, 32], strides = [1, 1]} : vector<8x128xf32> to vector<8x32xf32>
    %391 = vector.extract_strided_slice %388 {offsets = [0, 64], sizes = [8, 32], strides = [1, 1]} : vector<8x128xf32> to vector<8x32xf32>
    %392 = vector.extract_strided_slice %388 {offsets = [0, 96], sizes = [8, 32], strides = [1, 1]} : vector<8x128xf32> to vector<8x32xf32>
    %cst_129 = arith.constant 2.000000e+00 : f32
    %393 = vector.broadcast %cst_129 : f32 to vector<8x32xf32>
    %394 = arith.mulf %393, %392 : vector<8x32xf32>
    %cst_130 = arith.constant 1.000000e+00 : f32
    %395 = vector.broadcast %cst_130 : f32 to vector<8x32xf32>
    %396 = arith.subf %394, %395 : vector<8x32xf32>
    %397 = arith.mulf %390, %351 : vector<8x32xf32>
    %398 = arith.mulf %389, %396 : vector<8x32xf32>
    %399 = arith.addf %397, %398 : vector<8x32xf32>
    %400 = arith.mulf %391, %399 : vector<8x32xf32>
    %401 = arith.index_cast %c7_i32 : i32 to index
    %c0_131 = arith.constant 0 : index
    %c0_132 = arith.constant 0 : index
    %402 = vector.load %arg10[%401, %c0_131, %c0_132] : memref<8x8x32xf32, #tpu.memory_space<vmem>>, vector<1x8x32xf32>
    %403 = vector.shape_cast %402 : vector<1x8x32xf32> to vector<8x32xf32>
    %404 = vector.shape_cast %400 : vector<8x32xf32> to vector<1x8x32xf32>
    tpu.vector_store %arg10[%401, %c0_131, %c0_132], %404 {strides = array<i32>} : memref<8x8x32xf32, #tpu.memory_space<vmem>>, vector<1x8x32xf32>,
    %c8_i32 = arith.constant 8 : i32
    %c0_133 = arith.constant 0 : index
    %c0_134 = arith.constant 0 : index
    %405 = vector.load %arg11[%c0_133, %c0_134] : memref<8x32xf32, #tpu.memory_space<vmem>>, vector<8x32xf32>
    tpu.vector_store %arg11[%c0_133, %c0_134], %400 {strides = array<i32>} : memref<8x32xf32, #tpu.memory_space<vmem>>, vector<8x32xf32>,
    %c0_135 = arith.constant 0 : index
    %c0_136 = arith.constant 0 : index
    %406 = vector.load %arg12[%c0_135, %c0_136] : memref<8x32xf32, #tpu.memory_space<vmem>>, vector<8x32xf32>
    tpu.vector_store %arg12[%c0_135, %c0_136], %399 {strides = array<i32>} : memref<8x32xf32, #tpu.memory_space<vmem>>, vector<8x32xf32>,
    return
  }
  func.func @transform_0(%arg0: i32, %arg1: i32) -> (i32, i32, i32) {
    %c0_i32 = arith.constant 0 : i32
    %c0_i32_0 = arith.constant 0 : i32
    return %arg1, %arg0, %c0_i32 : i32, i32, i32
  }
  func.func @transform_1(%arg0: i32, %arg1: i32) -> (i32, i32) {
    %c0_i32 = arith.constant 0 : i32
    %c0_i32_0 = arith.constant 0 : i32
    %c0_i32_1 = arith.constant 0 : i32
    return %c0_i32, %c0_i32_0 : i32, i32
  }
  func.func @transform_2(%arg0: i32, %arg1: i32) -> (i32, i32) {
    %c0_i32 = arith.constant 0 : i32
    %c0_i32_0 = arith.constant 0 : i32
    %c0_i32_1 = arith.constant 0 : i32
    return %c0_i32, %c0_i32_0 : i32, i32
  }
  func.func @transform_3(%arg0: i32, %arg1: i32) -> (i32, i32) {
    %c0_i32 = arith.constant 0 : i32
    %c0_i32_0 = arith.constant 0 : i32
    %c0_i32_1 = arith.constant 0 : i32
    return %c0_i32, %c0_i32_0 : i32, i32
  }
  func.func @transform_4(%arg0: i32, %arg1: i32) -> (i32, i32) {
    %c0_i32 = arith.constant 0 : i32
    %c0_i32_0 = arith.constant 0 : i32
    %c0_i32_1 = arith.constant 0 : i32
    return %c0_i32, %c0_i32_0 : i32, i32
  }
  func.func @transform_5(%arg0: i32, %arg1: i32) -> (i32, i32) {
    %c0_i32 = arith.constant 0 : i32
    %c0_i32_0 = arith.constant 0 : i32
    %c0_i32_1 = arith.constant 0 : i32
    return %c0_i32, %c0_i32_0 : i32, i32
  }
  func.func @transform_6(%arg0: i32, %arg1: i32) -> (i32, i32) {
    %c0_i32 = arith.constant 0 : i32
    %c0_i32_0 = arith.constant 0 : i32
    %c0_i32_1 = arith.constant 0 : i32
    return %c0_i32, %c0_i32_0 : i32, i32
  }
  func.func @transform_7(%arg0: i32, %arg1: i32) -> (i32, i32) {
    %c0_i32 = arith.constant 0 : i32
    %c0_i32_0 = arith.constant 0 : i32
    %c0_i32_1 = arith.constant 0 : i32
    return %c0_i32, %c0_i32_0 : i32, i32
  }
  func.func @transform_8(%arg0: i32, %arg1: i32) -> (i32, i32, i32) {
    %c0_i32 = arith.constant 0 : i32
    %c0_i32_0 = arith.constant 0 : i32
    return %arg1, %arg0, %c0_i32 : i32, i32, i32
  }
}

</mosaic_0001>

<bundles_post_ra>
// kernel: _forward_impl.1
= control target key start
LH: loop header
LB: loop body
LE: loop exit
PB: predicated region body
PF: predicated region fallthrough
CT: control target
= control target key end

     0   :  { %s2006_s27 = smov 0   ;;  %s2008_s28 = smov 0   ;;  %s2245_s0 = inlined_call_operand.vmem [shape: f32[16,8,16], index: 0, kind: input, shape index: {}]   ;;  %s2246_s1 = inlined_call_operand.vmem [shape: f32[16,128], index: 1, kind: input, shape index: {}]   ;;  %s2247_s2 = inlined_call_operand.vmem [shape: f32[32,128], index: 2, kind: input, shape index: {}]   ;;  %s2248_s3 = inlined_call_operand.vmem [shape: f32[1,128], index: 3, kind: input, shape index: {}]   ;;  %s2249_s4 = inlined_call_operand.vmem [shape: f32[1,128], index: 4, kind: input, shape index: {}]   ;;  %s2250_s5 = inlined_call_operand.vmem [shape: f32[1,128], index: 5, kind: input, shape index: {}]   ;;  %s2251_s6 = inlined_call_operand.vmem [shape: f32[1,32], index: 6, kind: input, shape index: {}]   ;;  %s2252_s7 = inlined_call_operand.vmem [shape: f32[1,32], index: 7, kind: input, shape index: {}]   ;;  %s2253_s8 = inlined_call_operand.vmem [shape: f32[16,8,32], index: 8, kind: output, shape index: {}]  }
   0x1   :  { %s2010_s29 = smov 0  }
   0x2 LB: > { %s27_s30 = sadd.s32 1, %s1949_s28  ;;  %p1595_p0 = scmp.ge.s32.totalorder %s1953_s29, 1  ;;  %s1953_s29 = sphi %s2010_s29, %s18_s29   ;;  %s1949_s28 = sphi %s2008_s28, %s2255_s28   ;;  %s1945_s27 = sphi %s2006_s27, %s2254_s27  }
   0x3   : > { %p28_p1 = scmp.ge.s32.totalorder %s27_s30, 2  ;;  %p282_p2 = scmp.lt.s32.totalorder %s1953_s29, 3 }
   0x5   : > { %s2257_s30 = smov (%p28_p1, %s27_s30), 0  ;;  %p283_p3 = pnand %p1595_p0, %p282_p2 }
   0x6   : > { %s1596_s9 = sshll.u32 (!%p283_p3), %s1945_s27, 3  ;;  %p1600_p5 = scmp.ne.s32.totalorder (!%p283_p3), %s1945_s27, 0 }
   0x7   : > { %286 = sbr.rel (%p283_p3) target bundleno = 7067 (0x1b9b), region = 52  ;;  %p323_p4 = scmp.lt.s32.totalorder (!%p283_p3), %s1596_s9, 15 }
   0xe   : > { %s2259_s9 = smov (!%p323_p4, %s1596_s9), 15  ;;  %343 = sbr.rel (%p1600_p5) target bundleno = 21 (0x15), region = 56 }
   0xf   : > { %s1597_s10 = sshll.u32 %s2259_s9, 3  ;;  %v1601_v0 = vld [vmem:[%s2251_s6] ss:$0 sm:$0xff] (!%p1600_p5)  ;;  %vm351_vm0 = vcmask (!%p1600_p5), 261120  }
  0x10   : > { %s2027_s13 = scalar_lea.vmem %s2245_s0, %s1597_s10  ;;  %s2032_s16 = scalar_lea.vmem %s2253_s8, %s1597_s10  ;;  %v1602_v1 = vld [vmem:[%s2252_s7] ss:$0 sm:$0xff] (!%p1600_p5)  ;;  %352 = vst.msk [vmem:[#allocation2] sm:$0xff] (!%p1600_p5), %vm351_vm0, %v1601_v0 }
  0x11   : > { %360 = vst.msk [vmem:[#allocation3] sm:$0xff] (!%p1600_p5), %vm351_vm0, %v1602_v1 }
  0x15 PF: > { %v369_v2 = vld [vmem:[%s2246_s1] sm:$0xff]  ;;  %v370_v3 = vld [vmem:[%s2246_s1 + $0x8] sm:$0xff]  ;;  %vm378_vm1 = vcmask 130048   ;;  %v1955_v5 = vmov 0.0|0.0   ;;  %v518_v10 = vld [vmem:[%s2247_s2 + $0x10] sm:$0xff]  ;;  %vm1956_vm2 = vmmov 0  }
  0x16   : > { %v516_v4 = vld [vmem:[%s2247_s2] sm:$0xff]  ;;  %1805 = vmatprep.subr.bf16.mxu1 %v1955_v5  ;;  %v1801_v6 = vpack.c.bf16 %v370_v3, %v369_v2  ;;  %v517_v7 = vld [vmem:[%s2247_s2 + $0x8] sm:$0xff]  ;;  %v519_v11 = vld [vmem:[%s2247_s2 + $0x18] sm:$0xff]  ;;  %v1957_v12 = vmov 0.0   ;;  %vm537_vm3 = vcmask 261120   ;;  %s1958_s22 = smov 32  }
  0x17   : > { %v361_v8 = vld [vmem:[%s2027_s13] sm:$0xff]  ;;  %v2054_v9 = vpack.c.bf16 %v517_v7, %v516_v4  ;;  %1721 = vmatprep.mubr.msk.f32.mxu1 %vm1956_vm2, %v1957_v12  ;;  %v362_v13 = vld [vmem:[%s2027_s13 + $0x8] sm:$0xff]  ;;  %v2067_v14 = vpack.c.bf16 %v519_v11, %v518_v10  ;;  %s1959_s23 = smov 64  }
  0x18   : > { %1701 = vmatprep.mubr.msk.f32.mxu0 %vm378_vm1, %v361_v8  ;;  %1802 = vmatprep.subr.bf16.mxu0 %v1801_v6  ;;  %v534_v15 = vld [vmem:[#allocation2] sm:$0xff]  ;;  %v535_v45 = vld [vmem:[#allocation3] sm:$0xff] }
  0x19   : > { %1807 = vmatpush3.bf16.msra.mxu1 %v2054_v9  ;;  %1804 = vmatpush3.bf16.msra.mxu0 %v1801_v6  ;;  %v2088_v16 = vld [vmem:[%s2248_s3] ss:$0 sm:$0xff] }
  0x1a   : > { %1808 = vmatprep.subr.bf16.mxu1 %v1955_v5  ;;  %1817 = vmatprep.subr.bf16.mxu0 %v1955_v5  ;;  %v2094_v34 = vld [vmem:[%s2249_s4] ss:$0 sm:$0xff] }
  0x1b   : > { %v2099_v36 = vld [vmem:[%s2250_s5] ss:$0 sm:$0xff] }
  0x1c   : > { %1702 = vmatmul.mubr.msk.f32.vlgmr.msra.gmra.mrb[0].mxu0 %vm378_vm1, %v362_v13 }
  0x1d   : > { %1810 = vmatpush3.bf16.msra.mxu1 %v2067_v14  ;;  %1819 = vmatpush3.bf16.msra.mxu0 %v2054_v9 }
  0x1e   : > { %1811 = vmatprep.subr.bf16.mxu1 %v1955_v5  ;;  %1820 = vmatprep.subr.bf16.mxu0 %v1955_v5 }
  0x20   : > { %1722 = vmatmul.mubr.msk.f32.vlgmr.msra.gmra.mrb[0].mxu1 %vm537_vm3, %v534_v15 }
  0x21   : > { %1813 = vmatpush3.bf16.msra.mxu1 %v2054_v9  ;;  %1732 = vmatprep.mubr.msk.f32.mxu1 %vm1956_vm2, %v1957_v12 }
  0x22   : > { %1814 = vmatprep.subr.bf16.mxu1 %v1955_v5  ;;  %1822 = vmatpush3.bf16.msra.mxu0 %v2067_v14 }
  0x23   : > { %1829 = vmatprep.subr.bf16.mxu0 %v1955_v5 }
  0x25   : > { %1816 = vmatpush3.bf16.msra.mxu1 %v2067_v14 }
  0x26   : > { %1823 = vmatprep.subr.bf16.mxu1 %v1955_v5 }
  0xef   : > { %v1703_v17 = vpop.f32.mrb[0].mxu0 }
  0xf0   : > { %v469_v18 = vpop.f32.mrb[1].mxu0  ;;  %v475_v55 = vadd.f32 %v1703_v17, %v2088_v16 }
  0xf1   : > { %v470_v19 = vadd.f32 %v2088_v16, %v469_v18 }
  0xf3   : > { %v607_v20 = vpop.f32.mrb[0].mxu1 }
  0xf4   : > { %v611_v21 = vadd.f32 %v607_v20, %v470_v19  ;;  %v1723_v22 = vpop.f32.mrb[1].mxu1 }
  0xf5   : > { %v363_v22 = vld [vmem:[%s2027_s13 + $0x10] sm:$0xff] }
  0xf6   : > { %612 = vadd.xlane.f32.xlu0 %v611_v21  ;;  %v615_v23 = vmul.f32 %v611_v21, %v611_v21  ;;  %1704 = vmatprep.mubr.msk.f32.mxu0 %vm378_vm1, %v363_v22 }
  0xfa   : > { %616 = vadd.xlane.f32.xlu0 %v615_v23  ;;  %v364_v23 = vld [vmem:[%s2027_s13 + $0x18] sm:$0xff] }
  0xfb   : > { %1705 = vmatmul.mubr.msk.f32.gmra.mrb[2].mxu0 %vm378_vm1, %v364_v23 }
 0x183   : > { %v613_v24 = vpop.xlane.xlu0 %612 }
 0x184   : > { %v614_v25 = vmul.f32 0.0078125, %v613_v24  ;;  %v365_v24 = vld [vmem:[%s2027_s13 + $0x20] sm:$0xff] }
 0x185   : > { %1707 = vmatprep.mubr.msk.f32.mxu0 %vm378_vm1, %v365_v24 }
 0x186   : > { %v619_v27 = vmul.f32 %v614_v25, %v614_v25  ;;  %v622_v32 = vsub.f32 %v611_v21, %v614_v25  ;;  %v366_v25 = vld [vmem:[%s2027_s13 + $0x28] sm:$0xff] }
 0x187   : > { %v617_v26 = vpop.xlane.xlu0 %616  ;;  %1708 = vmatmul.mubr.msk.f32.gmra.mrb[4].mxu0 %vm378_vm1, %v366_v25 }
 0x188   : > { %v618_v28 = vmul.f32 0.0078125, %v617_v26  ;;  %v367_v26 = vld [vmem:[%s2027_s13 + $0x30] sm:$0xff] }
 0x189   : > { %1710 = vmatprep.mubr.msk.f32.mxu0 %vm378_vm1, %v367_v26 }
 0x18a   : > { %v620_v29 = vsub.f32 %v618_v28, %v619_v27  ;;  %v368_v28 = vld [vmem:[%s2027_s13 + $0x38] sm:$0xff]  ;;  %s1960_s13 = smov 96  }
 0x18b   : > { %1711 = vmatmul.mubr.msk.f32.gmra.mrb[6].mxu0 %vm378_vm1, %v368_v28 }
 0x18c   : > { %v621_v30 = vmax.f32 %v620_v29, 0.0  ;;  %1743 = vmatprep.mubr.msk.f32.mxu0 %vm1956_vm2, %v1957_v12 }
 0x18e   : > { %v623_v31 = vadd.f32 1e-06, %v621_v30 }
 0x190   : > { %1883 = vrsqrt.f32 %v623_v31 }
 0x19a   : > { %v1884_v33 = vpop.eup %1883 }
 0x19b   : > { %v625_v35 = vmul.f32 %v1884_v33, %v622_v32 }
 0x19d   : > { %v626_v37 = vmul.f32 %v2094_v34, %v625_v35 }
 0x19f   : > { %v627_v38 = vadd.f32 %v2099_v36, %v626_v37 }
 0x1a1   : > { %v1615_v39 = vmul.f32 -1.442695, %v627_v38 }
 0x1a3   : > { %1885 = vpow2.f32 %v1615_v39 }
 0x1ad   : > { %v1886_v40 = vpop.eup %1885 }
 0x1ae   : > { %v631_v41 = vadd.f32 1.0, %v1886_v40 }
 0x1b0   : > { %1887 = vrcp.f32 %v631_v41 }
 0x1ba   : > { %v1888_v42 = vpop.eup %1887 }
 0x1bb   : > { %v634_v43 = vmul.f32 2.0, %v1888_v42 }
 0x1bd   : > { %v1616_v44 = vadd.f32 -1.0, %v634_v43 }
 0x1bf   : > { %642 = vrot.lane.b32.xlu1 %v1616_v44, %s1958_s22 }
 0x1c3   : > { %637 = vrot.lane.b32.xlu1 %v535_v45, %s1958_s22 }
 0x1ce   : > { %v1706_v33 = vpop.f32.mrb[2].mxu0 }
 0x1cf   : > { %v479_v35 = vpop.f32.mrb[3].mxu0 }
 0x231   : > { %v643_v46 = vpop.permute.xlu1 %642 }
 0x232   : > { %v645_v47 = vmul.f32 %v1888_v42, %v643_v46 }
 0x234   : > { %647 = vrot.lane.b32.xlu0 %v645_v47, %s1958_s22 }
 0x235   : > { %v638_v48 = vpop.permute.xlu1 %637 }
 0x236   : > { %v640_v49 = vmul.f32 %v1888_v42, %v638_v48 }
 0x25a   : > { %v2138_v37 = vpop.f32.mrb[4].mxu0 }
 0x25b   : > { %v2140_v38 = vpop.f32.mrb[5].mxu0 }
 0x25e   : > { %v2142_v39 = vpop.f32.mrb[6].mxu0 }
 0x25f   : > { %v2144_v40 = vpop.f32.mrb[7].mxu0 }
 0x2a6   : > { %v648_v50 = vpop.permute.xlu0 %647 }
 0x2a7   : > { %v650_v51 = vadd.f32 %v648_v50, %v640_v49 }
 0x2a9   : > { %652 = vrot.lane.b32.xlu1 %v650_v51, %s1958_s22 }
 0x31b   : > { %v653_v52 = vpop.permute.xlu1 %652 }
 0x31c   : > { %v655_v53 = vmul.f32 %v1888_v42, %v653_v52  ;;  %v480_v42 = vadd.f32 %v2088_v16, %v479_v35 }
 0x31e   : > { %657 = vrot.lane.b32.xlu1 %v655_v53, %s1959_s23 }
 0x390   : > { %v658_v54 = vpop.permute.xlu1 %657 }
 0x391   : > { %660 = vst.msk [vmem:[%s2032_s16] sm:$0xff] %vm537_vm3, %v658_v54  ;;  %1733 = vmatmul.mubr.msk.f32.vlgmr.msra.gmra.mrb[2].mxu1 %vm537_vm3, %v658_v54 }
 0x392   : > { %1825 = vmatpush3.bf16.msra.mxu1 %v2054_v9  ;;  %1754 = vmatprep.mubr.msk.f32.mxu1 %vm1956_vm2, %v1957_v12 }
 0x393   : > { %1826 = vmatprep.subr.bf16.mxu1 %v1955_v5 }
 0x396   : > { %1828 = vmatpush3.bf16.msra.mxu1 %v2067_v14 }
 0x397   : > { %1835 = vmatprep.subr.bf16.mxu1 %v1955_v5 }
 0x464   : > { %v731_v56 = vpop.f32.mrb[2].mxu1 }
 0x465   : > { %v735_v57 = vadd.f32 %v731_v56, %v475_v55  ;;  %v1734_v58 = vpop.f32.mrb[3].mxu1 }
 0x467   : > { %736 = vadd.xlane.f32.xlu1 %v735_v57  ;;  %v739_v59 = vmul.f32 %v735_v57, %v735_v57 }
 0x469   : > { %740 = vadd.xlane.f32.xlu0 %v739_v59 }
 0x4f4   : > { %v737_v60 = vpop.xlane.xlu1 %736 }
 0x4f5   : > { %v738_v61 = vmul.f32 0.0078125, %v737_v60 }
 0x4f6   : > { %v741_v62 = vpop.xlane.xlu0 %740 }
 0x4f7   : > { %v743_v63 = vmul.f32 %v738_v61, %v738_v61  ;;  %v742_v0 = vmul.f32 0.0078125, %v741_v62  ;;  %v746_v4 = vsub.f32 %v735_v57, %v738_v61 }
 0x4f9   : > { %v744_v1 = vsub.f32 %v742_v0, %v743_v63 }
 0x4fb   : > { %v745_v2 = vmax.f32 %v744_v1, 0.0 }
 0x4fd   : > { %v747_v3 = vadd.f32 1e-06, %v745_v2 }
 0x4ff   : > { %1889 = vrsqrt.f32 %v747_v3 }
 0x509   : > { %v1890_v6 = vpop.eup %1889 }
 0x50a   : > { %v749_v7 = vmul.f32 %v1890_v6, %v746_v4 }
 0x50c   : > { %v750_v8 = vmul.f32 %v2094_v34, %v749_v7 }
 0x50e   : > { %v751_v10 = vadd.f32 %v2099_v36, %v750_v8 }
 0x510   : > { %v1618_v11 = vmul.f32 -1.442695, %v751_v10 }
 0x512   : > { %1891 = vpow2.f32 %v1618_v11 }
 0x51c   : > { %v1892_v13 = vpop.eup %1891 }
 0x51d   : > { %v755_v15 = vadd.f32 1.0, %v1892_v13  ;;  %v485_v13 = vadd.f32 %v1706_v33, %v2088_v16 }
 0x51f   : > { %1893 = vrcp.f32 %v755_v15 }
 0x529   : > { %v1894_v17 = vpop.eup %1893 }
 0x52a   : > { %v758_v18 = vmul.f32 2.0, %v1894_v17  ;;  %v760_v27 = vmul.f32 %v1894_v17, %v650_v51 }
 0x52c   : > { %v1619_v19 = vadd.f32 -1.0, %v758_v18 }
 0x52e   : > { %762 = vrot.lane.b32.xlu1 %v1619_v19, %s1958_s22 }
 0x5a0   : > { %v763_v20 = vpop.permute.xlu1 %762 }
 0x5a1   : > { %v765_v21 = vmul.f32 %v1894_v17, %v763_v20 }
 0x5a3   : > { %767 = vrot.lane.b32.xlu0 %v765_v21, %s1958_s22 }
 0x615   : > { %v768_v29 = vpop.permute.xlu0 %767 }
 0x616   : > { %v770_v30 = vadd.f32 %v768_v29, %v760_v27 }
 0x618   : > { %772 = vrot.lane.b32.xlu1 %v770_v30, %s1958_s22 }
 0x68a   : > { %v773_v31 = vpop.permute.xlu1 %772 }
 0x68b   : > { %v775_v32 = vmul.f32 %v1894_v17, %v773_v31 }
 0x68d   : > { %777 = vrot.lane.b32.xlu1 %v775_v32, %s1959_s23 }
 0x6ff   : > { %v778_v41 = vpop.permute.xlu1 %777 }
 0x700   : > { %1620 = vst.msk [vmem:[%s2032_s16 + $0x8] sm:$0xff] %vm537_vm3, %v778_v41  ;;  %1744 = vmatmul.mubr.msk.f32.vlgmr.msra.gmra.mrb[8].mxu0 %vm537_vm3, %v778_v41 }
 0x701   : > { %1831 = vmatpush3.bf16.msra.mxu0 %v2054_v9  ;;  %1765 = vmatprep.mubr.msk.f32.mxu0 %vm1956_vm2, %v1957_v12 }
 0x702   : > { %1832 = vmatprep.subr.bf16.mxu0 %v1955_v5 }
 0x705   : > { %1834 = vmatpush3.bf16.msra.mxu0 %v2067_v14 }
 0x706   : > { %1841 = vmatprep.subr.bf16.mxu0 %v1955_v5 }
 0x7d3   : > { %v852_v43 = vpop.f32.mrb[8].mxu0 }
 0x7d4   : > { %v856_v44 = vadd.f32 %v852_v43, %v480_v42  ;;  %v1745_v45 = vpop.f32.mrb[9].mxu0 }
 0x7d6   : > { %857 = vadd.xlane.f32.xlu1 %v856_v44  ;;  %v860_v46 = vmul.f32 %v856_v44, %v856_v44 }
 0x7d8   : > { %861 = vadd.xlane.f32.xlu0 %v860_v46 }
 0x863   : > { %v858_v47 = vpop.xlane.xlu1 %857 }
 0x864   : > { %v859_v48 = vmul.f32 0.0078125, %v858_v47 }
 0x865   : > { %v862_v49 = vpop.xlane.xlu0 %861 }
 0x866   : > { %v864_v50 = vmul.f32 %v859_v48, %v859_v48  ;;  %v863_v51 = vmul.f32 0.0078125, %v862_v49  ;;  %v867_v55 = vsub.f32 %v856_v44, %v859_v48 }
 0x868   : > { %v865_v52 = vsub.f32 %v863_v51, %v864_v50 }
 0x86a   : > { %v866_v53 = vmax.f32 %v865_v52, 0.0 }
 0x86c   : > { %v868_v54 = vadd.f32 1e-06, %v866_v53  ;;  %v490_v53 = vadd.f32 %v2088_v16, %v2140_v38 }
 0x86e   : > { %1895 = vrsqrt.f32 %v868_v54 }
 0x878   : > { %v1896_v56 = vpop.eup %1895 }
 0x879   : > { %v870_v57 = vmul.f32 %v1896_v56, %v867_v55 }
 0x87b   : > { %v871_v58 = vmul.f32 %v2094_v34, %v870_v57 }
 0x87d   : > { %v872_v59 = vadd.f32 %v2099_v36, %v871_v58 }
 0x87f   : > { %v1622_v60 = vmul.f32 -1.442695, %v872_v59 }
 0x881   : > { %1897 = vpow2.f32 %v1622_v60 }
 0x88b   : > { %v1898_v61 = vpop.eup %1897 }
 0x88c   : > { %v876_v62 = vadd.f32 1.0, %v1898_v61 }
 0x88e   : > { %1899 = vrcp.f32 %v876_v62 }
 0x898   : > { %v1900_v63 = vpop.eup %1899 }
 0x899   : > { %v879_v0 = vmul.f32 2.0, %v1900_v63  ;;  %v881_v4 = vmul.f32 %v1900_v63, %v770_v30 }
 0x89b   : > { %v1623_v1 = vadd.f32 -1.0, %v879_v0 }
 0x89d   : > { %883 = vrot.lane.b32.xlu1 %v1623_v1, %s1958_s22 }
 0x90f   : > { %v884_v2 = vpop.permute.xlu1 %883 }
 0x910   : > { %v886_v3 = vmul.f32 %v1900_v63, %v884_v2 }
 0x912   : > { %888 = vrot.lane.b32.xlu0 %v886_v3, %s1958_s22 }
 0x984   : > { %v889_v6 = vpop.permute.xlu0 %888 }
 0x985   : > { %v891_v7 = vadd.f32 %v889_v6, %v881_v4 }
 0x987   : > { %893 = vrot.lane.b32.xlu1 %v891_v7, %s1958_s22 }
 0x9f9   : > { %v894_v8 = vpop.permute.xlu1 %893 }
 0x9fa   : > { %v896_v10 = vmul.f32 %v1900_v63, %v894_v8 }
 0x9fc   : > { %898 = vrot.lane.b32.xlu1 %v896_v10, %s1959_s23 }
 0xa6e   : > { %v899_v11 = vpop.permute.xlu1 %898 }
 0xa6f   : > { %1624 = vst.msk [vmem:[%s2032_s16 + $0x10] sm:$0xff] %vm537_vm3, %v899_v11  ;;  %1755 = vmatmul.mubr.msk.f32.vlgmr.msra.gmra.mrb[4].mxu1 %vm537_vm3, %v899_v11 }
 0xa70   : > { %1837 = vmatpush3.bf16.msra.mxu1 %v2054_v9  ;;  %1776 = vmatprep.mubr.msk.f32.mxu1 %vm1956_vm2, %v1957_v12 }
 0xa71   : > { %1838 = vmatprep.subr.bf16.mxu1 %v1955_v5 }
 0xa74   : > { %1840 = vmatpush3.bf16.msra.mxu1 %v2067_v14 }
 0xa75   : > { %1847 = vmatprep.subr.bf16.mxu1 %v1955_v5 }
 0xb42   : > { %v973_v15 = vpop.f32.mrb[4].mxu1 }
 0xb43   : > { %v977_v17 = vadd.f32 %v973_v15, %v485_v13  ;;  %v1756_v18 = vpop.f32.mrb[5].mxu1 }
 0xb45   : > { %978 = vadd.xlane.f32.xlu0 %v977_v17  ;;  %v981_v19 = vmul.f32 %v977_v17, %v977_v17 }
 0xb47   : > { %982 = vadd.xlane.f32.xlu1 %v981_v19 }
 0xbd2   : > { %v979_v20 = vpop.xlane.xlu0 %978 }
 0xbd3   : > { %v980_v21 = vmul.f32 0.0078125, %v979_v20 }
 0xbd4   : > { %v983_v22 = vpop.xlane.xlu1 %982 }
 0xbd5   : > { %v985_v23 = vmul.f32 %v980_v21, %v980_v21  ;;  %v984_v24 = vmul.f32 0.0078125, %v983_v22  ;;  %v988_v28 = vsub.f32 %v977_v17, %v980_v21 }
 0xbd7   : > { %v986_v25 = vsub.f32 %v984_v24, %v985_v23 }
 0xbd9   : > { %v987_v26 = vmax.f32 %v986_v25, 0.0  ;;  %v495_v25 = vadd.f32 %v2138_v37, %v2088_v16 }
 0xbdb   : > { %v989_v27 = vadd.f32 1e-06, %v987_v26 }
 0xbdd   : > { %1901 = vrsqrt.f32 %v989_v27 }
 0xbe7   : > { %v1902_v29 = vpop.eup %1901 }
 0xbe8   : > { %v991_v30 = vmul.f32 %v1902_v29, %v988_v28 }
 0xbea   : > { %v992_v31 = vmul.f32 %v2094_v34, %v991_v30 }
 0xbec   : > { %v993_v32 = vadd.f32 %v2099_v36, %v992_v31 }
 0xbee   : > { %v1626_v33 = vmul.f32 -1.442695, %v993_v32 }
 0xbf0   : > { %1903 = vpow2.f32 %v1626_v33 }
 0xbfa   : > { %v1904_v35 = vpop.eup %1903 }
 0xbfb   : > { %v997_v41 = vadd.f32 1.0, %v1904_v35 }
 0xbfd   : > { %1905 = vrcp.f32 %v997_v41 }
 0xc07   : > { %v1906_v42 = vpop.eup %1905 }
 0xc08   : > { %v1000_v43 = vmul.f32 2.0, %v1906_v42  ;;  %v1002_v47 = vmul.f32 %v1906_v42, %v891_v7 }
 0xc0a   : > { %v1627_v44 = vadd.f32 -1.0, %v1000_v43 }
 0xc0c   : > { %1004 = vrot.lane.b32.xlu0 %v1627_v44, %s1958_s22 }
 0xc7e   : > { %v1005_v45 = vpop.permute.xlu0 %1004 }
 0xc7f   : > { %v1007_v46 = vmul.f32 %v1906_v42, %v1005_v45 }
 0xc81   : > { %1009 = vrot.lane.b32.xlu1 %v1007_v46, %s1958_s22 }
 0xcf3   : > { %v1010_v48 = vpop.permute.xlu1 %1009 }
 0xcf4   : > { %v1012_v49 = vadd.f32 %v1010_v48, %v1002_v47 }
 0xcf6   : > { %1014 = vrot.lane.b32.xlu0 %v1012_v49, %s1958_s22 }
 0xd68   : > { %v1015_v50 = vpop.permute.xlu0 %1014 }
 0xd69   : > { %v1017_v51 = vmul.f32 %v1906_v42, %v1015_v50 }
 0xd6b   : > { %1019 = vrot.lane.b32.xlu1 %v1017_v51, %s1959_s23 }
 0xddd   : > { %v1020_v52 = vpop.permute.xlu1 %1019 }
 0xdde   : > { %1628 = vst.msk [vmem:[%s2032_s16 + $0x18] sm:$0xff] %vm537_vm3, %v1020_v52  ;;  %1766 = vmatmul.mubr.msk.f32.vlgmr.msra.gmra.mrb[10].mxu0 %vm537_vm3, %v1020_v52 }
 0xddf   : > { %1843 = vmatpush3.bf16.msra.mxu0 %v2054_v9  ;;  %1787 = vmatprep.mubr.msk.f32.mxu0 %vm1956_vm2, %v1957_v12 }
 0xde0   : > { %1844 = vmatprep.subr.bf16.mxu0 %v1955_v5 }
 0xde3   : > { %1846 = vmatpush3.bf16.msra.mxu0 %v2067_v14 }
 0xeb1   : > { %v1094_v54 = vpop.f32.mrb[10].mxu0 }
 0xeb2   : > { %v1098_v55 = vadd.f32 %v1094_v54, %v490_v53  ;;  %v1767_v56 = vpop.f32.mrb[11].mxu0 }
 0xeb4   : > { %1099 = vadd.xlane.f32.xlu0 %v1098_v55  ;;  %v1102_v57 = vmul.f32 %v1098_v55, %v1098_v55 }
 0xeb6   : > { %1103 = vadd.xlane.f32.xlu1 %v1102_v57 }
 0xf41   : > { %v1100_v58 = vpop.xlane.xlu0 %1099 }
 0xf42   : > { %v1101_v59 = vmul.f32 0.0078125, %v1100_v58  ;;  %v500_v58 = vadd.f32 %v2088_v16, %v2144_v40 }
 0xf43   : > { %v1104_v60 = vpop.xlane.xlu1 %1103 }
 0xf44   : > { %v1106_v61 = vmul.f32 %v1101_v59, %v1101_v59  ;;  %v1105_v62 = vmul.f32 0.0078125, %v1104_v60  ;;  %v1109_v2 = vsub.f32 %v1098_v55, %v1101_v59 }
 0xf46   : > { %v1107_v63 = vsub.f32 %v1105_v62, %v1106_v61 }
 0xf48   : > { %v1108_v0 = vmax.f32 %v1107_v63, 0.0 }
 0xf4a   : > { %v1110_v1 = vadd.f32 1e-06, %v1108_v0 }
 0xf4c   : > { %1907 = vrsqrt.f32 %v1110_v1 }
 0xf56   : > { %v1908_v3 = vpop.eup %1907 }
 0xf57   : > { %v1112_v4 = vmul.f32 %v1908_v3, %v1109_v2 }
 0xf59   : > { %v1113_v38 = vmul.f32 %v2094_v34, %v1112_v4 }
 0xf5b   : > { %v1114_v6 = vadd.f32 %v2099_v36, %v1113_v38 }
 0xf5d   : > { %v1630_v7 = vmul.f32 -1.442695, %v1114_v6 }
 0xf5f   : > { %1909 = vpow2.f32 %v1630_v7 }
 0xf69   : > { %v1910_v8 = vpop.eup %1909 }
 0xf6a   : > { %v1118_v10 = vadd.f32 1.0, %v1910_v8 }
 0xf6c   : > { %1911 = vrcp.f32 %v1118_v10 }
 0xf76   : > { %v1912_v11 = vpop.eup %1911 }
 0xf77   : > { %v1121_v13 = vmul.f32 2.0, %v1912_v11  ;;  %v1123_v19 = vmul.f32 %v1912_v11, %v1012_v49 }
 0xf79   : > { %v1631_v15 = vadd.f32 -1.0, %v1121_v13 }
 0xf7b   : > { %1125 = vrot.lane.b32.xlu0 %v1631_v15, %s1958_s22 }
 0xfed   : > { %v1126_v17 = vpop.permute.xlu0 %1125 }
 0xfee   : > { %v1128_v18 = vmul.f32 %v1912_v11, %v1126_v17 }
 0xff0   : > { %1130 = vrot.lane.b32.xlu1 %v1128_v18, %s1958_s22 }
0x1062   : > { %v1131_v20 = vpop.permute.xlu1 %1130 }
0x1063   : > { %v1133_v21 = vadd.f32 %v1131_v20, %v1123_v19 }
0x1065   : > { %1135 = vrot.lane.b32.xlu0 %v1133_v21, %s1958_s22 }
0x10d7   : > { %v1136_v22 = vpop.permute.xlu0 %1135 }
0x10d8   : > { %v1138_v23 = vmul.f32 %v1912_v11, %v1136_v22 }
0x10da   : > { %1140 = vrot.lane.b32.xlu1 %v1138_v23, %s1959_s23 }
0x114c   : > { %v1141_v24 = vpop.permute.xlu1 %1140 }
0x114d   : > { %1632 = vst.msk [vmem:[%s2032_s16 + $0x20] sm:$0xff] %vm537_vm3, %v1141_v24  ;;  %1777 = vmatmul.mubr.msk.f32.vlgmr.msra.gmra.mrb[6].mxu1 %vm537_vm3, %v1141_v24 }
0x114e   : > { %1849 = vmatpush3.bf16.msra.mxu1 %v2054_v9  ;;  %1798 = vmatprep.mubr.msk.f32.mxu1 %vm1956_vm2, %v1957_v12 }
0x114f   : > { %1850 = vmatprep.subr.bf16.mxu1 %v1955_v5 }
0x1152   : > { %1852 = vmatpush3.bf16.msra.mxu1 %v2067_v14 }
0x1220   : > { %v1215_v26 = vpop.f32.mrb[6].mxu1 }
0x1221   : > { %v1219_v27 = vadd.f32 %v1215_v26, %v495_v25  ;;  %v1778_v28 = vpop.f32.mrb[7].mxu1 }
0x1223   : > { %1220 = vadd.xlane.f32.xlu0 %v1219_v27  ;;  %v1223_v29 = vmul.f32 %v1219_v27, %v1219_v27 }
0x1225   : > { %1224 = vadd.xlane.f32.xlu1 %v1223_v29  ;;  %v505_v29 = vadd.f32 %v2142_v39, %v2088_v16 }
0x12b0   : > { %v1221_v30 = vpop.xlane.xlu0 %1220 }
0x12b1   : > { %v1222_v31 = vmul.f32 0.0078125, %v1221_v30 }
0x12b2   : > { %v1225_v32 = vpop.xlane.xlu1 %1224 }
0x12b3   : > { %v1227_v9 = vmul.f32 %v1222_v31, %v1222_v31  ;;  %v1226_v33 = vmul.f32 0.0078125, %v1225_v32  ;;  %v1230_v5 = vsub.f32 %v1219_v27, %v1222_v31 }
0x12b5   : > { %v1228_v35 = vsub.f32 %v1226_v33, %v1227_v9 }
0x12b7   : > { %v1229_v12 = vmax.f32 %v1228_v35, 0.0 }
0x12b9   : > { %v1231_v41 = vadd.f32 1e-06, %v1229_v12 }
0x12bb   : > { %1913 = vrsqrt.f32 %v1231_v41 }
0x12c5   : > { %v1914_v14 = vpop.eup %1913 }
0x12c6   : > { %v1233_v42 = vmul.f32 %v1914_v14, %v1230_v5 }
0x12c8   : > { %v1234_v37 = vmul.f32 %v2094_v34, %v1233_v42 }
0x12ca   : > { %v1235_v43 = vadd.f32 %v2099_v36, %v1234_v37 }
0x12cc   : > { %v1634_v44 = vmul.f32 -1.442695, %v1235_v43 }
0x12ce   : > { %1915 = vpow2.f32 %v1634_v44 }
0x12d8   : > { %v1916_v45 = vpop.eup %1915 }
0x12d9   : > { %v1239_v46 = vadd.f32 1.0, %v1916_v45 }
0x12db   : > { %1917 = vrcp.f32 %v1239_v46 }
0x12e5   : > { %v1918_v47 = vpop.eup %1917 }
0x12e6   : > { %v1242_v48 = vmul.f32 2.0, %v1918_v47  ;;  %v1244_v52 = vmul.f32 %v1918_v47, %v1133_v21 }
0x12e8   : > { %v1635_v49 = vadd.f32 -1.0, %v1242_v48 }
0x12ea   : > { %1246 = vrot.lane.b32.xlu0 %v1635_v49, %s1958_s22 }
0x135c   : > { %v1247_v50 = vpop.permute.xlu0 %1246 }
0x135d   : > { %v1249_v51 = vmul.f32 %v1918_v47, %v1247_v50 }
0x135f   : > { %1251 = vrot.lane.b32.xlu1 %v1249_v51, %s1958_s22 }
0x13d1   : > { %v1252_v53 = vpop.permute.xlu1 %1251 }
0x13d2   : > { %v1254_v54 = vadd.f32 %v1252_v53, %v1244_v52 }
0x13d4   : > { %1256 = vrot.lane.b32.xlu0 %v1254_v54, %s1958_s22 }
0x1446   : > { %v1257_v55 = vpop.permute.xlu0 %1256 }
0x1447   : > { %v1259_v56 = vmul.f32 %v1918_v47, %v1257_v55 }
0x1449   : > { %1261 = vrot.lane.b32.xlu1 %v1259_v56, %s1959_s23 }
0x14bb   : > { %v1262_v57 = vpop.permute.xlu1 %1261 }
0x14bc   : > { %1636 = vst.msk [vmem:[%s2032_s16 + $0x28] sm:$0xff] %vm537_vm3, %v1262_v57  ;;  %1788 = vmatmul.mubr.msk.f32.vlgmr.msra.gmra.mrb[12].mxu0 %vm537_vm3, %v1262_v57 }
0x158f   : > { %v1336_v59 = vpop.f32.mrb[12].mxu0 }
0x1590   : > { %v1340_v60 = vadd.f32 %v1336_v59, %v500_v58  ;;  %v1789_v61 = vpop.f32.mrb[13].mxu0 }
0x1592   : > { %1341 = vadd.xlane.f32.xlu0 %v1340_v60  ;;  %v1344_v62 = vmul.f32 %v1340_v60, %v1340_v60 }
0x1594   : > { %1345 = vadd.xlane.f32.xlu1 %v1344_v62 }
0x161f   : > { %v1342_v63 = vpop.xlane.xlu0 %1341 }
0x1620   : > { %v1343_v0 = vmul.f32 0.0078125, %v1342_v63 }
0x1621   : > { %v1346_v1 = vpop.xlane.xlu1 %1345 }
0x1622   : > { %v1348_v2 = vmul.f32 %v1343_v0, %v1343_v0  ;;  %v1347_v3 = vmul.f32 0.0078125, %v1346_v1  ;;  %v1351_v7 = vsub.f32 %v1340_v60, %v1343_v0 }
0x1624   : > { %v1349_v4 = vsub.f32 %v1347_v3, %v1348_v2 }
0x1626   : > { %v1350_v38 = vmax.f32 %v1349_v4, 0.0 }
0x1628   : > { %v1352_v6 = vadd.f32 1e-06, %v1350_v38 }
0x162a   : > { %1919 = vrsqrt.f32 %v1352_v6 }
0x1634   : > { %v1920_v8 = vpop.eup %1919 }
0x1635   : > { %v1354_v10 = vmul.f32 %v1920_v8, %v1351_v7 }
0x1637   : > { %v1355_v40 = vmul.f32 %v2094_v34, %v1354_v10 }
0x1639   : > { %v1356_v11 = vadd.f32 %v2099_v36, %v1355_v40 }
0x163b   : > { %v1638_v13 = vmul.f32 -1.442695, %v1356_v11 }
0x163d   : > { %1921 = vpow2.f32 %v1638_v13 }
0x1647   : > { %v1922_v15 = vpop.eup %1921 }
0x1648   : > { %v1360_v17 = vadd.f32 1.0, %v1922_v15 }
0x164a   : > { %1923 = vrcp.f32 %v1360_v17 }
0x1654   : > { %v1924_v18 = vpop.eup %1923 }
0x1655   : > { %v1363_v19 = vmul.f32 2.0, %v1924_v18  ;;  %v1365_v23 = vmul.f32 %v1924_v18, %v1254_v54 }
0x1657   : > { %v1639_v20 = vadd.f32 -1.0, %v1363_v19 }
0x1659   : > { %1367 = vrot.lane.b32.xlu0 %v1639_v20, %s1958_s22 }
0x16cb   : > { %v1368_v21 = vpop.permute.xlu0 %1367 }
0x16cc   : > { %v1370_v22 = vmul.f32 %v1924_v18, %v1368_v21 }
0x16ce   : > { %1372 = vrot.lane.b32.xlu1 %v1370_v22, %s1958_s22 }
0x1740   : > { %v1373_v24 = vpop.permute.xlu1 %1372 }
0x1741   : > { %v1375_v25 = vadd.f32 %v1373_v24, %v1365_v23 }
0x1743   : > { %1377 = vrot.lane.b32.xlu0 %v1375_v25, %s1958_s22 }
0x17b5   : > { %v1378_v26 = vpop.permute.xlu0 %1377 }
0x17b6   : > { %v1380_v27 = vmul.f32 %v1924_v18, %v1378_v26 }
0x17b8   : > { %1382 = vrot.lane.b32.xlu1 %v1380_v27, %s1959_s23 }
0x182a   : > { %v1383_v28 = vpop.permute.xlu1 %1382 }
0x182b   : > { %1640 = vst.msk [vmem:[%s2032_s16 + $0x30] sm:$0xff] %vm537_vm3, %v1383_v28  ;;  %1799 = vmatmul.mubr.msk.f32.vlgmr.msra.gmra.mrb[8].mxu1 %vm537_vm3, %v1383_v28 }
0x18fe   : > { %v1457_v30 = vpop.f32.mrb[8].mxu1 }
0x18ff   : > { %v1461_v31 = vadd.f32 %v1457_v30, %v505_v29  ;;  %v1800_v32 = vpop.f32.mrb[9].mxu1 }
0x1901   : > { %1462 = vadd.xlane.f32.xlu0 %v1461_v31  ;;  %v1465_v9 = vmul.f32 %v1461_v31, %v1461_v31 }
0x1903   : > { %1466 = vadd.xlane.f32.xlu1 %v1465_v9 }
0x198e   : > { %v1463_v33 = vpop.xlane.xlu0 %1462 }
0x198f   : > { %v1464_v35 = vmul.f32 0.0078125, %v1463_v33 }
0x1990   : > { %v1467_v12 = vpop.xlane.xlu1 %1466 }
0x1991   : > { %v1469_v41 = vmul.f32 %v1464_v35, %v1464_v35  ;;  %v1468_v5 = vmul.f32 0.0078125, %v1467_v12  ;;  %v1472_v43 = vsub.f32 %v1461_v31, %v1464_v35 }
0x1993   : > { %v1470_v14 = vsub.f32 %v1468_v5, %v1469_v41 }
0x1995   : > { %v1471_v42 = vmax.f32 %v1470_v14, 0.0 }
0x1997   : > { %v1473_v37 = vadd.f32 1e-06, %v1471_v42 }
0x1999   : > { %1925 = vrsqrt.f32 %v1473_v37 }
0x19a3   : > { %v1926_v44 = vpop.eup %1925 }
0x19a4   : > { %v1475_v45 = vmul.f32 %v1926_v44, %v1472_v43 }
0x19a6   : > { %v1476_v16 = vmul.f32 %v2094_v34, %v1475_v45 }
0x19a8   : > { %v1477_v39 = vadd.f32 %v2099_v36, %v1476_v16 }
0x19aa   : > { %v1642_v46 = vmul.f32 -1.442695, %v1477_v39 }
0x19ac   : > { %1927 = vpow2.f32 %v1642_v46 }
0x19b6   : > { %v1928_v47 = vpop.eup %1927 }
0x19b7   : > { %v1481_v48 = vadd.f32 1.0, %v1928_v47 }
0x19b9   : > { %1929 = vrcp.f32 %v1481_v48 }
0x19c3   : > { %v1930_v49 = vpop.eup %1929 }
0x19c4   : > { %v1484_v50 = vmul.f32 2.0, %v1930_v49  ;;  %v1486_v54 = vmul.f32 %v1930_v49, %v1375_v25 }
0x19c6   : > { %v1643_v51 = vadd.f32 -1.0, %v1484_v50 }
0x19c8   : > { %1488 = vrot.lane.b32.xlu0 %v1643_v51, %s1958_s22 }
0x1a3a   : > { %v1489_v52 = vpop.permute.xlu0 %1488 }
0x1a3b   : > { %v1491_v53 = vmul.f32 %v1930_v49, %v1489_v52 }
0x1a3d   : > { %1493 = vrot.lane.b32.xlu1 %v1491_v53, %s1958_s22 }
0x1aaf   : > { %v1494_v55 = vpop.permute.xlu1 %1493 }
0x1ab0   : > { %v1496_v34 = vadd.f32 %v1494_v55, %v1486_v54 }
0x1ab2   : > { %1498 = vrot.lane.b32.xlu0 %v1496_v34, %s1958_s22 }
0x1ab6   : > { %1509 = vrot.lane.b32.xlu0 %v1496_v34, %s1960_s13 }
0x1b24   : > { %v1499_v36 = vpop.permute.xlu0 %1498 }
0x1b25   : > { %v1501_v56 = vmul.f32 %v1930_v49, %v1499_v36 }
0x1b27   : > { %1503 = vrot.lane.b32.xlu1 %v1501_v56, %s1959_s23 }
0x1b28   : > { %v1510_v57 = vpop.permute.xlu0 %1509 }
0x1b29   : > { %1512 = vst.msk [vmem:[#allocation3] sm:$0xff] %vm537_vm3, %v1510_v57 }
0x1b99   : > { %v1504_v58 = vpop.permute.xlu1 %1503 }
0x1b9a   : > { %1644 = vst.msk [vmem:[%s2032_s16 + $0x38] sm:$0xff] %vm537_vm3, %v1504_v58  ;;  %1508 = vst.msk [vmem:[#allocation2] sm:$0xff] %vm537_vm3, %v1504_v58 }
0x1b9b PF: > { %s18_s29 = sadd.s32 1, %s1953_s29   ;;  %s2254_s27 = smov %s1949_s28 }
0x1b9c   : > { %p15_p6 = scmp.ge.s32.totalorder %s18_s29, 4   ;;  %s2255_s28 = smov %s2257_s30 }
0x1b9e   :  { %17 = sbr.rel (!%p15_p6) target bundleno = 2 (0x2), region = 100 }

// kernel: _forward_impl.1
= control target key start
LH: loop header
LB: loop body
LE: loop exit
PB: predicated region body
PF: predicated region fallthrough
CT: control target
= control target key end

     0   :  { %s2006_s27 = smov 0   ;;  %s2008_s28 = smov 0   ;;  %s2245_s0 = inlined_call_operand.vmem [shape: f32[16,8,16], index: 0, kind: input, shape index: {}]   ;;  %s2246_s1 = inlined_call_operand.vmem [shape: f32[16,128], index: 1, kind: input, shape index: {}]   ;;  %s2247_s2 = inlined_call_operand.vmem [shape: f32[32,128], index: 2, kind: input, shape index: {}]   ;;  %s2248_s3 = inlined_call_operand.vmem [shape: f32[1,128], index: 3, kind: input, shape index: {}]   ;;  %s2249_s4 = inlined_call_operand.vmem [shape: f32[1,128], index: 4, kind: input, shape index: {}]   ;;  %s2250_s5 = inlined_call_operand.vmem [shape: f32[1,128], index: 5, kind: input, shape index: {}]   ;;  %s2251_s6 = inlined_call_operand.vmem [shape: f32[1,32], index: 6, kind: input, shape index: {}]   ;;  %s2252_s7 = inlined_call_operand.vmem [shape: f32[1,32], index: 7, kind: input, shape index: {}]   ;;  %s2253_s8 = inlined_call_operand.vmem [shape: f32[16,8,32], index: 8, kind: output, shape index: {}]  }
   0x1   :  { %s2010_s29 = smov 0  }
   0x2 LB: > { %s27_s30 = sadd.s32 1, %s1949_s28  ;;  %p1595_p0 = scmp.ge.s32.totalorder %s1953_s29, 1  ;;  %s1953_s29 = sphi %s2010_s29, %s18_s29   ;;  %s1949_s28 = sphi %s2008_s28, %s2255_s28   ;;  %s1945_s27 = sphi %s2006_s27, %s2254_s27  }
   0x3   : > { %p28_p1 = scmp.ge.s32.totalorder %s27_s30, 2  ;;  %p282_p2 = scmp.lt.s32.totalorder %s1953_s29, 3 }
   0x5   : > { %s2257_s30 = smov (%p28_p1, %s27_s30), 0  ;;  %p283_p3 = pnand %p1595_p0, %p282_p2 }
   0x6   : > { %s1596_s9 = sshll.u32 (!%p283_p3), %s1945_s27, 3  ;;  %p1600_p5 = scmp.ne.s32.totalorder (!%p283_p3), %s1945_s27, 0 }
   0x7   : > { %286 = sbr.rel (%p283_p3) target bundleno = 7067 (0x1b9b), region = 52  ;;  %p323_p4 = scmp.lt.s32.totalorder (!%p283_p3), %s1596_s9, 15 }
   0xe   : > { %s2259_s9 = smov (!%p323_p4, %s1596_s9), 15  ;;  %343 = sbr.rel (%p1600_p5) target bundleno = 21 (0x15), region = 56 }
   0xf   : > { %s1597_s10 = sshll.u32 %s2259_s9, 3  ;;  %v1601_v0 = vld [vmem:[%s2251_s6] ss:$0 sm:$0xff] (!%p1600_p5)  ;;  %vm351_vm0 = vcmask (!%p1600_p5), 261120  }
  0x10   : > { %s2027_s13 = scalar_lea.vmem %s2245_s0, %s1597_s10  ;;  %s2032_s16 = scalar_lea.vmem %s2253_s8, %s1597_s10  ;;  %v1602_v1 = vld [vmem:[%s2252_s7] ss:$0 sm:$0xff] (!%p1600_p5)  ;;  %352 = vst.msk [vmem:[#allocation2] sm:$0xff] (!%p1600_p5), %vm351_vm0, %v1601_v0 }
  0x11   : > { %360 = vst.msk [vmem:[#allocation3] sm:$0xff] (!%p1600_p5), %vm351_vm0, %v1602_v1 }
  0x15 PF: > { %v369_v2 = vld [vmem:[%s2246_s1] sm:$0xff]  ;;  %v370_v3 = vld [vmem:[%s2246_s1 + $0x8] sm:$0xff]  ;;  %vm378_vm1 = vcmask 130048   ;;  %v1955_v5 = vmov 0.0|0.0   ;;  %v518_v10 = vld [vmem:[%s2247_s2 + $0x10] sm:$0xff]  ;;  %vm1956_vm2 = vmmov 0  }
  0x16   : > { %v516_v4 = vld [vmem:[%s2247_s2] sm:$0xff]  ;;  %1805 = vmatprep.subr.bf16.mxu1 %v1955_v5  ;;  %v1801_v6 = vpack.c.bf16 %v370_v3, %v369_v2  ;;  %v517_v7 = vld [vmem:[%s2247_s2 + $0x8] sm:$0xff]  ;;  %v519_v11 = vld [vmem:[%s2247_s2 + $0x18] sm:$0xff]  ;;  %v1957_v12 = vmov 0.0   ;;  %vm537_vm3 = vcmask 261120   ;;  %s1958_s22 = smov 32  }
  0x17   : > { %v361_v8 = vld [vmem:[%s2027_s13] sm:$0xff]  ;;  %v2054_v9 = vpack.c.bf16 %v517_v7, %v516_v4  ;;  %1721 = vmatprep.mubr.msk.f32.mxu1 %vm1956_vm2, %v1957_v12  ;;  %v362_v13 = vld [vmem:[%s2027_s13 + $0x8] sm:$0xff]  ;;  %v2067_v14 = vpack.c.bf16 %v519_v11, %v518_v10  ;;  %s1959_s23 = smov 64  }
  0x18   : > { %1701 = vmatprep.mubr.msk.f32.mxu0 %vm378_vm1, %v361_v8  ;;  %1802 = vmatprep.subr.bf16.mxu0 %v1801_v6  ;;  %v534_v15 = vld [vmem:[#allocation2] sm:$0xff]  ;;  %v535_v45 = vld [vmem:[#allocation3] sm:$0xff] }
  0x19   : > { %1807 = vmatpush3.bf16.msra.mxu1 %v2054_v9  ;;  %1804 = vmatpush3.bf16.msra.mxu0 %v1801_v6  ;;  %v2088_v16 = vld [vmem:[%s2248_s3] ss:$0 sm:$0xff] }
  0x1a   : > { %1808 = vmatprep.subr.bf16.mxu1 %v1955_v5  ;;  %1817 = vmatprep.subr.bf16.mxu0 %v1955_v5  ;;  %v2094_v34 = vld [vmem:[%s2249_s4] ss:$0 sm:$0xff] }
  0x1b   : > { %v2099_v36 = vld [vmem:[%s2250_s5] ss:$0 sm:$0xff] }
  0x1c   : > { %1702 = vmatmul.mubr.msk.f32.vlgmr.msra.gmra.mrb[0].mxu0 %vm378_vm1, %v362_v13 }
  0x1d   : > { %1810 = vmatpush3.bf16.msra.mxu1 %v2067_v14  ;;  %1819 = vmatpush3.bf16.msra.mxu0 %v2054_v9 }
  0x1e   : > { %1811 = vmatprep.subr.bf16.mxu1 %v1955_v5  ;;  %1820 = vmatprep.subr.bf16.mxu0 %v1955_v5 }
  0x20   : > { %1722 = vmatmul.mubr.msk.f32.vlgmr.msra.gmra.mrb[0].mxu1 %vm537_vm3, %v534_v15 }
  0x21   : > { %1813 = vmatpush3.bf16.msra.mxu1 %v2054_v9  ;;  %1732 = vmatprep.mubr.msk.f32.mxu1 %vm1956_vm2, %v1957_v12 }
  0x22   : > { %1814 = vmatprep.subr.bf16.mxu1 %v1955_v5  ;;  %1822 = vmatpush3.bf16.msra.mxu0 %v2067_v14 }
  0x23   : > { %1829 = vmatprep.subr.bf16.mxu0 %v1955_v5 }
  0x25   : > { %1816 = vmatpush3.bf16.msra.mxu1 %v2067_v14 }
  0x26   : > { %1823 = vmatprep.subr.bf16.mxu1 %v1955_v5 }
  0xef   : > { %v1703_v17 = vpop.f32.mrb[0].mxu0 }
  0xf0   : > { %v469_v18 = vpop.f32.mrb[1].mxu0  ;;  %v475_v55 = vadd.f32 %v1703_v17, %v2088_v16 }
  0xf1   : > { %v470_v19 = vadd.f32 %v2088_v16, %v469_v18 }
  0xf3   : > { %v607_v20 = vpop.f32.mrb[0].mxu1 }
  0xf4   : > { %v611_v21 = vadd.f32 %v607_v20, %v470_v19  ;;  %v1723_v22 = vpop.f32.mrb[1].mxu1 }
  0xf5   : > { %v363_v22 = vld [vmem:[%s2027_s13 + $0x10] sm:$0xff] }
  0xf6   : > { %612 = vadd.xlane.f32.xlu0 %v611_v21  ;;  %v615_v23 = vmul.f32 %v611_v21, %v611_v21  ;;  %1704 = vmatprep.mubr.msk.f32.mxu0 %vm378_vm1, %v363_v22 }
  0xfa   : > { %616 = vadd.xlane.f32.xlu0 %v615_v23  ;;  %v364_v23 = vld [vmem:[%s2027_s13 + $0x18] sm:$0xff] }
  0xfb   : > { %1705 = vmatmul.mubr.msk.f32.gmra.mrb[2].mxu0 %vm378_vm1, %v364_v23 }
 0x183   : > { %v613_v24 = vpop.xlane.xlu0 %612 }
 0x184   : > { %v614_v25 = vmul.f32 0.0078125, %v613_v24  ;;  %v365_v24 = vld [vmem:[%s2027_s13 + $0x20] sm:$0xff] }
 0x185   : > { %1707 = vmatprep.mubr.msk.f32.mxu0 %vm378_vm1, %v365_v24 }
 0x186   : > { %v619_v27 = vmul.f32 %v614_v25, %v614_v25  ;;  %v622_v32 = vsub.f32 %v611_v21, %v614_v25  ;;  %v366_v25 = vld [vmem:[%s2027_s13 + $0x28] sm:$0xff] }
 0x187   : > { %v617_v26 = vpop.xlane.xlu0 %616  ;;  %1708 = vmatmul.mubr.msk.f32.gmra.mrb[4].mxu0 %vm378_vm1, %v366_v25 }
 0x188   : > { %v618_v28 = vmul.f32 0.0078125, %v617_v26  ;;  %v367_v26 = vld [vmem:[%s2027_s13 + $0x30] sm:$0xff] }
 0x189   : > { %1710 = vmatprep.mubr.msk.f32.mxu0 %vm378_vm1, %v367_v26 }
 0x18a   : > { %v620_v29 = vsub.f32 %v618_v28, %v619_v27  ;;  %v368_v28 = vld [vmem:[%s2027_s13 + $0x38] sm:$0xff]  ;;  %s1960_s13 = smov 96  }
 0x18b   : > { %1711 = vmatmul.mubr.msk.f32.gmra.mrb[6].mxu0 %vm378_vm1, %v368_v28 }
 0x18c   : > { %v621_v30 = vmax.f32 %v620_v29, 0.0  ;;  %1743 = vmatprep.mubr.msk.f32.mxu0 %vm1956_vm2, %v1957_v12 }
 0x18e   : > { %v623_v31 = vadd.f32 1e-06, %v621_v30 }
 0x190   : > { %1883 = vrsqrt.f32 %v623_v31 }
 0x19a   : > { %v1884_v33 = vpop.eup %1883 }
 0x19b   : > { %v625_v35 = vmul.f32 %v1884_v33, %v622_v32 }
 0x19d   : > { %v626_v37 = vmul.f32 %v2094_v34, %v625_v35 }
 0x19f   : > { %v627_v38 = vadd.f32 %v2099_v36, %v626_v37 }
 0x1a1   : > { %v1615_v39 = vmul.f32 -1.442695, %v627_v38 }
 0x1a3   : > { %1885 = vpow2.f32 %v1615_v39 }
 0x1ad   : > { %v1886_v40 = vpop.eup %1885 }
 0x1ae   : > { %v631_v41 = vadd.f32 1.0, %v1886_v40 }
 0x1b0   : > { %1887 = vrcp.f32 %v631_v41 }
 0x1ba   : > { %v1888_v42 = vpop.eup %1887 }
 0x1bb   : > { %v634_v43 = vmul.f32 2.0, %v1888_v42 }
 0x1bd   : > { %v1616_v44 = vadd.f32 -1.0, %v634_v43 }
 0x1bf   : > { %642 = vrot.lane.b32.xlu1 %v1616_v44, %s1958_s22 }
 0x1c3   : > { %637 = vrot.lane.b32.xlu1 %v535_v45, %s1958_s22 }
 0x1ce   : > { %v1706_v33 = vpop.f32.mrb[2].mxu0 }
 0x1cf   : > { %v479_v35 = vpop.f32.mrb[3].mxu0 }
 0x231   : > { %v643_v46 = vpop.permute.xlu1 %642 }
 0x232   : > { %v645_v47 = vmul.f32 %v1888_v42, %v643_v46 }
 0x234   : > { %647 = vrot.lane.b32.xlu0 %v645_v47, %s1958_s22 }
 0x235   : > { %v638_v48 = vpop.permute.xlu1 %637 }
 0x236   : > { %v640_v49 = vmul.f32 %v1888_v42, %v638_v48 }
 0x25a   : > { %v2138_v37 = vpop.f32.mrb[4].mxu0 }
 0x25b   : > { %v2140_v38 = vpop.f32.mrb[5].mxu0 }
 0x25e   : > { %v2142_v39 = vpop.f32.mrb[6].mxu0 }
 0x25f   : > { %v2144_v40 = vpop.f32.mrb[7].mxu0 }
 0x2a6   : > { %v648_v50 = vpop.permute.xlu0 %647 }
 0x2a7   : > { %v650_v51 = vadd.f32 %v648_v50, %v640_v49 }
 0x2a9   : > { %652 = vrot.lane.b32.xlu1 %v650_v51, %s1958_s22 }
 0x31b   : > { %v653_v52 = vpop.permute.xlu1 %652 }
 0x31c   : > { %v655_v53 = vmul.f32 %v1888_v42, %v653_v52  ;;  %v480_v42 = vadd.f32 %v2088_v16, %v479_v35 }
 0x31e   : > { %657 = vrot.lane.b32.xlu1 %v655_v53, %s1959_s23 }
 0x390   : > { %v658_v54 = vpop.permute.xlu1 %657 }
 0x391   : > { %660 = vst.msk [vmem:[%s2032_s16] sm:$0xff] %vm537_vm3, %v658_v54  ;;  %1733 = vmatmul.mubr.msk.f32.vlgmr.msra.gmra.mrb[2].mxu1 %vm537_vm3, %v658_v54 }
 0x392   : > { %1825 = vmatpush3.bf16.msra.mxu1 %v2054_v9  ;;  %1754 = vmatprep.mubr.msk.f32.mxu1 %vm1956_vm2, %v1957_v12 }
 0x393   : > { %1826 = vmatprep.subr.bf16.mxu1 %v1955_v5 }
 0x396   : > { %1828 = vmatpush3.bf16.msra.mxu1 %v2067_v14 }
 0x397   : > { %1835 = vmatprep.subr.bf16.mxu1 %v1955_v5 }
 0x464   : > { %v731_v56 = vpop.f32.mrb[2].mxu1 }
 0x465   : > { %v735_v57 = vadd.f32 %v731_v56, %v475_v55  ;;  %v1734_v58 = vpop.f32.mrb[3].mxu1 }
 0x467   : > { %736 = vadd.xlane.f32.xlu1 %v735_v57  ;;  %v739_v59 = vmul.f32 %v735_v57, %v735_v57 }
 0x469   : > { %740 = vadd.xlane.f32.xlu0 %v739_v59 }
 0x4f4   : > { %v737_v60 = vpop.xlane.xlu1 %736 }
 0x4f5   : > { %v738_v61 = vmul.f32 0.0078125, %v737_v60 }
 0x4f6   : > { %v741_v62 = vpop.xlane.xlu0 %740 }
 0x4f7   : > { %v743_v63 = vmul.f32 %v738_v61, %v738_v61  ;;  %v742_v0 = vmul.f32 0.0078125, %v741_v62  ;;  %v746_v4 = vsub.f32 %v735_v57, %v738_v61 }
 0x4f9   : > { %v744_v1 = vsub.f32 %v742_v0, %v743_v63 }
 0x4fb   : > { %v745_v2 = vmax.f32 %v744_v1, 0.0 }
 0x4fd   : > { %v747_v3 = vadd.f32 1e-06, %v745_v2 }
 0x4ff   : > { %1889 = vrsqrt.f32 %v747_v3 }
 0x509   : > { %v1890_v6 = vpop.eup %1889 }
 0x50a   : > { %v749_v7 = vmul.f32 %v1890_v6, %v746_v4 }
 0x50c   : > { %v750_v8 = vmul.f32 %v2094_v34, %v749_v7 }
 0x50e   : > { %v751_v10 = vadd.f32 %v2099_v36, %v750_v8 }
 0x510   : > { %v1618_v11 = vmul.f32 -1.442695, %v751_v10 }
 0x512   : > { %1891 = vpow2.f32 %v1618_v11 }
 0x51c   : > { %v1892_v13 = vpop.eup %1891 }
 0x51d   : > { %v755_v15 = vadd.f32 1.0, %v1892_v13  ;;  %v485_v13 = vadd.f32 %v1706_v33, %v2088_v16 }
 0x51f   : > { %1893 = vrcp.f32 %v755_v15 }
 0x529   : > { %v1894_v17 = vpop.eup %1893 }
 0x52a   : > { %v758_v18 = vmul.f32 2.0, %v1894_v17  ;;  %v760_v27 = vmul.f32 %v1894_v17, %v650_v51 }
 0x52c   : > { %v1619_v19 = vadd.f32 -1.0, %v758_v18 }
 0x52e   : > { %762 = vrot.lane.b32.xlu1 %v1619_v19, %s1958_s22 }
 0x5a0   : > { %v763_v20 = vpop.permute.xlu1 %762 }
 0x5a1   : > { %v765_v21 = vmul.f32 %v1894_v17, %v763_v20 }
 0x5a3   : > { %767 = vrot.lane.b32.xlu0 %v765_v21, %s1958_s22 }
 0x615   : > { %v768_v29 = vpop.permute.xlu0 %767 }
 0x616   : > { %v770_v30 = vadd.f32 %v768_v29, %v760_v27 }
 0x618   : > { %772 = vrot.lane.b32.xlu1 %v770_v30, %s1958_s22 }
 0x68a   : > { %v773_v31 = vpop.permute.xlu1 %772 }
 0x68b   : > { %v775_v32 = vmul.f32 %v1894_v17, %v773_v31 }
 0x68d   : > { %777 = vrot.lane.b32.xlu1 %v775_v32, %s1959_s23 }
 0x6ff   : > { %v778_v41 = vpop.permute.xlu1 %777 }
 0x700   : > { %1620 = vst.msk [vmem:[%s2032_s16 + $0x8] sm:$0xff] %vm537_vm3, %v778_v41  ;;  %1744 = vmatmul.mubr.msk.f32.vlgmr.msra.gmra.mrb[8].mxu0 %vm537_vm3, %v778_v41 }
 0x701   : > { %1831 = vmatpush3.bf16.msra.mxu0 %v2054_v9  ;;  %1765 = vmatprep.mubr.msk.f32.mxu0 %vm1956_vm2, %v1957_v12 }
 0x702   : > { %1832 = vmatprep.subr.bf16.mxu0 %v1955_v5 }
 0x705   : > { %1834 = vmatpush3.bf16.msra.mxu0 %v2067_v14 }
 0x706   : > { %1841 = vmatprep.subr.bf16.mxu0 %v1955_v5 }
 0x7d3   : > { %v852_v43 = vpop.f32.mrb[8].mxu0 }
 0x7d4   : > { %v856_v44 = vadd.f32 %v852_v43, %v480_v42  ;;  %v1745_v45 = vpop.f32.mrb[9].mxu0 }
 0x7d6   : > { %857 = vadd.xlane.f32.xlu1 %v856_v44  ;;  %v860_v46 = vmul.f32 %v856_v44, %v856_v44 }
 0x7d8   : > { %861 = vadd.xlane.f32.xlu0 %v860_v46 }
 0x863   : > { %v858_v47 = vpop.xlane.xlu1 %857 }
 0x864   : > { %v859_v48 = vmul.f32 0.0078125, %v858_v47 }
 0x865   : > { %v862_v49 = vpop.xlane.xlu0 %861 }
 0x866   : > { %v864_v50 = vmul.f32 %v859_v48, %v859_v48  ;;  %v863_v51 = vmul.f32 0.0078125, %v862_v49  ;;  %v867_v55 = vsub.f32 %v856_v44, %v859_v48 }
 0x868   : > { %v865_v52 = vsub.f32 %v863_v51, %v864_v50 }
 0x86a   : > { %v866_v53 = vmax.f32 %v865_v52, 0.0 }
 0x86c   : > { %v868_v54 = vadd.f32 1e-06, %v866_v53  ;;  %v490_v53 = vadd.f32 %v2088_v16, %v2140_v38 }
 0x86e   : > { %1895 = vrsqrt.f32 %v868_v54 }
 0x878   : > { %v1896_v56 = vpop.eup %1895 }
 0x879   : > { %v870_v57 = vmul.f32 %v1896_v56, %v867_v55 }
 0x87b   : > { %v871_v58 = vmul.f32 %v2094_v34, %v870_v57 }
 0x87d   : > { %v872_v59 = vadd.f32 %v2099_v36, %v871_v58 }
 0x87f   : > { %v1622_v60 = vmul.f32 -1.442695, %v872_v59 }
 0x881   : > { %1897 = vpow2.f32 %v1622_v60 }
 0x88b   : > { %v1898_v61 = vpop.eup %1897 }
 0x88c   : > { %v876_v62 = vadd.f32 1.0, %v1898_v61 }
 0x88e   : > { %1899 = vrcp.f32 %v876_v62 }
 0x898   : > { %v1900_v63 = vpop.eup %1899 }
 0x899   : > { %v879_v0 = vmul.f32 2.0, %v1900_v63  ;;  %v881_v4 = vmul.f32 %v1900_v63, %v770_v30 }
 0x89b   : > { %v1623_v1 = vadd.f32 -1.0, %v879_v0 }
 0x89d   : > { %883 = vrot.lane.b32.xlu1 %v1623_v1, %s1958_s22 }
 0x90f   : > { %v884_v2 = vpop.permute.xlu1 %883 }
 0x910   : > { %v886_v3 = vmul.f32 %v1900_v63, %v884_v2 }
 0x912   : > { %888 = vrot.lane.b32.xlu0 %v886_v3, %s1958_s22 }
 0x984   : > { %v889_v6 = vpop.permute.xlu0 %888 }
 0x985   : > { %v891_v7 = vadd.f32 %v889_v6, %v881_v4 }
 0x987   : > { %893 = vrot.lane.b32.xlu1 %v891_v7, %s1958_s22 }
 0x9f9   : > { %v894_v8 = vpop.permute.xlu1 %893 }
 0x9fa   : > { %v896_v10 = vmul.f32 %v1900_v63, %v894_v8 }
 0x9fc   : > { %898 = vrot.lane.b32.xlu1 %v896_v10, %s1959_s23 }
 0xa6e   : > { %v899_v11 = vpop.permute.xlu1 %898 }
 0xa6f   : > { %1624 = vst.msk [vmem:[%s2032_s16 + $0x10] sm:$0xff] %vm537_vm3, %v899_v11  ;;  %1755 = vmatmul.mubr.msk.f32.vlgmr.msra.gmra.mrb[4].mxu1 %vm537_vm3, %v899_v11 }
 0xa70   : > { %1837 = vmatpush3.bf16.msra.mxu1 %v2054_v9  ;;  %1776 = vmatprep.mubr.msk.f32.mxu1 %vm1956_vm2, %v1957_v12 }
 0xa71   : > { %1838 = vmatprep.subr.bf16.mxu1 %v1955_v5 }
 0xa74   : > { %1840 = vmatpush3.bf16.msra.mxu1 %v2067_v14 }
 0xa75   : > { %1847 = vmatprep.subr.bf16.mxu1 %v1955_v5 }
 0xb42   : > { %v973_v15 = vpop.f32.mrb[4].mxu1 }
 0xb43   : > { %v977_v17 = vadd.f32 %v973_v15, %v485_v13  ;;  %v1756_v18 = vpop.f32.mrb[5].mxu1 }
 0xb45   : > { %978 = vadd.xlane.f32.xlu0 %v977_v17  ;;  %v981_v19 = vmul.f32 %v977_v17, %v977_v17 }
 0xb47   : > { %982 = vadd.xlane.f32.xlu1 %v981_v19 }
 0xbd2   : > { %v979_v20 = vpop.xlane.xlu0 %978 }
 0xbd3   : > { %v980_v21 = vmul.f32 0.0078125, %v979_v20 }
 0xbd4   : > { %v983_v22 = vpop.xlane.xlu1 %982 }
 0xbd5   : > { %v985_v23 = vmul.f32 %v980_v21, %v980_v21  ;;  %v984_v24 = vmul.f32 0.0078125, %v983_v22  ;;  %v988_v28 = vsub.f32 %v977_v17, %v980_v21 }
 0xbd7   : > { %v986_v25 = vsub.f32 %v984_v24, %v985_v23 }
 0xbd9   : > { %v987_v26 = vmax.f32 %v986_v25, 0.0  ;;  %v495_v25 = vadd.f32 %v2138_v37, %v2088_v16 }
 0xbdb   : > { %v989_v27 = vadd.f32 1e-06, %v987_v26 }
 0xbdd   : > { %1901 = vrsqrt.f32 %v989_v27 }
 0xbe7   : > { %v1902_v29 = vpop.eup %1901 }
 0xbe8   : > { %v991_v30 = vmul.f32 %v1902_v29, %v988_v28 }
 0xbea   : > { %v992_v31 = vmul.f32 %v2094_v34, %v991_v30 }
 0xbec   : > { %v993_v32 = vadd.f32 %v2099_v36, %v992_v31 }
 0xbee   : > { %v1626_v33 = vmul.f32 -1.442695, %v993_v32 }
 0xbf0   : > { %1903 = vpow2.f32 %v1626_v33 }
 0xbfa   : > { %v1904_v35 = vpop.eup %1903 }
 0xbfb   : > { %v997_v41 = vadd.f32 1.0, %v1904_v35 }
 0xbfd   : > { %1905 = vrcp.f32 %v997_v41 }
 0xc07   : > { %v1906_v42 = vpop.eup %1905 }
 0xc08   : > { %v1000_v43 = vmul.f32 2.0, %v1906_v42  ;;  %v1002_v47 = vmul.f32 %v1906_v42, %v891_v7 }
 0xc0a   : > { %v1627_v44 = vadd.f32 -1.0, %v1000_v43 }
 0xc0c   : > { %1004 = vrot.lane.b32.xlu0 %v1627_v44, %s1958_s22 }
 0xc7e   : > { %v1005_v45 = vpop.permute.xlu0 %1004 }
 0xc7f   : > { %v1007_v46 = vmul.f32 %v1906_v42, %v1005_v45 }
 0xc81   : > { %1009 = vrot.lane.b32.xlu1 %v1007_v46, %s1958_s22 }
 0xcf3   : > { %v1010_v48 = vpop.permute.xlu1 %1009 }
 0xcf4   : > { %v1012_v49 = vadd.f32 %v1010_v48, %v1002_v47 }
 0xcf6   : > { %1014 = vrot.lane.b32.xlu0 %v1012_v49, %s1958_s22 }
 0xd68   : > { %v1015_v50 = vpop.permute.xlu0 %1014 }
 0xd69   : > { %v1017_v51 = vmul.f32 %v1906_v42, %v1015_v50 }
 0xd6b   : > { %1019 = vrot.lane.b32.xlu1 %v1017_v51, %s1959_s23 }
 0xddd   : > { %v1020_v52 = vpop.permute.xlu1 %1019 }
 0xdde   : > { %1628 = vst.msk [vmem:[%s2032_s16 + $0x18] sm:$0xff] %vm537_vm3, %v1020_v52  ;;  %1766 = vmatmul.mubr.msk.f32.vlgmr.msra.gmra.mrb[10].mxu0 %vm537_vm3, %v1020_v52 }
 0xddf   : > { %1843 = vmatpush3.bf16.msra.mxu0 %v2054_v9  ;;  %1787 = vmatprep.mubr.msk.f32.mxu0 %vm1956_vm2, %v1957_v12 }
 0xde0   : > { %1844 = vmatprep.subr.bf16.mxu0 %v1955_v5 }
 0xde3   : > { %1846 = vmatpush3.bf16.msra.mxu0 %v2067_v14 }
 0xeb1   : > { %v1094_v54 = vpop.f32.mrb[10].mxu0 }
 0xeb2   : > { %v1098_v55 = vadd.f32 %v1094_v54, %v490_v53  ;;  %v1767_v56 = vpop.f32.mrb[11].mxu0 }
 0xeb4   : > { %1099 = vadd.xlane.f32.xlu0 %v1098_v55  ;;  %v1102_v57 = vmul.f32 %v1098_v55, %v1098_v55 }
 0xeb6   : > { %1103 = vadd.xlane.f32.xlu1 %v1102_v57 }
 0xf41   : > { %v1100_v58 = vpop.xlane.xlu0 %1099 }
 0xf42   : > { %v1101_v59 = vmul.f32 0.0078125, %v1100_v58  ;;  %v500_v58 = vadd.f32 %v2088_v16, %v2144_v40 }
 0xf43   : > { %v1104_v60 = vpop.xlane.xlu1 %1103 }
 0xf44   : > { %v1106_v61 = vmul.f32 %v1101_v59, %v1101_v59  ;;  %v1105_v62 = vmul.f32 0.0078125, %v1104_v60  ;;  %v1109_v2 = vsub.f32 %v1098_v55, %v1101_v59 }
 0xf46   : > { %v1107_v63 = vsub.f32 %v1105_v62, %v1106_v61 }
 0xf48   : > { %v1108_v0 = vmax.f32 %v1107_v63, 0.0 }
 0xf4a   : > { %v1110_v1 = vadd.f32 1e-06, %v1108_v0 }
 0xf4c   : > { %1907 = vrsqrt.f32 %v1110_v1 }
 0xf56   : > { %v1908_v3 = vpop.eup %1907 }
 0xf57   : > { %v1112_v4 = vmul.f32 %v1908_v3, %v1109_v2 }
 0xf59   : > { %v1113_v38 = vmul.f32 %v2094_v34, %v1112_v4 }
 0xf5b   : > { %v1114_v6 = vadd.f32 %v2099_v36, %v1113_v38 }
 0xf5d   : > { %v1630_v7 = vmul.f32 -1.442695, %v1114_v6 }
 0xf5f   : > { %1909 = vpow2.f32 %v1630_v7 }
 0xf69   : > { %v1910_v8 = vpop.eup %1909 }
 0xf6a   : > { %v1118_v10 = vadd.f32 1.0, %v1910_v8 }
 0xf6c   : > { %1911 = vrcp.f32 %v1118_v10 }
 0xf76   : > { %v1912_v11 = vpop.eup %1911 }
 0xf77   : > { %v1121_v13 = vmul.f32 2.0, %v1912_v11  ;;  %v1123_v19 = vmul.f32 %v1912_v11, %v1012_v49 }
 0xf79   : > { %v1631_v15 = vadd.f32 -1.0, %v1121_v13 }
 0xf7b   : > { %1125 = vrot.lane.b32.xlu0 %v1631_v15, %s1958_s22 }
 0xfed   : > { %v1126_v17 = vpop.permute.xlu0 %1125 }
 0xfee   : > { %v1128_v18 = vmul.f32 %v1912_v11, %v1126_v17 }
 0xff0   : > { %1130 = vrot.lane.b32.xlu1 %v1128_v18, %s1958_s22 }
0x1062   : > { %v1131_v20 = vpop.permute.xlu1 %1130 }
0x1063   : > { %v1133_v21 = vadd.f32 %v1131_v20, %v1123_v19 }
0x1065   : > { %1135 = vrot.lane.b32.xlu0 %v1133_v21, %s1958_s22 }
0x10d7   : > { %v1136_v22 = vpop.permute.xlu0 %1135 }
0x10d8   : > { %v1138_v23 = vmul.f32 %v1912_v11, %v1136_v22 }
0x10da   : > { %1140 = vrot.lane.b32.xlu1 %v1138_v23, %s1959_s23 }
0x114c   : > { %v1141_v24 = vpop.permute.xlu1 %1140 }
0x114d   : > { %1632 = vst.msk [vmem:[%s2032_s16 + $0x20] sm:$0xff] %vm537_vm3, %v1141_v24  ;;  %1777 = vmatmul.mubr.msk.f32.vlgmr.msra.gmra.mrb[6].mxu1 %vm537_vm3, %v1141_v24 }
0x114e   : > { %1849 = vmatpush3.bf16.msra.mxu1 %v2054_v9  ;;  %1798 = vmatprep.mubr.msk.f32.mxu1 %vm1956_vm2, %v1957_v12 }
0x114f   : > { %1850 = vmatprep.subr.bf16.mxu1 %v1955_v5 }
0x1152   : > { %1852 = vmatpush3.bf16.msra.mxu1 %v2067_v14 }
0x1220   : > { %v1215_v26 = vpop.f32.mrb[6].mxu1 }
0x1221   : > { %v1219_v27 = vadd.f32 %v1215_v26, %v495_v25  ;;  %v1778_v28 = vpop.f32.mrb[7].mxu1 }
0x1223   : > { %1220 = vadd.xlane.f32.xlu0 %v1219_v27  ;;  %v1223_v29 = vmul.f32 %v1219_v27, %v1219_v27 }
0x1225   : > { %1224 = vadd.xlane.f32.xlu1 %v1223_v29  ;;  %v505_v29 = vadd.f32 %v2142_v39, %v2088_v16 }
0x12b0   : > { %v1221_v30 = vpop.xlane.xlu0 %1220 }
0x12b1   : > { %v1222_v31 = vmul.f32 0.0078125, %v1221_v30 }
0x12b2   : > { %v1225_v32 = vpop.xlane.xlu1 %1224 }
0x12b3   : > { %v1227_v9 = vmul.f32 %v1222_v31, %v1222_v31  ;;  %v1226_v33 = vmul.f32 0.0078125, %v1225_v32  ;;  %v1230_v5 = vsub.f32 %v1219_v27, %v1222_v31 }
0x12b5   : > { %v1228_v35 = vsub.f32 %v1226_v33, %v1227_v9 }
0x12b7   : > { %v1229_v12 = vmax.f32 %v1228_v35, 0.0 }
0x12b9   : > { %v1231_v41 = vadd.f32 1e-06, %v1229_v12 }
0x12bb   : > { %1913 = vrsqrt.f32 %v1231_v41 }
0x12c5   : > { %v1914_v14 = vpop.eup %1913 }
0x12c6   : > { %v1233_v42 = vmul.f32 %v1914_v14, %v1230_v5 }
0x12c8   : > { %v1234_v37 = vmul.f32 %v2094_v34, %v1233_v42 }
0x12ca   : > { %v1235_v43 = vadd.f32 %v2099_v36, %v1234_v37 }
0x12cc   : > { %v1634_v44 = vmul.f32 -1.442695, %v1235_v43 }
0x12ce   : > { %1915 = vpow2.f32 %v1634_v44 }
0x12d8   : > { %v1916_v45 = vpop.eup %1915 }
0x12d9   : > { %v1239_v46 = vadd.f32 1.0, %v1916_v45 }
0x12db   : > { %1917 = vrcp.f32 %v1239_v46 }
0x12e5   : > { %v1918_v47 = vpop.eup %1917 }
0x12e6   : > { %v1242_v48 = vmul.f32 2.0, %v1918_v47  ;;  %v1244_v52 = vmul.f32 %v1918_v47, %v1133_v21 }
0x12e8   : > { %v1635_v49 = vadd.f32 -1.0, %v1242_v48 }
0x12ea   : > { %1246 = vrot.lane.b32.xlu0 %v1635_v49, %s1958_s22 }
0x135c   : > { %v1247_v50 = vpop.permute.xlu0 %1246 }
0x135d   : > { %v1249_v51 = vmul.f32 %v1918_v47, %v1247_v50 }
0x135f   : > { %1251 = vrot.lane.b32.xlu1 %v1249_v51, %s1958_s22 }
0x13d1   : > { %v1252_v53 = vpop.permute.xlu1 %1251 }
0x13d2   : > { %v1254_v54 = vadd.f32 %v1252_v53, %v1244_v52 }
0x13d4   : > { %1256 = vrot.lane.b32.xlu0 %v1254_v54, %s1958_s22 }
0x1446   : > { %v1257_v55 = vpop.permute.xlu0 %1256 }
0x1447   : > { %v1259_v56 = vmul.f32 %v1918_v47, %v1257_v55 }
0x1449   : > { %1261 = vrot.lane.b32.xlu1 %v1259_v56, %s1959_s23 }
0x14bb   : > { %v1262_v57 = vpop.permute.xlu1 %1261 }
0x14bc   : > { %1636 = vst.msk [vmem:[%s2032_s16 + $0x28] sm:$0xff] %vm537_vm3, %v1262_v57  ;;  %1788 = vmatmul.mubr.msk.f32.vlgmr.msra.gmra.mrb[12].mxu0 %vm537_vm3, %v1262_v57 }
0x158f   : > { %v1336_v59 = vpop.f32.mrb[12].mxu0 }
0x1590   : > { %v1340_v60 = vadd.f32 %v1336_v59, %v500_v58  ;;  %v1789_v61 = vpop.f32.mrb[13].mxu0 }
0x1592   : > { %1341 = vadd.xlane.f32.xlu0 %v1340_v60  ;;  %v1344_v62 = vmul.f32 %v1340_v60, %v1340_v60 }
0x1594   : > { %1345 = vadd.xlane.f32.xlu1 %v1344_v62 }
0x161f   : > { %v1342_v63 = vpop.xlane.xlu0 %1341 }
0x1620   : > { %v1343_v0 = vmul.f32 0.0078125, %v1342_v63 }
0x1621   : > { %v1346_v1 = vpop.xlane.xlu1 %1345 }
0x1622   : > { %v1348_v2 = vmul.f32 %v1343_v0, %v1343_v0  ;;  %v1347_v3 = vmul.f32 0.0078125, %v1346_v1  ;;  %v1351_v7 = vsub.f32 %v1340_v60, %v1343_v0 }
0x1624   : > { %v1349_v4 = vsub.f32 %v1347_v3, %v1348_v2 }
0x1626   : > { %v1350_v38 = vmax.f32 %v1349_v4, 0.0 }
0x1628   : > { %v1352_v6 = vadd.f32 1e-06, %v1350_v38 }
0x162a   : > { %1919 = vrsqrt.f32 %v1352_v6 }
0x1634   : > { %v1920_v8 = vpop.eup %1919 }
0x1635   : > { %v1354_v10 = vmul.f32 %v1920_v8, %v1351_v7 }
0x1637   : > { %v1355_v40 = vmul.f32 %v2094_v34, %v1354_v10 }
0x1639   : > { %v1356_v11 = vadd.f32 %v2099_v36, %v1355_v40 }
0x163b   : > { %v1638_v13 = vmul.f32 -1.442695, %v1356_v11 }
0x163d   : > { %1921 = vpow2.f32 %v1638_v13 }
0x1647   : > { %v1922_v15 = vpop.eup %1921 }
0x1648   : > { %v1360_v17 = vadd.f32 1.0, %v1922_v15 }
0x164a   : > { %1923 = vrcp.f32 %v1360_v17 }
0x1654   : > { %v1924_v18 = vpop.eup %1923 }
0x1655   : > { %v1363_v19 = vmul.f32 2.0, %v1924_v18  ;;  %v1365_v23 = vmul.f32 %v1924_v18, %v1254_v54 }
0x1657   : > { %v1639_v20 = vadd.f32 -1.0, %v1363_v19 }
0x1659   : > { %1367 = vrot.lane.b32.xlu0 %v1639_v20, %s1958_s22 }
0x16cb   : > { %v1368_v21 = vpop.permute.xlu0 %1367 }
0x16cc   : > { %v1370_v22 = vmul.f32 %v1924_v18, %v1368_v21 }
0x16ce   : > { %1372 = vrot.lane.b32.xlu1 %v1370_v22, %s1958_s22 }
0x1740   : > { %v1373_v24 = vpop.permute.xlu1 %1372 }
0x1741   : > { %v1375_v25 = vadd.f32 %v1373_v24, %v1365_v23 }
0x1743   : > { %1377 = vrot.lane.b32.xlu0 %v1375_v25, %s1958_s22 }
0x17b5   : > { %v1378_v26 = vpop.permute.xlu0 %1377 }
0x17b6   : > { %v1380_v27 = vmul.f32 %v1924_v18, %v1378_v26 }
0x17b8   : > { %1382 = vrot.lane.b32.xlu1 %v1380_v27, %s1959_s23 }
0x182a   : > { %v1383_v28 = vpop.permute.xlu1 %1382 }
0x182b   : > { %1640 = vst.msk [vmem:[%s2032_s16 + $0x30] sm:$0xff] %vm537_vm3, %v1383_v28  ;;  %1799 = vmatmul.mubr.msk.f32.vlgmr.msra.gmra.mrb[8].mxu1 %vm537_vm3, %v1383_v28 }
0x18fe   : > { %v1457_v30 = vpop.f32.mrb[8].mxu1 }
0x18ff   : > { %v1461_v31 = vadd.f32 %v1457_v30, %v505_v29  ;;  %v1800_v32 = vpop.f32.mrb[9].mxu1 }
0x1901   : > { %1462 = vadd.xlane.f32.xlu0 %v1461_v31  ;;  %v1465_v9 = vmul.f32 %v1461_v31, %v1461_v31 }
0x1903   : > { %1466 = vadd.xlane.f32.xlu1 %v1465_v9 }
0x198e   : > { %v1463_v33 = vpop.xlane.xlu0 %1462 }
0x198f   : > { %v1464_v35 = vmul.f32 0.0078125, %v1463_v33 }
0x1990   : > { %v1467_v12 = vpop.xlane.xlu1 %1466 }
0x1991   : > { %v1469_v41 = vmul.f32 %v1464_v35, %v1464_v35  ;;  %v1468_v5 = vmul.f32 0.0078125, %v1467_v12  ;;  %v1472_v43 = vsub.f32 %v1461_v31, %v1464_v35 }
0x1993   : > { %v1470_v14 = vsub.f32 %v1468_v5, %v1469_v41 }
0x1995   : > { %v1471_v42 = vmax.f32 %v1470_v14, 0.0 }
0x1997   : > { %v1473_v37 = vadd.f32 1e-06, %v1471_v42 }
0x1999   : > { %1925 = vrsqrt.f32 %v1473_v37 }
0x19a3   : > { %v1926_v44 = vpop.eup %1925 }
0x19a4   : > { %v1475_v45 = vmul.f32 %v1926_v44, %v1472_v43 }
0x19a6   : > { %v1476_v16 = vmul.f32 %v2094_v34, %v1475_v45 }
0x19a8   : > { %v1477_v39 = vadd.f32 %v2099_v36, %v1476_v16 }
0x19aa   : > { %v1642_v46 = vmul.f32 -1.442695, %v1477_v39 }
0x19ac   : > { %1927 = vpow2.f32 %v1642_v46 }
0x19b6   : > { %v1928_v47 = vpop.eup %1927 }
0x19b7   : > { %v1481_v48 = vadd.f32 1.0, %v1928_v47 }
0x19b9   : > { %1929 = vrcp.f32 %v1481_v48 }
0x19c3   : > { %v1930_v49 = vpop.eup %1929 }
0x19c4   : > { %v1484_v50 = vmul.f32 2.0, %v1930_v49  ;;  %v1486_v54 = vmul.f32 %v1930_v49, %v1375_v25 }
0x19c6   : > { %v1643_v51 = vadd.f32 -1.0, %v1484_v50 }
0x19c8   : > { %1488 = vrot.lane.b32.xlu0 %v1643_v51, %s1958_s22 }
0x1a3a   : > { %v1489_v52 = vpop.permute.xlu0 %1488 }
0x1a3b   : > { %v1491_v53 = vmul.f32 %v1930_v49, %v1489_v52 }
0x1a3d   : > { %1493 = vrot.lane.b32.xlu1 %v1491_v53, %s1958_s22 }
0x1aaf   : > { %v1494_v55 = vpop.permute.xlu1 %1493 }
0x1ab0   : > { %v1496_v34 = vadd.f32 %v1494_v55, %v1486_v54 }
0x1ab2   : > { %1498 = vrot.lane.b32.xlu0 %v1496_v34, %s1958_s22 }
0x1ab6   : > { %1509 = vrot.lane.b32.xlu0 %v1496_v34, %s1960_s13 }
0x1b24   : > { %v1499_v36 = vpop.permute.xlu0 %1498 }
0x1b25   : > { %v1501_v56 = vmul.f32 %v1930_v49, %v1499_v36 }
0x1b27   : > { %1503 = vrot.lane.b32.xlu1 %v1501_v56, %s1959_s23 }
0x1b28   : > { %v1510_v57 = vpop.permute.xlu0 %1509 }
0x1b29   : > { %1512 = vst.msk [vmem:[#allocation3] sm:$0xff] %vm537_vm3, %v1510_v57 }
0x1b99   : > { %v1504_v58 = vpop.permute.xlu1 %1503 }
0x1b9a   : > { %1644 = vst.msk [vmem:[%s2032_s16 + $0x38] sm:$0xff] %vm537_vm3, %v1504_v58  ;;  %1508 = vst.msk [vmem:[#allocation2] sm:$0xff] %vm537_vm3, %v1504_v58 }
0x1b9b PF: > { %s18_s29 = sadd.s32 1, %s1953_s29   ;;  %s2254_s27 = smov %s1949_s28 }
0x1b9c   : > { %p15_p6 = scmp.ge.s32.totalorder %s18_s29, 4   ;;  %s2255_s28 = smov %s2257_s30 }
0x1b9e   :  { %17 = sbr.rel (!%p15_p6) target bundleno = 2 (0x2), region = 100 }

</bundles_post_ra>
